<compile_context>
chip_gen: v7x
topology: tpu7x:2x2x1
jax: 0.10.0
libtpu: 0.0.40
codegen_flags: <defaults>
</compile_context>

<pallas_src>
import jax
import jax.numpy as jnp
from jax.experimental import pallas as pl
from jax.experimental.pallas import tpu as pltpu


def _buffered_kwargs(n):
    """{'pipeline_mode': pl.Buffered(n)} when this JAX supports it, else {}."""
    buffered = getattr(pl, "Buffered", None)
    if buffered is None:
        return {}
    try:
        kw = dict(pipeline_mode=buffered(n))
        pl.BlockSpec((8, 128), lambda i: (0, 0), **kw)   # kwarg-support probe
        return kw
    except TypeError:
        return {}


def _upsample_conv_kernel(x_ref, w_ref, bias_ref, o_ref):
    """One (batch, row-block) grid step.

    x_ref    : (1, Hp+2, W+2, Cp)   spatially pre-padded NHWC frame (f32)
    w_ref    : (4, 4*Cp, Cp)        phase-folded im2col weights (bf16)
    bias_ref : (1, Cp)              bias (f32, channel-padded)
    o_ref    : (1, th, 2, W, 2*Cp)  output rows in natural phase order
                                    (row-major identical to (2*th, 2*W, Cp))
    """
    _, th, _, w_in, two_cp = o_ref.shape
    cp = two_cp // 2

    r = pl.program_id(1)
    row0 = pl.multiple_of(r * th, th)

    # (th+2, W+2, Cp) input band for this row block; bf16 MXU operands.
    band = x_ref[0, pl.ds(row0, th + 2), :, :].astype(jnp.bfloat16)

    # Hoisted bias broadcast (JAX does not CSE broadcast_in_dim).
    bias = jnp.broadcast_to(bias_ref[0].astype(jnp.float32), (th * w_in, cp))

    for a in (0, 1):            # output row phase
        for b in (0, 1):        # output column phase
            # im2col: the 4 folded 2x2 taps, lane-concatenated -> K = 4*Cp.
            # TODO(synk): on v5e (128-deep MXU) four accumulating
            # (th*W, Cp) x (Cp, Cp) matmuls would avoid this concat copy.
            patch = jnp.concatenate(
                [band[a:a + th, b:b + w_in, :],
                 band[a:a + th, b + 1:b + 1 + w_in, :],
                 band[a + 1:a + 1 + th, b:b + w_in, :],
                 band[a + 1:a + 1 + th, b + 1:b + 1 + w_in, :]],
                axis=-1).reshape(th * w_in, 4 * cp)
            y = jnp.dot(patch, w_ref[2 * a + b],
                        preferred_element_type=jnp.float32) + bias
            # 128-aligned lane-range store straight into the natural output
            # layout; no in-kernel stack/reshape phase interleave.
            o_ref[0, :, a, :, b * cp:(b + 1) * cp] = (
                y.reshape(th, w_in, cp).astype(o_ref.dtype))


def _phase_folded_weights(weight_oihw, cpad):
    """(C, C, 3, 3) OIHW -> (4, 4*Cp, Cp) bf16 phase-folded im2col weights."""
    C = weight_oihw.shape[0]
    w_hwio = jnp.transpose(weight_oihw, (2, 3, 1, 0)).astype(jnp.float32)
    w_p = jnp.pad(w_hwio, ((0, 0), (0, 0), (0, cpad - C), (0, cpad - C)))

    def fold(a, b):
        # Fold the 3 kernel rows into 2 effective rows for output row-phase a.
        if a == 0:
            r0, r1 = w_p[0], w_p[1] + w_p[2]
        else:
            r0, r1 = w_p[0] + w_p[1], w_p[2]

        def fold_cols(wr):              # wr: (3, Cp, Cp) over kx
            if b == 0:
                return wr[0], wr[1] + wr[2]
            return wr[0] + wr[1], wr[2]

        c00, c01 = fold_cols(r0)
        c10, c11 = fold_cols(r1)
        # Tap order matches the kernel concat: (dy,dx) = 00, 01, 10, 11.
        return jnp.concatenate([c00, c01, c10, c11], axis=0)   # (4*Cp, Cp)

    folded = jnp.stack([fold(a, b) for a in (0, 1) for b in (0, 1)])
    return folded.astype(jnp.bfloat16)


def upsample_forward_nhwc(x_nhwc, weight_oihw, bias, *, target_rows=None):
    """NHWC-native forward: (N, H, W, C) -> (N, 2H, 2W, C)."""
    N, H, W, C = x_nhwc.shape
    Cp = max(128, ((C + 127) // 128) * 128)        # lane-dense channel count

    # Generation-aware VMEM cap (v5e/v6e: 128 MiB, v7x: 64 MiB) with ~15%
    # headroom for Mosaic internal scratch / semaphores.
    try:
        vmem_cap = int(pltpu.get_tpu_info().vmem_capacity_bytes * 0.85)
    except Exception:  # capability query unavailable -> conservative default
        vmem_cap = int((64 << 20) * 0.85)

    buf1 = _buffered_kwargs(1)
    frame_bufs = 1 if buf1 else 2
    w_bytes = 4 * (4 * Cp) * Cp * 2                # bf16 folded weights

    def vmem_needed(th):
        hp = ((H + th - 1) // th) * th
        frame = frame_bufs * (hp + 2) * (W + 2) * Cp * 4
        out_blk = 2 * th * 2 * W * 2 * Cp * 4      # double-buffered f32 block
        temps = ((th + 2) * (W + 2) * Cp * 2       # bf16 band copy
                 + th * W * 4 * Cp * 2             # one bf16 im2col patch
                 + 3 * th * W * Cp * 4)            # acc / bias / cast copies
        return frame + w_bytes + out_blk + temps + (4 << 20)

    # Row tile: th*W >= ~512 for MXU fill, th a multiple of 8 when possible.
    if target_rows is None:
        target_rows = max(1, (512 + W - 1) // W)
    th = max(1, min(H, ((target_rows + 7) // 8) * 8))
    while th > 1 and vmem_needed(th) > vmem_cap:
        th = max(1, (th // 2 // 8) * 8) if th > 8 else max(1, th // 2)
    # TODO(synk): for very large C (Cp >> 512, e.g. 1280-ch decoder stages)
    # add an output-channel grid axis so the weight slab need not be fully
    # VMEM-resident (most relevant on v7x's 64 MiB VMEM).

    Hp = ((H + th - 1) // th) * th
    vmem_limit = int(min(vmem_cap, max(vmem_needed(th), 32 << 20)))

    # +1 spatial halo (== the conv's padding=1 on the upsampled image under
    # the phase decomposition); rows padded to Hp, channels padded to Cp.
    x_pad = jnp.pad(x_nhwc, ((0, 0), (1, Hp - H + 1), (1, 1), (0, Cp - C)))

    w_eff = _phase_folded_weights(weight_oihw, Cp)          # (4, 4*Cp, Cp)
    b_pad = jnp.pad(bias.astype(jnp.float32), (0, Cp - C)).reshape(1, Cp)

    out_p = pl.pallas_call(
        _upsample_conv_kernel,
        out_shape=jax.ShapeDtypeStruct((N, Hp, 2, W, 2 * Cp), x_nhwc.dtype),
        grid_spec=pltpu.PrefetchScalarGridSpec(
            num_scalar_prefetch=0,
            grid=(N, Hp // th),
            in_specs=[
                # Padded frame: constant block index along the row axis so it
                # stays VMEM-resident per batch; single-buffered if supported.
                pl.BlockSpec((1, Hp + 2, W + 2, Cp),
                             lambda n, r: (n, 0, 0, 0), **buf1),
                pl.BlockSpec((4, 4 * Cp, Cp), lambda n, r: (0, 0, 0), **buf1),
                pl.BlockSpec((1, Cp), lambda n, r: (0, 0), **buf1),
            ],
            out_specs=pl.BlockSpec((1, th, 2, W, 2 * Cp),
                                   lambda n, r: (n, r, 0, 0, 0)),
        ),
        compiler_params=pltpu.CompilerParams(
            dimension_semantics=("parallel", "arbitrary"),
            vmem_limit_bytes=vmem_limit),
    )(x_pad, w_eff, b_pad)

    # Free row-major reshape: (N, Hp, 2, W, 2*Cp) == (N, 2*Hp, 2*W, Cp).
    out = out_p.reshape(N, 2 * Hp, 2 * W, Cp)
    if Hp != H:
        out = out[:, :2 * H]
    if Cp != C:
        out = out[..., :C]
    return out


def upsample_forward(x_nchw, weight_oihw, bias, **kw):
    """PyTorch-interface forward: (N, C, H, W) -> (N, C, 2H, 2W).

    TODO(synk): in an NHWC-native pipeline call upsample_forward_nhwc directly
    (and keep padded channels) to avoid these interface HBM transposes/slices.
    """
    x_nhwc = jnp.transpose(x_nchw, (0, 2, 3, 1))
    out_nhwc = upsample_forward_nhwc(x_nhwc, weight_oihw, bias, **kw)
    return jnp.transpose(out_nhwc, (0, 3, 1, 2))


def _reference(x_nchw, weight_oihw, bias):
    # Pure-JAX reference (XLA conv, strict f32) for the correctness check.
    x_nhwc = jnp.transpose(x_nchw, (0, 2, 3, 1))
    up = jnp.repeat(jnp.repeat(x_nhwc, 2, axis=1), 2, axis=2)
    w_hwio = jnp.transpose(weight_oihw, (2, 3, 1, 0))
    y = jax.lax.conv_general_dilated(
        up, w_hwio, window_strides=(1, 1), padding="SAME",
        dimension_numbers=("NHWC", "HWIO", "NHWC"),
        precision=jax.lax.Precision.HIGHEST)
    y = y + bias.reshape(1, 1, 1, -1)
    return jnp.transpose(y, (0, 3, 1, 2))


if __name__ == "__main__":
    key = jax.random.PRNGKey(0)
    k_x, k_w, k_b = jax.random.split(key, 3)

    N, C, H, W = 2, 4, 16, 16
    x = jax.random.normal(k_x, (N, C, H, W), dtype=jnp.float32)
    # Deterministic synthetic parameters (Conv2d(C, C, 3, padding=1) shapes).
    weight = 0.1 * jax.random.normal(k_w, (C, C, 3, 3), dtype=jnp.float32)
    bias = 0.05 * jax.random.normal(k_b, (C,), dtype=jnp.float32)

    out = jax.block_until_ready(upsample_forward(x, weight, bias))
    ref = jax.block_until_ready(_reference(x, weight, bias))

    assert out.shape == (N, C, 2 * H, 2 * W), out.shape
    # bf16 MXU operands with f32 accumulation -> slightly loosened tolerance.
    assert jnp.allclose(out, ref, rtol=2e-2, atol=2e-2), "mismatch vs reference"

    print("KERNEL_OK")
</pallas_src>

<mosaic_0001>
module attributes {stable_mosaic.version = 11 : i64} {
  func.func @_upsample_conv_kernel(%arg0: i32, %arg1: i32, %arg2: memref<1x18x18x128xf32, #tpu.memory_space<vmem>>, %arg3: memref<4x512x128xbf16, #tpu.memory_space<vmem>>, %arg4: memref<1x128xf32, #tpu.memory_space<vmem>>, %arg5: memref<1x16x2x16x256xf32, #tpu.memory_space<vmem>>) attributes {dimension_semantics = [#tpu.dimension_semantics<parallel>, #tpu.dimension_semantics<arbitrary>], iteration_bounds = array<i64: 2, 1>, scalar_prefetch = 0 : i64, scratch_operands = 0 : i64, tpu.core_type = #tpu.core_type<tc>, window_params = [{pipeline_mode = #tpu.pipeline_mode<synchronous>, transform_indices = @transform_0, window_bounds = array<i64: 1, 18, 18, 128>}, {pipeline_mode = #tpu.pipeline_mode<synchronous>, transform_indices = @transform_1, window_bounds = array<i64: 4, 512, 128>}, {pipeline_mode = #tpu.pipeline_mode<synchronous>, transform_indices = @transform_2, window_bounds = array<i64: 1, 128>}, {transform_indices = @transform_3, window_bounds = array<i64: 1, 16, 2, 16, 256>}]} {
    %c16_i32 = arith.constant 16 : i32
    %0 = arith.muli %arg1, %c16_i32 : i32
    %1 = tpu.assume_multiple %0, 16 : i32
    %c0 = arith.constant 0 : index
    %2 = arith.index_cast %1 : i32 to index
    %c0_0 = arith.constant 0 : index
    %c0_1 = arith.constant 0 : index
    %3 = vector.load %arg2[%c0, %2, %c0_0, %c0_1] : memref<1x18x18x128xf32, #tpu.memory_space<vmem>>, vector<1x18x18x128xf32>
    %4 = vector.shape_cast %3 : vector<1x18x18x128xf32> to vector<18x18x128xf32>
    %5 = arith.truncf %4 : vector<18x18x128xf32> to vector<18x18x128xbf16>
    %c0_2 = arith.constant 0 : index
    %c0_3 = arith.constant 0 : index
    %6 = vector.load %arg4[%c0_2, %c0_3] : memref<1x128xf32, #tpu.memory_space<vmem>>, vector<1x128xf32>
    %7 = vector.shape_cast %6 : vector<1x128xf32> to vector<128xf32>
    %8 = vector.shape_cast %7 : vector<128xf32> to vector<1x128xf32>
    %9 = vector.broadcast %8 : vector<1x128xf32> to vector<256x128xf32>
    %10 = vector.extract_strided_slice %5 {offsets = [0, 0, 0], sizes = [16, 16, 128], strides = [1, 1, 1]} : vector<18x18x128xbf16> to vector<16x16x128xbf16>
    %11 = vector.extract_strided_slice %5 {offsets = [0, 1, 0], sizes = [16, 16, 128], strides = [1, 1, 1]} : vector<18x18x128xbf16> to vector<16x16x128xbf16>
    %12 = vector.extract_strided_slice %5 {offsets = [1, 0, 0], sizes = [16, 16, 128], strides = [1, 1, 1]} : vector<18x18x128xbf16> to vector<16x16x128xbf16>
    %13 = vector.extract_strided_slice %5 {offsets = [1, 1, 0], sizes = [16, 16, 128], strides = [1, 1, 1]} : vector<18x18x128xbf16> to vector<16x16x128xbf16>
    %14 = tpu.concatenate %10, %11, %12, %13 in 2 : vector<16x16x128xbf16>, vector<16x16x128xbf16>, vector<16x16x128xbf16>, vector<16x16x128xbf16> -> vector<16x16x512xbf16>
    %15 = vector.shape_cast %14 : vector<16x16x512xbf16> to vector<256x512xbf16>
    %c0_4 = arith.constant 0 : index
    %c0_5 = arith.constant 0 : index
    %c0_6 = arith.constant 0 : index
    %16 = vector.load %arg3[%c0_4, %c0_5, %c0_6] : memref<4x512x128xbf16, #tpu.memory_space<vmem>>, vector<1x512x128xbf16>
    %17 = vector.shape_cast %16 : vector<1x512x128xbf16> to vector<512x128xbf16>
    %cst = arith.constant dense<0.000000e+00> : vector<256x128xf32>
    %18 = tpu.matmul %15, %17, %cst {dimension_numbers = #tpu.dot_dimension_numbers<[1], [0], [0], [1], [0, 0, 1, 1], [], []>} : vector<256x512xbf16>, vector<512x128xbf16>, vector<256x128xf32> -> vector<256x128xf32>
    %19 = arith.addf %18, %9 : vector<256x128xf32>
    %20 = vector.shape_cast %19 : vector<256x128xf32> to vector<16x16x128xf32>
    %c0_7 = arith.constant 0 : index
    %c0_8 = arith.constant 0 : index
    %c0_9 = arith.constant 0 : index
    %c0_10 = arith.constant 0 : index
    %c0_11 = arith.constant 0 : index
    %21 = vector.load %arg5[%c0_7, %c0_8, %c0_9, %c0_10, %c0_11] : memref<1x16x2x16x256xf32, #tpu.memory_space<vmem>>, vector<1x16x1x16x128xf32>
    %22 = vector.shape_cast %21 : vector<1x16x1x16x128xf32> to vector<16x16x128xf32>
    %23 = vector.shape_cast %20 : vector<16x16x128xf32> to vector<1x16x1x16x128xf32>
    tpu.vector_store %arg5[%c0_7, %c0_8, %c0_9, %c0_10, %c0_11], %23 {strides = array<i32>} : memref<1x16x2x16x256xf32, #tpu.memory_space<vmem>>, vector<1x16x1x16x128xf32>,
    %24 = vector.extract_strided_slice %5 {offsets = [0, 1, 0], sizes = [16, 16, 128], strides = [1, 1, 1]} : vector<18x18x128xbf16> to vector<16x16x128xbf16>
    %25 = vector.extract_strided_slice %5 {offsets = [0, 2, 0], sizes = [16, 16, 128], strides = [1, 1, 1]} : vector<18x18x128xbf16> to vector<16x16x128xbf16>
    %26 = vector.extract_strided_slice %5 {offsets = [1, 1, 0], sizes = [16, 16, 128], strides = [1, 1, 1]} : vector<18x18x128xbf16> to vector<16x16x128xbf16>
    %27 = vector.extract_strided_slice %5 {offsets = [1, 2, 0], sizes = [16, 16, 128], strides = [1, 1, 1]} : vector<18x18x128xbf16> to vector<16x16x128xbf16>
    %28 = tpu.concatenate %24, %25, %26, %27 in 2 : vector<16x16x128xbf16>, vector<16x16x128xbf16>, vector<16x16x128xbf16>, vector<16x16x128xbf16> -> vector<16x16x512xbf16>
    %29 = vector.shape_cast %28 : vector<16x16x512xbf16> to vector<256x512xbf16>
    %c1 = arith.constant 1 : index
    %c0_12 = arith.constant 0 : index
    %c0_13 = arith.constant 0 : index
    %30 = vector.load %arg3[%c1, %c0_12, %c0_13] : memref<4x512x128xbf16, #tpu.memory_space<vmem>>, vector<1x512x128xbf16>
    %31 = vector.shape_cast %30 : vector<1x512x128xbf16> to vector<512x128xbf16>
    %cst_14 = arith.constant dense<0.000000e+00> : vector<256x128xf32>
    %32 = tpu.matmul %29, %31, %cst_14 {dimension_numbers = #tpu.dot_dimension_numbers<[1], [0], [0], [1], [0, 0, 1, 1], [], []>} : vector<256x512xbf16>, vector<512x128xbf16>, vector<256x128xf32> -> vector<256x128xf32>
    %33 = arith.addf %32, %9 : vector<256x128xf32>
    %34 = vector.shape_cast %33 : vector<256x128xf32> to vector<16x16x128xf32>
    %c0_15 = arith.constant 0 : index
    %c0_16 = arith.constant 0 : index
    %c0_17 = arith.constant 0 : index
    %c0_18 = arith.constant 0 : index
    %c128 = arith.constant 128 : index
    %35 = vector.load %arg5[%c0_15, %c0_16, %c0_17, %c0_18, %c128] : memref<1x16x2x16x256xf32, #tpu.memory_space<vmem>>, vector<1x16x1x16x128xf32>
    %36 = vector.shape_cast %35 : vector<1x16x1x16x128xf32> to vector<16x16x128xf32>
    %37 = vector.shape_cast %34 : vector<16x16x128xf32> to vector<1x16x1x16x128xf32>
    tpu.vector_store %arg5[%c0_15, %c0_16, %c0_17, %c0_18, %c128], %37 {strides = array<i32>} : memref<1x16x2x16x256xf32, #tpu.memory_space<vmem>>, vector<1x16x1x16x128xf32>,
    %38 = vector.extract_strided_slice %5 {offsets = [1, 0, 0], sizes = [16, 16, 128], strides = [1, 1, 1]} : vector<18x18x128xbf16> to vector<16x16x128xbf16>
    %39 = vector.extract_strided_slice %5 {offsets = [1, 1, 0], sizes = [16, 16, 128], strides = [1, 1, 1]} : vector<18x18x128xbf16> to vector<16x16x128xbf16>
    %40 = vector.extract_strided_slice %5 {offsets = [2, 0, 0], sizes = [16, 16, 128], strides = [1, 1, 1]} : vector<18x18x128xbf16> to vector<16x16x128xbf16>
    %41 = vector.extract_strided_slice %5 {offsets = [2, 1, 0], sizes = [16, 16, 128], strides = [1, 1, 1]} : vector<18x18x128xbf16> to vector<16x16x128xbf16>
    %42 = tpu.concatenate %38, %39, %40, %41 in 2 : vector<16x16x128xbf16>, vector<16x16x128xbf16>, vector<16x16x128xbf16>, vector<16x16x128xbf16> -> vector<16x16x512xbf16>
    %43 = vector.shape_cast %42 : vector<16x16x512xbf16> to vector<256x512xbf16>
    %c2 = arith.constant 2 : index
    %c0_19 = arith.constant 0 : index
    %c0_20 = arith.constant 0 : index
    %44 = vector.load %arg3[%c2, %c0_19, %c0_20] : memref<4x512x128xbf16, #tpu.memory_space<vmem>>, vector<1x512x128xbf16>
    %45 = vector.shape_cast %44 : vector<1x512x128xbf16> to vector<512x128xbf16>
    %cst_21 = arith.constant dense<0.000000e+00> : vector<256x128xf32>
    %46 = tpu.matmul %43, %45, %cst_21 {dimension_numbers = #tpu.dot_dimension_numbers<[1], [0], [0], [1], [0, 0, 1, 1], [], []>} : vector<256x512xbf16>, vector<512x128xbf16>, vector<256x128xf32> -> vector<256x128xf32>
    %47 = arith.addf %46, %9 : vector<256x128xf32>
    %48 = vector.shape_cast %47 : vector<256x128xf32> to vector<16x16x128xf32>
    %c0_22 = arith.constant 0 : index
    %c0_23 = arith.constant 0 : index
    %c1_24 = arith.constant 1 : index
    %c0_25 = arith.constant 0 : index
    %c0_26 = arith.constant 0 : index
    %49 = vector.load %arg5[%c0_22, %c0_23, %c1_24, %c0_25, %c0_26] : memref<1x16x2x16x256xf32, #tpu.memory_space<vmem>>, vector<1x16x1x16x128xf32>
    %50 = vector.shape_cast %49 : vector<1x16x1x16x128xf32> to vector<16x16x128xf32>
    %51 = vector.shape_cast %48 : vector<16x16x128xf32> to vector<1x16x1x16x128xf32>
    tpu.vector_store %arg5[%c0_22, %c0_23, %c1_24, %c0_25, %c0_26], %51 {strides = array<i32>} : memref<1x16x2x16x256xf32, #tpu.memory_space<vmem>>, vector<1x16x1x16x128xf32>,
    %52 = vector.extract_strided_slice %5 {offsets = [1, 1, 0], sizes = [16, 16, 128], strides = [1, 1, 1]} : vector<18x18x128xbf16> to vector<16x16x128xbf16>
    %53 = vector.extract_strided_slice %5 {offsets = [1, 2, 0], sizes = [16, 16, 128], strides = [1, 1, 1]} : vector<18x18x128xbf16> to vector<16x16x128xbf16>
    %54 = vector.extract_strided_slice %5 {offsets = [2, 1, 0], sizes = [16, 16, 128], strides = [1, 1, 1]} : vector<18x18x128xbf16> to vector<16x16x128xbf16>
    %55 = vector.extract_strided_slice %5 {offsets = [2, 2, 0], sizes = [16, 16, 128], strides = [1, 1, 1]} : vector<18x18x128xbf16> to vector<16x16x128xbf16>
    %56 = tpu.concatenate %52, %53, %54, %55 in 2 : vector<16x16x128xbf16>, vector<16x16x128xbf16>, vector<16x16x128xbf16>, vector<16x16x128xbf16> -> vector<16x16x512xbf16>
    %57 = vector.shape_cast %56 : vector<16x16x512xbf16> to vector<256x512xbf16>
    %c3 = arith.constant 3 : index
    %c0_27 = arith.constant 0 : index
    %c0_28 = arith.constant 0 : index
    %58 = vector.load %arg3[%c3, %c0_27, %c0_28] : memref<4x512x128xbf16, #tpu.memory_space<vmem>>, vector<1x512x128xbf16>
    %59 = vector.shape_cast %58 : vector<1x512x128xbf16> to vector<512x128xbf16>
    %cst_29 = arith.constant dense<0.000000e+00> : vector<256x128xf32>
    %60 = tpu.matmul %57, %59, %cst_29 {dimension_numbers = #tpu.dot_dimension_numbers<[1], [0], [0], [1], [0, 0, 1, 1], [], []>} : vector<256x512xbf16>, vector<512x128xbf16>, vector<256x128xf32> -> vector<256x128xf32>
    %61 = arith.addf %60, %9 : vector<256x128xf32>
    %62 = vector.shape_cast %61 : vector<256x128xf32> to vector<16x16x128xf32>
    %c0_30 = arith.constant 0 : index
    %c0_31 = arith.constant 0 : index
    %c1_32 = arith.constant 1 : index
    %c0_33 = arith.constant 0 : index
    %c128_34 = arith.constant 128 : index
    %63 = vector.load %arg5[%c0_30, %c0_31, %c1_32, %c0_33, %c128_34] : memref<1x16x2x16x256xf32, #tpu.memory_space<vmem>>, vector<1x16x1x16x128xf32>
    %64 = vector.shape_cast %63 : vector<1x16x1x16x128xf32> to vector<16x16x128xf32>
    %65 = vector.shape_cast %62 : vector<16x16x128xf32> to vector<1x16x1x16x128xf32>
    tpu.vector_store %arg5[%c0_30, %c0_31, %c1_32, %c0_33, %c128_34], %65 {strides = array<i32>} : memref<1x16x2x16x256xf32, #tpu.memory_space<vmem>>, vector<1x16x1x16x128xf32>,
    return
  }
  func.func @transform_0(%arg0: i32, %arg1: i32) -> (i32, i32, i32, i32) {
    %c0_i32 = arith.constant 0 : i32
    %c0_i32_0 = arith.constant 0 : i32
    %c0_i32_1 = arith.constant 0 : i32
    %c0_i32_2 = arith.constant 0 : i32
    return %arg0, %c0_i32, %c0_i32_0, %c0_i32_1 : i32, i32, i32, i32
  }
  func.func @transform_1(%arg0: i32, %arg1: i32) -> (i32, i32, i32) {
    %c0_i32 = arith.constant 0 : i32
    %c0_i32_0 = arith.constant 0 : i32
    %c0_i32_1 = arith.constant 0 : i32
    %c0_i32_2 = arith.constant 0 : i32
    return %c0_i32, %c0_i32_0, %c0_i32_1 : i32, i32, i32
  }
  func.func @transform_2(%arg0: i32, %arg1: i32) -> (i32, i32) {
    %c0_i32 = arith.constant 0 : i32
    %c0_i32_0 = arith.constant 0 : i32
    %c0_i32_1 = arith.constant 0 : i32
    return %c0_i32, %c0_i32_0 : i32, i32
  }
  func.func @transform_3(%arg0: i32, %arg1: i32) -> (i32, i32, i32, i32, i32) {
    %c0_i32 = arith.constant 0 : i32
    %c0_i32_0 = arith.constant 0 : i32
    %c0_i32_1 = arith.constant 0 : i32
    %c0_i32_2 = arith.constant 0 : i32
    return %arg0, %arg1, %c0_i32, %c0_i32_0, %c0_i32_1 : i32, i32, i32, i32, i32
  }
}

</mosaic_0001>

<bundles_post_ra>
// kernel: tpu_custom_call.1
= control target key start
LH: loop header
LB: loop body
LE: loop exit
PB: predicated region body
PF: predicated region fallthrough
CT: control target
= control target key end

     0   :  { %8 = vsyncpa [#allocation3], 0  ;;  %s6279_s0 = inlined_call_operand.vmem [shape: f32[2,18,18,128], index: 0, kind: input, shape index: {}]   ;;  %s6280_s1 = inlined_call_operand.vmem [shape: bf16[4,512,128], index: 1, kind: input, shape index: {}]   ;;  %s6281_s2 = inlined_call_operand.vmem [shape: f32[1,128], index: 2, kind: input, shape index: {}]   ;;  %s6282_s3 = inlined_call_operand.hbm [shape: f32[2,16,2,16,256], index: 3, kind: output, shape index: {}]  }
   0x1   :  { %10 = vsyncpa [#allocation3 + $0x1], 0  ;;  %s4913_s12 = smov 0   ;;  %s4915_s13 = smov 0  }
   0x2   :  { %s4917_s14 = smov 0   ;;  %s4919_s15 = smov 0  }
   0x3   :  { %s4921_s16 = smov 0   ;;  %s4923_s17 = smov 0  }
   0x4 LB: > { %s3329_s18 = sadd.s32 4294967295, %s4888_s17   ;;  %s3330_s19 = sadd.s32 4294967294, %s4888_s17   ;;  %s4888_s17 = sphi %s4923_s17, %s16_s17   ;;  %s4884_s16 = sphi %s4921_s16, %s6313_s16   ;;  %s4880_s15 = sphi %s4919_s15, %s6312_s15   ;;  %s4876_s14 = sphi %s4917_s14, %s6311_s14   ;;  %s4872_s13 = sphi %s4915_s13, %s6310_s13   ;;  %s4868_s12 = sphi %s4913_s12, %s6309_s12  }
   0x5   : > { %s28_s20 = sadd.s32 1, %s4884_s16  ;;  %s105_s21 = sadd.s32 1, %s4876_s14 }
   0x6   : > { %p30_p0 = scmp.ge.s32.totalorder %s28_s20, 2  ;;  %p115_p1 = scmp.ne.s32.totalorder %s4876_s14, %s4872_s13 }
   0x7   : > { %p116_p2 = scmp.eq.s32.totalorder %s3329_s18, 1  ;;  %p121_p3 = scmp.ne.s32.totalorder %s4872_s13, %s4868_s12 }
   0x8   : > { %s6315_s20 = smov (%p30_p0, %s28_s20), 0  ;;  %p122_p5 = scmp.eq.s32.totalorder %s3330_s19, 1 }
   0x9   : > { %p4953_p4 = por %p116_p2, %p115_p1  ;;  %s100_s23 = ssub.s32 %s4884_s16, %s6315_s20 }
   0xa   : > { %p3332_p6 = scmp.ge.s32.totalorder %s4888_s17, 1  ;;  %p103_p7 = scmp.eq.s32.totalorder %s100_s23, 0 }
   0xb   : > { %p4960_p8 = por %p122_p5, %p121_p3  ;;  %p154_p9 = scmp.lt.s32.totalorder %s4888_s17, 3 }
   0xc   : > { %s4966_s25 = scalar_select %p103_p7, %s4876_s14, %s105_s21  }
   0xd   : > { %p155_p10 = pnand %p3332_p6, %p154_p9 }
   0xf   : > { %158 = sbr.rel (%p155_p10) target bundleno = 796 (0x31c), region = 32 }
  0x16   : > { %v4680_v0 = vld [vmem:[%s6280_s1 + $0x40] sm:$0xff]   ;;  %v4684_v4 = vld [vmem:[%s6280_s1 + $0x48] sm:$0xff]   ;;  %v4688_v8 = vld [vmem:[%s6280_s1 + $0x50] sm:$0xff]   ;;  %p178_p11 = scmp.lt.s32.totalorder %s4880_s15, 1  ;;  %vm285_vm0 = vsmask.f32 7424 }
  0x17   : > { %v4681_v1 = vld [vmem:[%s6280_s1 + $0xc0] sm:$0xff]   ;;  %3726 = vmatprep.subr.bf16.mxu0 %v4680_v0  ;;  %v4685_v5 = vld [vmem:[%s6280_s1 + $0xc8] sm:$0xff]   ;;  %v4689_v9 = vld [vmem:[%s6280_s1 + $0xd0] sm:$0xff]   ;;  %s175_s4 = sand.u32 1, %s4872_s13   ;;  %s3725_s27 = sshll.u32 %s4880_s15, 14 }
  0x18   : > { %v4682_v2 = vld [vmem:[%s6280_s1] sm:$0xff]   ;;  %3838 = vmatprep.subr.bf16.mxu1 %v4681_v1  ;;  %v4686_v6 = vld [vmem:[%s6280_s1 + $0x8] sm:$0xff]   ;;  %v4690_v10 = vld [vmem:[%s6280_s1 + $0x10] sm:$0xff]   ;;  %s179_s9 = scalar_select %p178_p11, %s4880_s15, 1 }
  0x19   : > { %v4683_v3 = vld [vmem:[%s6280_s1 + $0x80] sm:$0xff]   ;;  %3727 = vmatpush3.bf16.msra.mxu0 %v4682_v2  ;;  %v4687_v7 = vld [vmem:[%s6280_s1 + $0x88] sm:$0xff]   ;;  %v4691_v11 = vld [vmem:[%s6280_s1 + $0x90] sm:$0xff]   ;;  %s3333_s7 = sshll.u32 %s175_s4, 10  ;;  %s6225_s5 = scalar_lea.hbm %s6282_s3, %s3725_s27 }
  0x1a   : > { %3839 = vmatpush3.bf16.msra.mxu1 %v4683_v3  ;;  %3728 = vmatprep.subr.bf16.mxu0 %v4684_v4  ;;  %v4692_v12 = vld [vmem:[%s6280_s1 + $0x58] sm:$0xff]   ;;  %v4696_v16 = vld [vmem:[%s6280_s1 + $0x60] sm:$0xff]   ;;  %v4700_v20 = vld [vmem:[%s6280_s1 + $0x68] sm:$0xff]   ;;  %s4622_s28 = smul.u32 432, %s179_s9  ;;  %s5695_s8 = scalar_lea.vmem [#allocation2], %s3333_s7 }
  0x1b   : > { %3840 = vmatprep.subr.bf16.mxu1 %v4685_v5  ;;  %v4693_v13 = vld [vmem:[%s6280_s1 + $0xd8] sm:$0xff]   ;;  %v4697_v17 = vld [vmem:[%s6280_s1 + $0xe0] sm:$0xff]   ;;  %v4701_v21 = vld [vmem:[%s6280_s1 + $0xe8] sm:$0xff]   ;;  %s6233_s15 = scalar_lea.sflag [#allocation3], %s175_s4  ;;  %s4890_s7 = smov [#allocation2]  }
  0x1c   : > { %v4694_v14 = vld [vmem:[%s6280_s1 + $0x18] sm:$0xff]   ;;  %v4698_v18 = vld [vmem:[%s6280_s1 + $0x20] sm:$0xff]   ;;  %v4702_v22 = vld [vmem:[%s6280_s1 + $0x28] sm:$0xff]   ;;  %s5063_s18 = scalar_lea.vmem %s6279_s0, %s4622_s28  ;;  %s3251_s28 = sshll.u32 %s5695_s8, 4  ;;  %s6227_s28 = int_to_ptr.vmem [resolvable:$true] %s3251_s28 }
  0x1d   : > { %3729 = vmatpush3.bf16.msra.mxu0 %v4686_v6  ;;  %v4695_v15 = vld [vmem:[%s6280_s1 + $0x98] sm:$0xff]   ;;  %v4699_v19 = vld [vmem:[%s6280_s1 + $0xa0] sm:$0xff]   ;;  %v4703_v23 = vld [vmem:[%s6280_s1 + $0xa8] sm:$0xff]   ;;  %s4810_s6 = scalar_lea.vmem %s6227_s28, 16384  ;;  %s4814_s10 = sshll.u32 %s4890_s7, 4  ;;  %s4815_s10 = int_to_ptr.vmem [resolvable:$false] %s4814_s10 }
  0x1e   : > { %3841 = vmatpush3.bf16.msra.mxu1 %v4687_v7  ;;  %3730 = vmatprep.subr.bf16.mxu0 %v4688_v8  ;;  %v4704_v24 = vld [vmem:[%s6280_s1 + $0x70] sm:$0xff]   ;;  %v4708_v28 = vld [vmem:[%s6280_s1 + $0x78] sm:$0xff]   ;;  %v188_v32 = vld [vmem:[%s5063_s18] sm:$0xff]  ;;  %p4811_p12 = scmp.ne.s32.totalorder %s6227_s28, %s4810_s6  ;;  %s4816_s9 = scalar_lea.vmem %s4815_s10, 32768 }
  0x1f   : > { %3842 = vmatprep.subr.bf16.mxu1 %v4689_v9  ;;  %v4705_v25 = vld [vmem:[%s6280_s1 + $0xf0] sm:$0xff]   ;;  %v4709_v29 = vld [vmem:[%s6280_s1 + $0xf8] sm:$0xff]   ;;  %v189_v33 = vld [vmem:[%s5063_s18 + $0x8] sm:$0xff]  ;;  %p4817_p1 = scmp.lt.s32.totalorder %s6227_s28, %s4815_s10  ;;  %p4818_p2 = scmp.lt.s32.totalorder %s4816_s9, %s4810_s6 }
  0x20   : > { %v4706_v26 = vld [vmem:[%s6280_s1 + $0x30] sm:$0xff]   ;;  %v4710_v30 = vld [vmem:[%s6280_s1 + $0x38] sm:$0xff]   ;;  %v242_v35 = vpack.c.bf16 %v189_v33, %v188_v32  ;;  %v192_v38 = vld [vmem:[%s5063_s18 + $0x20] sm:$0xff]  ;;  %p4812_p13 = pnand %p4811_p12, %p4953_p4 }
  0x21   : > { %3731 = vmatpush3.bf16.msra.mxu0 %v4690_v10  ;;  %v4707_v27 = vld [vmem:[%s6280_s1 + $0xb0] sm:$0xff]   ;;  %v4711_v31 = vld [vmem:[%s6280_s1 + $0xb8] sm:$0xff]   ;;  %v193_v39 = vld [vmem:[%s5063_s18 + $0x28] sm:$0x3]  ;;  %p4819_p3 = por %p4818_p2, %p4817_p1 }
  0x22   : > { %3843 = vmatpush3.bf16.msra.mxu1 %v4691_v11  ;;  %3732 = vmatprep.subr.bf16.mxu0 %v4692_v12  ;;  %v190_v34 = vld [vmem:[%s5063_s18 + $0x10] sm:$0x3]  ;;  %v191_v37 = vld [vmem:[%s5063_s18 + $0x18] sm:$0xff]  ;;  %v5081_v41 = vpack.c.bf16 %v193_v39, %v193_v39  ;;  %v4712_v42 = vld [vmem:[%s6280_s1 + $0x140] sm:$0xff]   ;;  %v287_v43 = vshrl.u32 %v242_v35, 16  ;;  %v289_v44 = vshll.u32 %v242_v35, 16  ;;  %p4813_p0 = pneg %p4812_p13 }
  0x23   : > { %3844 = vmatprep.subr.bf16.mxu1 %v4693_v13  ;;  %v5074_v36 = vpack.c.bf16 %v190_v34, %v190_v34  ;;  %v5079_v40 = vpack.c.bf16 %v192_v38, %v191_v37  ;;  %v4714_v49 = vld [vmem:[%s6280_s1 + $0x1c0] sm:$0xff]   ;;  %v194_v57 = vld [vmem:[%s5063_s18 + $0x30] sm:$0xff]  ;;  %v195_v58 = vld [vmem:[%s5063_s18 + $0x38] sm:$0xff] }
  0x24   : > { %v306_v48 = vshll.u32 %v5081_v41, 16  ;;  %v291_v50 = vrot.slane %v289_v44, 1  ;;  %v4713_v54 = vld [vmem:[%s6280_s1 + $0x100] sm:$0xff]   ;;  %v5102_v61 = vpack.c.bf16 %v195_v58, %v194_v57  ;;  %v197_v62 = vld [vmem:[%s5063_s18 + $0x48] sm:$0xff]  ;;  %v198_v63 = vld [vmem:[%s5063_s18 + $0x50] sm:$0xff]  ;;  %p4820_p5 = pnand %p4819_p3, %p4813_p0 }
  0x25   : > { %3733 = vmatpush3.bf16.msra.mxu0 %v4694_v14  ;;  %v294_v45 = vshll.u32 %v5074_v36, 16  ;;  %v299_v46 = vshrl.u32 %v5079_v40, 16  ;;  %v301_v47 = vshll.u32 %v5079_v40, 16  ;;  %v4715_v56 = vld [vmem:[%s6280_s1 + $0x180] sm:$0xff]   ;;  %v199_v2 = vld [vmem:[%s5063_s18 + $0x58] sm:$0x3]  ;;  %v5112_v3 = vpack.c.bf16 %v198_v63, %v197_v62 }
  0x26   : > { %3845 = vmatpush3.bf16.msra.mxu1 %v4695_v15  ;;  %3734 = vmatprep.subr.bf16.mxu0 %v4696_v16  ;;  %v308_v53 = vrot.slane %v306_v48, 1  ;;  %v292_v55 = vor.u32 %v291_v50, %v287_v43  ;;  %v196_v60 = vld [vmem:[%s5063_s18 + $0x40] sm:$0x3]  ;;  %v311_v5 = vshrl.u32 %v5102_v61, 16  ;;  %v4716_v6 = vld [vmem:[%s6280_s1 + $0x148] sm:$0xff]   ;;  %v313_v7 = vshll.u32 %v5102_v61, 16 }
  0x27   : > { %3846 = vmatprep.subr.bf16.mxu1 %v4697_v17  ;;  %v296_v51 = vrot.slane %v294_v45, 1  ;;  %v303_v52 = vrot.slane %v301_v47, 1  ;;  %v5109_v1 = vpack.c.bf16 %v196_v60, %v196_v60  ;;  %v5125_v9 = vpack.c.bf16 %v199_v2, %v199_v2  ;;  %v4717_v12 = vld [vmem:[%s6280_s1 + $0x108] sm:$0xff]   ;;  %v4721_v37 = vld [vmem:[%s6280_s1 + $0x110] sm:$0xff]   ;;  %v4724_v50 = vld [vmem:[%s6280_s1 + $0x158] sm:$0xff]  }
  0x28   : > { %v323_v10 = vshrl.u32 %v5112_v3, 16  ;;  %v325_v11 = vshll.u32 %v5112_v3, 16  ;;  %v315_v13 = vrot.slane %v313_v7, 1  ;;  %v4718_v16 = vld [vmem:[%s6280_s1 + $0x1c8] sm:$0xff]   ;;  %v4722_v39 = vld [vmem:[%s6280_s1 + $0x1d0] sm:$0xff]   ;;  %v4726_v57 = vld [vmem:[%s6280_s1 + $0x1d8] sm:$0xff]  }
  0x29   : > { %3735 = vmatpush3.bf16.msra.mxu0 %v4698_v18  ;;  %v304_v59 = vor.u32 %v303_v52, %v299_v46  ;;  %v5107_v0 = vsel %vm285_vm0, %v292_v55, %v296_v51  ;;  %v318_v8 = vshll.u32 %v5109_v1, 16  ;;  %v330_v15 = vshll.u32 %v5125_v9, 16  ;;  %v4719_v18 = vld [vmem:[%s6280_s1 + $0x188] sm:$0xff]   ;;  %v4723_v43 = vld [vmem:[%s6280_s1 + $0x190] sm:$0xff]   ;;  %v4725_v52 = vld [vmem:[%s6280_s1 + $0x118] sm:$0xff]  }
  0x2a   : > { %3847 = vmatpush3.bf16.msra.mxu1 %v4699_v19  ;;  %3736 = vmatprep.subr.bf16.mxu0 %v4700_v20  ;;  %v327_v17 = vrot.slane %v325_v11, 1  ;;  %v200_v19 = vld [vmem:[%s5063_s18 + $0x60] sm:$0xff]  ;;  %v316_v20 = vor.u32 %v315_v13, %v311_v5  ;;  %v205_v38 = vld [vmem:[%s5063_s18 + $0x88] sm:$0x3]  ;;  %v206_v48 = vld [vmem:[%s5063_s18 + $0x90] sm:$0xff] }
  0x2b   : > { %3848 = vmatprep.subr.bf16.mxu1 %v4701_v21  ;;  %795 = vmatprep.mubr.bf16.mxu0 %v5107_v0  ;;  %v5116_v4 = vsel %vm285_vm0, %v304_v59, %v308_v53  ;;  %v320_v14 = vrot.slane %v318_v8, 1  ;;  %v332_v21 = vrot.slane %v330_v15, 1  ;;  %v5179_v46 = vpack.c.bf16 %v205_v38, %v205_v38  ;;  %v208_v58 = vld [vmem:[%s5063_s18 + $0xa0] sm:$0x3]  ;;  %v4727_v59 = vld [vmem:[%s6280_s1 + $0x198] sm:$0xff]   ;;  %v209_v5 = vld [vmem:[%s5063_s18 + $0xa8] sm:$0xff] }
  0x2c   : > { %956 = vmatprep.mubr.bf16.mxu1 %v5116_v4  ;;  %v5208_v63 = vpack.c.bf16 %v208_v58, %v208_v58  ;;  %v4728_v7 = vld [vmem:[%s6280_s1 + $0x160] sm:$0xff]   ;;  %v4735_v38 = vld [vmem:[%s6280_s1 + $0x1a8] sm:$0xff]  }
  0x2d   : > { %3737 = vmatpush3.bf16.msra.mxu0 %v4702_v22  ;;  %v201_v22 = vld [vmem:[%s5063_s18 + $0x68] sm:$0xff]  ;;  %v354_v55 = vshll.u32 %v5179_v46, 16  ;;  %v4729_v8 = vld [vmem:[%s6280_s1 + $0x120] sm:$0xff]  }
  0x2e   : > { %3849 = vmatpush3.bf16.msra.mxu1 %v4703_v23  ;;  %3738 = vmatprep.subr.bf16.mxu0 %v4704_v24  ;;  %v202_v23 = vld [vmem:[%s5063_s18 + $0x70] sm:$0x3]  ;;  %v203_v24 = vld [vmem:[%s5063_s18 + $0x78] sm:$0xff]  ;;  %v366_v15 = vshll.u32 %v5208_v63, 16 }
  0x2f   : > { %3850 = vmatprep.subr.bf16.mxu1 %v4705_v25  ;;  %v328_v25 = vor.u32 %v327_v17, %v323_v10  ;;  %v356_v62 = vrot.slane %v354_v55, 1  ;;  %v4731_v17 = vld [vmem:[%s6280_s1 + $0x1a0] sm:$0xff]  }
  0x31   : > { %3739 = vmatpush3.bf16.msra.mxu0 %v4706_v26  ;;  %v5145_v26 = vpack.c.bf16 %v201_v22, %v200_v19  ;;  %v5160_v32 = vsel %vm285_vm0, %v328_v25, %v332_v21  ;;  %v212_v19 = vld [vmem:[%s5063_s18 + $0xc0] sm:$0xff]  ;;  %v368_v21 = vrot.slane %v366_v15, 1  ;;  %v4733_v25 = vld [vmem:[%s6280_s1 + $0x128] sm:$0xff]   ;;  %v4743_v15 = vld [vmem:[%s6280_s1 + $0x1b8] sm:$0xff]  }
  0x32   : > { %3851 = vmatpush3.bf16.msra.mxu1 %v4707_v27  ;;  %3740 = vmatprep.subr.bf16.mxu0 %v4708_v28  ;;  %v5147_v27 = vpack.c.bf16 %v202_v23, %v202_v23  ;;  %v204_v28 = vld [vmem:[%s5063_s18 + $0x80] sm:$0xff]  ;;  %v4732_v23 = vld [vmem:[%s6280_s1 + $0x168] sm:$0xff]  }
  0x33   : > { %3852 = vmatprep.subr.bf16.mxu1 %v4709_v29  ;;  %v5151_v29 = vsel %vm285_vm0, %v316_v20, %v320_v14  ;;  %v335_v33 = vshrl.u32 %v5145_v26, 16  ;;  %v337_v34 = vshll.u32 %v5145_v26, 16 }
  0x35   : > { %3741 = vmatpush3.bf16.msra.mxu0 %v4710_v30  ;;  %v5153_v30 = vpack.c.bf16 %v204_v28, %v203_v24  ;;  %v213_v24 = vld [vmem:[%s5063_s18 + $0xc8] sm:$0xff] }
  0x36   : > { %3853 = vmatpush3.bf16.msra.mxu1 %v4711_v31  ;;  %3950 = vmatprep.subr.bf16.mxu0 %v4712_v42  ;;  %v4720_v31 = vld [vmem:[%s6280_s1 + $0x150] sm:$0xff]   ;;  %v339_v42 = vrot.slane %v337_v34, 1  ;;  %v4734_v28 = vld [vmem:[%s6280_s1 + $0x1e8] sm:$0xff]  }
  0x37   : > { %4062 = vmatprep.subr.bf16.mxu1 %v4714_v49  ;;  %v349_v47 = vshll.u32 %v5153_v30, 16  ;;  %v207_v49 = vld [vmem:[%s5063_s18 + $0x98] sm:$0xff]  ;;  %v347_v51 = vshrl.u32 %v5153_v30, 16 }
  0x38   : > { %796 = vmatmul.mubr.bf16.vlgmr.msra.gmra.mrb[0].mxu0 %v242_v35  ;;  %v342_v35 = vshll.u32 %v5147_v27, 16  ;;  %v340_v44 = vor.u32 %v339_v42, %v335_v33  ;;  %v215_v42 = vld [vmem:[%s5063_s18 + $0xd8] sm:$0xff] }
  0x39   : > { %957 = vmatmul.mubr.bf16.vlgmr.msra.gmra.mrb[0].mxu1 %v5079_v40  ;;  %3951 = vmatpush3.bf16.msra.mxu0 %v4713_v54  ;;  %v351_v54 = vrot.slane %v349_v47, 1 }
  0x3a   : > { %4063 = vmatpush3.bf16.msra.mxu1 %v4715_v56  ;;  %803 = vmatprep.mubr.bf16.mxu0 %v5116_v4  ;;  %v344_v45 = vrot.slane %v342_v35, 1  ;;  %v5195_v56 = vpack.c.bf16 %v207_v49, %v206_v48  ;;  %v216_v49 = vld [vmem:[%s5063_s18 + $0xe0] sm:$0xff] }
  0x3b   : > { %3952 = vmatprep.subr.bf16.mxu0 %v4716_v6  ;;  %4064 = vmatprep.subr.bf16.mxu1 %v4718_v16  ;;  %v352_v60 = vor.u32 %v351_v54, %v347_v51  ;;  %v210_v6 = vld [vmem:[%s5063_s18 + $0xb0] sm:$0xff]  ;;  %v211_v16 = vld [vmem:[%s5063_s18 + $0xb8] sm:$0x3] }
  0x3c   : > { %964 = vmatprep.mubr.bf16.mxu1 %v5151_v29  ;;  %v5192_v53 = vsel %vm285_vm0, %v340_v44, %v344_v45  ;;  %v361_v2 = vshll.u32 %v5195_v56, 16  ;;  %v359_v10 = vshrl.u32 %v5195_v56, 16  ;;  %v5220_v11 = vpack.c.bf16 %v210_v6, %v209_v5  ;;  %v4738_v51 = vld [vmem:[%s6280_s1 + $0x1f0] sm:$0xff]   ;;  %v4741_v5 = vld [vmem:[%s6280_s1 + $0x138] sm:$0xff]  }
  0x3d   : > { %3953 = vmatpush3.bf16.msra.mxu0 %v4717_v12  ;;  %v4730_v12 = vld [vmem:[%s6280_s1 + $0x1e0] sm:$0xff]   ;;  %v5226_v13 = vsel %vm285_vm0, %v352_v60, %v356_v62  ;;  %v5239_v22 = vpack.c.bf16 %v211_v16, %v211_v16  ;;  %v4739_v54 = vld [vmem:[%s6280_s1 + $0x1b0] sm:$0xff]   ;;  %v217_v60 = vld [vmem:[%s5063_s18 + $0xe8] sm:$0x3] }
  0x3e   : > { %4065 = vmatpush3.bf16.msra.mxu1 %v4719_v18  ;;  %3954 = vmatprep.subr.bf16.mxu0 %v4720_v31  ;;  %v363_v14 = vrot.slane %v361_v2, 1  ;;  %v373_v18 = vshll.u32 %v5220_v11, 16  ;;  %v371_v31 = vshrl.u32 %v5220_v11, 16  ;;  %v4740_v62 = vld [vmem:[%s6280_s1 + $0x178] sm:$0xff]   ;;  %v5298_v2 = vpack.c.bf16 %v217_v60, %v217_v60  ;;  %v226_v60 = vld [vmem:[%s5063_s18 + $0x130] sm:$0x3] }
  0x3f   : > { %4066 = vmatprep.subr.bf16.mxu1 %v4722_v39  ;;  %v378_v35 = vshll.u32 %v5239_v22, 16  ;;  %v214_v39 = vld [vmem:[%s5063_s18 + $0xd0] sm:$0x3] }
  0x40   : > { %804 = vmatmul.mubr.bf16.gmra.mrb[4].mxu0 %v5079_v40  ;;  %v364_v20 = vor.u32 %v363_v14, %v359_v10  ;;  %v375_v34 = vrot.slane %v373_v18, 1  ;;  %v5270_v47 = vpack.c.bf16 %v214_v39, %v214_v39  ;;  %v218_v10 = vld [vmem:[%s5063_s18 + $0xf0] sm:$0xff]  ;;  %v219_v14 = vld [vmem:[%s5063_s18 + $0xf8] sm:$0xff] }
  0x41   : > { %965 = vmatmul.mubr.bf16.gmra.mrb[4].mxu1 %v5102_v61  ;;  %811 = vmatprep.mubr.bf16.mxu0 %v5151_v29  ;;  %v380_v45 = vrot.slane %v378_v35, 1  ;;  %v221_v35 = vld [vmem:[%s5063_s18 + $0x108] sm:$0xff] }
  0x42   : > { %972 = vmatprep.mubr.bf16.mxu1 %v5160_v32  ;;  %3955 = vmatpush3.bf16.msra.mxu0 %v4721_v37  ;;  %v5253_v33 = vsel %vm285_vm0, %v364_v20, %v368_v21  ;;  %v5256_v37 = vpack.c.bf16 %v213_v24, %v212_v19  ;;  %v376_v44 = vor.u32 %v375_v34, %v371_v31  ;;  %v4744_v21 = vld [vmem:[%s6280_s1 + $0x240] sm:$0xff]  }
  0x43   : > { %4067 = vmatpush3.bf16.msra.mxu1 %v4723_v43  ;;  %3956 = vmatprep.subr.bf16.mxu0 %v4724_v50  ;;  %v4736_v43 = vld [vmem:[%s6280_s1 + $0x170] sm:$0xff]   ;;  %v5317_v20 = vpack.c.bf16 %v219_v14, %v218_v10  ;;  %v4746_v24 = vld [vmem:[%s6280_s1 + $0x2c0] sm:$0xff]   ;;  %v229_v14 = vld [vmem:[%s5063_s18 + $0x148] sm:$0x3] }
  0x44   : > { %4068 = vmatprep.subr.bf16.mxu1 %v4726_v57  ;;  %v385_v48 = vshll.u32 %v5256_v37, 16  ;;  %v4737_v50 = vld [vmem:[%s6280_s1 + $0x130] sm:$0xff]   ;;  %v5286_v55 = vsel %vm285_vm0, %v376_v44, %v380_v45  ;;  %v383_v57 = vshrl.u32 %v5256_v37, 16  ;;  %v228_v10 = vld [vmem:[%s5063_s18 + $0x140] sm:$0xff] }
  0x45   : > { %v409_v34 = vshll.u32 %v5317_v20, 16  ;;  %v407_v39 = vshrl.u32 %v5317_v20, 16 }
  0x46   : > { %3957 = vmatpush3.bf16.msra.mxu0 %v4725_v52  ;;  %v5280_v52 = vpack.c.bf16 %v216_v49, %v215_v42  ;;  %v387_v58 = vrot.slane %v385_v48, 1  ;;  %v223_v48 = vld [vmem:[%s5063_s18 + $0x118] sm:$0x3] }
  0x47   : > { %4069 = vmatpush3.bf16.msra.mxu1 %v4727_v59  ;;  %3958 = vmatprep.subr.bf16.mxu0 %v4728_v7  ;;  %v390_v59 = vshll.u32 %v5270_v47, 16 }
  0x48   : > { %812 = vmatmul.mubr.bf16.gmra.mrb[8].mxu0 %v5102_v61  ;;  %4070 = vmatprep.subr.bf16.mxu1 %v4730_v12  ;;  %v388_v6 = vor.u32 %v387_v58, %v383_v57  ;;  %v4742_v12 = vld [vmem:[%s6280_s1 + $0x1f8] sm:$0xff]   ;;  %v395_v16 = vshrl.u32 %v5280_v52, 16  ;;  %v224_v57 = vld [vmem:[%s5063_s18 + $0x120] sm:$0xff]  ;;  %v225_v58 = vld [vmem:[%s5063_s18 + $0x128] sm:$0xff] }
  0x49   : > { %973 = vmatmul.mubr.bf16.gmra.mrb[8].mxu1 %v5112_v3  ;;  %819 = vmatprep.mubr.bf16.mxu0 %v5160_v32  ;;  %v392_v7 = vrot.slane %v390_v59, 1 }
  0x4a   : > { %980 = vmatprep.mubr.bf16.mxu1 %v5192_v53  ;;  %3959 = vmatpush3.bf16.msra.mxu0 %v4729_v8  ;;  %v397_v8 = vshll.u32 %v5280_v52, 16 }
  0x4b   : > { %4071 = vmatpush3.bf16.msra.mxu1 %v4731_v17  ;;  %3960 = vmatprep.subr.bf16.mxu0 %v4732_v23  ;;  %v402_v17 = vshll.u32 %v5298_v2, 16  ;;  %v5315_v18 = vsel %vm285_vm0, %v388_v6, %v392_v7  ;;  %v220_v23 = vld [vmem:[%s5063_s18 + $0x100] sm:$0x3]  ;;  %v5358_v7 = vpack.c.bf16 %v225_v58, %v224_v57  ;;  %v234_v57 = vld [vmem:[%s5063_s18 + $0x170] sm:$0xff] }
  0x4c   : > { %4072 = vmatprep.subr.bf16.mxu1 %v4734_v28  ;;  %v399_v19 = vrot.slane %v397_v8, 1  ;;  %v5330_v31 = vpack.c.bf16 %v220_v23, %v220_v23  ;;  %v227_v8 = vld [vmem:[%s5063_s18 + $0x138] sm:$0xff]  ;;  %v5373_v23 = vpack.c.bf16 %v229_v14, %v229_v14 }
  0x4d   : > { %v235_v14 = vld [vmem:[%s5063_s18 + $0x178] sm:$0x3] }
  0x4e   : > { %3961 = vmatpush3.bf16.msra.mxu0 %v4733_v25  ;;  %v404_v25 = vrot.slane %v402_v17, 1  ;;  %v400_v28 = vor.u32 %v399_v19, %v395_v16  ;;  %v414_v44 = vshll.u32 %v5330_v31, 16  ;;  %v433_v17 = vshll.u32 %v5358_v7, 16 }
  0x4f   : > { %4073 = vmatpush3.bf16.msra.mxu1 %v4735_v38  ;;  %3962 = vmatprep.subr.bf16.mxu0 %v4736_v43  ;;  %v222_v38 = vld [vmem:[%s5063_s18 + $0x110] sm:$0xff]  ;;  %v411_v43 = vrot.slane %v409_v34, 1  ;;  %v5370_v19 = vpack.c.bf16 %v228_v10, %v227_v8 }
  0x50   : > { %820 = vmatmul.mubr.bf16.gmra.mrb[12].mxu0 %v5112_v3  ;;  %4074 = vmatprep.subr.bf16.mxu1 %v4738_v51  ;;  %v5337_v42 = vsel %vm285_vm0, %v400_v28, %v404_v25  ;;  %v5340_v45 = vpack.c.bf16 %v222_v38, %v221_v35  ;;  %v5347_v51 = vpack.c.bf16 %v223_v48, %v223_v48  ;;  %v435_v28 = vrot.slane %v433_v17, 1 }
  0x51   : > { %981 = vmatmul.mubr.bf16.gmra.mrb[12].mxu1 %v5145_v26  ;;  %827 = vmatprep.mubr.bf16.mxu0 %v5192_v53  ;;  %v412_v49 = vor.u32 %v411_v43, %v407_v39  ;;  %6297 = vst [vmem:[#allocation5_spill] sm:$0xff] %v5370_v19  ;;  %v445_v34 = vshll.u32 %v5370_v19, 16  ;;  %v443_v38 = vshrl.u32 %v5370_v19, 16  ;;  %v450_v39 = vshll.u32 %v5373_v23, 16  ;;  %v230_v43 = vld [vmem:[%s5063_s18 + $0x150] sm:$0xff] }
  0x52   : > { %988 = vmatprep.mubr.bf16.mxu1 %v5226_v13  ;;  %3963 = vmatpush3.bf16.msra.mxu0 %v4737_v50  ;;  %v416_v50 = vrot.slane %v414_v44, 1  ;;  %v419_v59 = vshrl.u32 %v5340_v45, 16  ;;  %v426_v6 = vshll.u32 %v5347_v51, 16 }
  0x53   : > { %4075 = vmatpush3.bf16.msra.mxu1 %v4739_v54  ;;  %3964 = vmatprep.subr.bf16.mxu0 %v4740_v62  ;;  %v421_v54 = vshll.u32 %v5340_v45, 16  ;;  %v447_v48 = vrot.slane %v445_v34, 1 }
  0x54   : > { %4076 = vmatprep.subr.bf16.mxu1 %v4742_v12  ;;  %v5355_v62 = vsel %vm285_vm0, %v412_v49, %v416_v50  ;;  %v5365_v12 = vpack.c.bf16 %v226_v60, %v226_v60  ;;  %v428_v16 = vrot.slane %v426_v6, 1  ;;  %v231_v49 = vld [vmem:[%s5063_s18 + $0x158] sm:$0xff]  ;;  %v232_v50 = vld [vmem:[%s5063_s18 + $0x160] sm:$0x3]  ;;  %v452_v6 = vrot.slane %v450_v39, 1 }
  0x55   : > { %v5399_v60 = vpack.c.bf16 %v232_v50, %v232_v50 }
  0x56   : > { %3965 = vmatpush3.bf16.msra.mxu0 %v4741_v5  ;;  %v423_v5 = vrot.slane %v421_v54, 1  ;;  %v233_v54 = vld [vmem:[%s5063_s18 + $0x168] sm:$0xff] }
  0x57   : > { %4077 = vmatpush3.bf16.msra.mxu1 %v4743_v15  ;;  %4174 = vmatprep.subr.bf16.mxu0 %v4744_v21  ;;  %v438_v21 = vshll.u32 %v5365_v12, 16  ;;  %v5403_v10 = vpack.c.bf16 %v234_v57, %v233_v54 }
  0x58   : > { %828 = vmatmul.mubr.bf16.gmra.mrb[16].mxu0 %v5145_v26  ;;  %4286 = vmatprep.subr.bf16.mxu1 %v4746_v24  ;;  %v424_v15 = vor.u32 %v423_v5, %v419_v59  ;;  %v431_v24 = vshrl.u32 %v5358_v7, 16  ;;  %v5394_v59 = vpack.c.bf16 %v231_v49, %v230_v43  ;;  %v448_v5 = vor.u32 %v447_v48, %v443_v38  ;;  %v237_v38 = vld [vmem:[%s5063_s18 + $0x188] sm:$0xff]  ;;  %v238_v49 = vld [vmem:[%s5063_s18 + $0x190] sm:$0x3] }
  0x59   : > { %989 = vmatmul.mubr.bf16.gmra.mrb[16].mxu1 %v5153_v30  ;;  %835 = vmatprep.mubr.bf16.mxu0 %v5226_v13  ;;  %v440_v35 = vrot.slane %v438_v21, 1  ;;  %v467_v34 = vshrl.u32 %v5403_v10, 16 }
  0x5a   : > { %996 = vmatprep.mubr.bf16.mxu1 %v5253_v33  ;;  %v5377_v25 = vsel %vm285_vm0, %v424_v15, %v428_v16  ;;  %v436_v44 = vor.u32 %v435_v28, %v431_v24  ;;  %v457_v8 = vshll.u32 %v5394_v59, 16  ;;  %v455_v15 = vshrl.u32 %v5394_v59, 16 }
  0x5b   : > { %v462_v16 = vshll.u32 %v5399_v60, 16  ;;  %v5409_v17 = vsel %vm285_vm0, %v448_v5, %v452_v6  ;;  %v5411_v24 = vpack.c.bf16 %v235_v14, %v235_v14  ;;  %v469_v28 = vshll.u32 %v5403_v10, 16 }
  0x5c   : > { %v5392_v58 = vsel %vm285_vm0, %v436_v44, %v440_v35  ;;  %v459_v21 = vrot.slane %v457_v8, 1  ;;  %v236_v35 = vld [vmem:[%s5063_s18 + $0x180] sm:$0xff]  ;;  %v5433_v5 = vpack.c.bf16 %v238_v49, %v238_v49 }
  0x5d   : > { %v464_v43 = vrot.slane %v462_v16, 1  ;;  %v471_v44 = vrot.slane %v469_v28, 1  ;;  %v474_v48 = vshll.u32 %v5411_v24, 16  ;;  %v5423_v50 = vpack.c.bf16 %v237_v38, %v236_v35 }
  0x5e   : > { %v460_v39 = vor.u32 %v459_v21, %v455_v15  ;;  %v502_v16 = vshll.u32 %v5433_v5, 16  ;;  %v1154_v28 = vshll.u32 %v5107_v0, 16  ;;  %v1117_v35 = vshrl.u32 %v5074_v36, 16 }
  0x5f   : > { %v497_v57 = vshll.u32 %v5423_v50, 16  ;;  %v472_v6 = vor.u32 %v471_v44, %v467_v34  ;;  %v476_v8 = vrot.slane %v474_v48, 1  ;;  %v495_v14 = vshrl.u32 %v5423_v50, 16 }
  0x60   : > { %836 = vmatmul.mubr.bf16.gmra.mrb[20].mxu0 %v5153_v30  ;;  %v5426_v54 = vsel %vm285_vm0, %v460_v39, %v464_v43  ;;  %v504_v38 = vrot.slane %v502_v16, 1  ;;  %v1119_v39 = vshrl.u32 %v5081_v41, 16  ;;  %v1166_v43 = vshll.u32 %v5116_v4, 16 }
  0x61   : > { %997 = vmatmul.mubr.bf16.gmra.mrb[20].mxu1 %v5195_v56  ;;  %843 = vmatprep.mubr.bf16.mxu0 %v5253_v33  ;;  %v499_v15 = vrot.slane %v497_v57, 1  ;;  %v5438_v21 = vsel %vm285_vm0, %v472_v6, %v476_v8  ;;  %v1152_v44 = vshrl.u32 %v5107_v0, 16  ;;  %v1156_v48 = vrot.slane %v1154_v28, 1 }
  0x62   : > { %1004 = vmatprep.mubr.bf16.mxu1 %v5286_v55  ;;  %v1159_v49 = vshll.u32 %v1117_v35, 16  ;;  %v1164_v6 = vshrl.u32 %v5116_v4, 16  ;;  %v1168_v8 = vrot.slane %v1166_v43, 1  ;;  %v1121_v16 = vshrl.u32 %v5109_v1, 16 }
  0x63   : > { %v500_v34 = vor.u32 %v499_v15, %v495_v14  ;;  %v1157_v36 = vor.u32 %v1156_v48, %v1152_v44  ;;  %v1178_v28 = vshll.u32 %v5151_v29, 16  ;;  %v1123_v1 = vshrl.u32 %v5125_v9, 16  ;;  %v4748_v9 = vld [vmem:[%s6280_s1 + $0x248] sm:$0xff]  }
  0x64   : > { %v1161_v41 = vrot.slane %v1159_v49, 1  ;;  %v1169_v14 = vor.u32 %v1168_v8, %v1164_v6  ;;  %v1183_v43 = vshll.u32 %v1121_v16, 16  ;;  %v4745_v49 = vld [vmem:[%s6280_s1 + $0x200] sm:$0xff]   ;;  %v1188_v8 = vshrl.u32 %v5160_v32, 16  ;;  %v4749_v16 = vld [vmem:[%s6280_s1 + $0x208] sm:$0xff]  }
  0x65   : > { %v5450_v57 = vsel %vm285_vm0, %v500_v34, %v504_v38  ;;  %v1176_v38 = vshrl.u32 %v5151_v29, 16  ;;  %v4747_v6 = vld [vmem:[%s6280_s1 + $0x280] sm:$0xff]  }
  0x66   : > { %v1162_v35 = vsel %vm285_vm0, %v1157_v36, %v1161_v41  ;;  %v1185_v48 = vrot.slane %v1183_v43, 1  ;;  %v1195_v41 = vshll.u32 %v1123_v1, 16  ;;  %v1202_v43 = vshll.u32 %v5192_v53, 16  ;;  %v4754_v1 = vld [vmem:[%s6280_s1 + $0x2d0] sm:$0xff]  }
  0x68   : > { %844 = vmatmul.mubr.bf16.gmra.mrb[24].mxu0 %v5195_v56 }
  0x69   : > { %1005 = vmatmul.mubr.bf16.gmra.mrb[24].mxu1 %v5220_v11  ;;  %851 = vmatprep.mubr.bf16.mxu0 %v5286_v55 }
  0x6a   : > { %1012 = vmatprep.mubr.bf16.mxu1 %v5315_v18 }
  0x70   : > { %852 = vmatmul.mubr.bf16.gmra.mrb[28].mxu0 %v5220_v11 }
  0x71   : > { %1013 = vmatmul.mubr.bf16.gmra.mrb[28].mxu1 %v5256_v37  ;;  %859 = vmatprep.mubr.bf16.mxu0 %v5315_v18 }
  0x72   : > { %1020 = vmatprep.mubr.bf16.mxu1 %v5337_v42 }
  0x78   : > { %860 = vmatmul.mubr.bf16.gmra.mrb[32].mxu0 %v5256_v37 }
  0x79   : > { %1021 = vmatmul.mubr.bf16.gmra.mrb[32].mxu1 %v5280_v52  ;;  %867 = vmatprep.mubr.bf16.mxu0 %v5337_v42 }
  0x7a   : > { %1028 = vmatprep.mubr.bf16.mxu1 %v5355_v62 }
  0x80   : > { %868 = vmatmul.mubr.bf16.gmra.mrb[36].mxu0 %v5280_v52 }
  0x81   : > { %1029 = vmatmul.mubr.bf16.gmra.mrb[36].mxu1 %v5317_v20  ;;  %875 = vmatprep.mubr.bf16.mxu0 %v5355_v62 }
  0x82   : > { %1036 = vmatprep.mubr.bf16.mxu1 %v5377_v25 }
  0x88   : > { %876 = vmatmul.mubr.bf16.gmra.mrb[40].mxu0 %v5317_v20 }
  0x89   : > { %1037 = vmatmul.mubr.bf16.gmra.mrb[40].mxu1 %v5340_v45  ;;  %883 = vmatprep.mubr.bf16.mxu0 %v5377_v25 }
  0x8a   : > { %1044 = vmatprep.mubr.bf16.mxu1 %v5392_v58 }
  0x90   : > { %884 = vmatmul.mubr.bf16.gmra.mrb[44].mxu0 %v5340_v45 }
  0x91   : > { %1045 = vmatmul.mubr.bf16.gmra.mrb[44].mxu1 %v5358_v7  ;;  %891 = vmatprep.mubr.bf16.mxu0 %v5392_v58 }
  0x92   : > { %1052 = vmatprep.mubr.bf16.mxu1 %v5409_v17 }
  0x98   : > { %892 = vmatmul.mubr.bf16.gmra.mrb[48].mxu0 %v5358_v7 }
  0x99   : > { %1053 = vmatmul.mubr.bf16.gmra.mrb[48].mxu1 %v5370_v19  ;;  %899 = vmatprep.mubr.bf16.mxu0 %v5409_v17 }
  0x9a   : > { %1060 = vmatprep.mubr.bf16.mxu1 %v5426_v54 }
  0xa0   : > { %900 = vmatmul.mubr.bf16.gmra.mrb[52].mxu0 %v5370_v19  ;;  %v1171_v19 = vshll.u32 %v1119_v39, 16  ;;  %v1180_v39 = vrot.slane %v1178_v28, 1  ;;  %v4752_v28 = vld [vmem:[%s6280_s1 + $0x250] sm:$0xff]  }
  0xa1   : > { %1061 = vmatmul.mubr.bf16.gmra.mrb[52].mxu1 %v5394_v59  ;;  %907 = vmatprep.mubr.bf16.mxu0 %v5426_v54 }
  0xa2   : > { %1068 = vmatprep.mubr.bf16.mxu1 %v5438_v21  ;;  %v1173_v15 = vrot.slane %v1171_v19, 1  ;;  %v1190_v19 = vshll.u32 %v5160_v32, 16  ;;  %v1181_v44 = vor.u32 %v1180_v39, %v1176_v38  ;;  %v1197_v38 = vrot.slane %v1195_v41, 1  ;;  %v4757_v41 = vld [vmem:[%s6280_s1 + $0x218] sm:$0xff]  }
  0xa3   : > { %v1125_v39 = vshrl.u32 %v5147_v27, 16  ;;  %v1204_v27 = vrot.slane %v1202_v43, 1  ;;  %v1212_v43 = vshrl.u32 %v5226_v13, 16 }
  0xa4   : > { %v5461_v34 = vsel %vm285_vm0, %v1169_v14, %v1173_v15  ;;  %v1192_v36 = vrot.slane %v1190_v19, 1  ;;  %v5481_v14 = vsel %vm285_vm0, %v1181_v44, %v1185_v48  ;;  %v4750_v15 = vld [vmem:[%s6280_s1 + $0x2c8] sm:$0xff]   ;;  %v4753_v19 = vld [vmem:[%s6280_s1 + $0x210] sm:$0xff]   ;;  %v1200_v48 = vshrl.u32 %v5192_v53, 16 }
  0xa8   : > { %908 = vmatmul.mubr.bf16.gmra.mrb[56].mxu0 %v5394_v59 }
  0xa9   : > { %1069 = vmatmul.mubr.bf16.gmra.mrb[56].mxu1 %v5403_v10  ;;  %915 = vmatprep.mubr.bf16.mxu0 %v5438_v21 }
  0xaa   : > { %1076 = vmatprep.mubr.bf16.mxu1 %v5450_v57 }
  0xb0   : > { %916 = vmatmul.mubr.bf16.gmra.mrb[60].mxu0 %v5403_v10 }
  0xb1   : > { %1077 = vmatmul.mubr.bf16.gmra.mrb[60].mxu1 %v5423_v50  ;;  %1661 = vmatprep.mubr.bf16.mxu0 %v1162_v35  ;;  %v1193_v35 = vor.u32 %v1192_v36, %v1188_v8  ;;  %v4756_v8 = vld [vmem:[%s6280_s1 + $0x258] sm:$0xff]  }
  0xb2   : > { %1822 = vmatprep.mubr.bf16.mxu1 %v5461_v34  ;;  %v4758_v36 = vld [vmem:[%s6280_s1 + $0x2d8] sm:$0xff]  }
  0xb3   : > { %v5507_v44 = vsel %vm285_vm0, %v1193_v35, %v1197_v38  ;;  %v4760_v35 = vld [vmem:[%s6280_s1 + $0x260] sm:$0xff]  }
  0xb4   : > { %v4762_v38 = vld [vmem:[%s6280_s1 + $0x2e0] sm:$0xff]  }
  0xb8   : > { %1662 = vmatmul.mubr.bf16.vlgmr.msra.gmra.mrb[64].mxu0 %v5107_v0  ;;  %v4751_v0 = vld [vmem:[%s6280_s1 + $0x288] sm:$0xff]  }
  0xb9   : > { %1823 = vmatmul.mubr.bf16.vlgmr.msra.gmra.mrb[64].mxu1 %v5116_v4  ;;  %4175 = vmatpush3.bf16.msra.mxu0 %v4745_v49  ;;  %v1207_v49 = vshll.u32 %v1125_v39, 16 }
  0xba   : > { %4287 = vmatpush3.bf16.msra.mxu1 %v4747_v6  ;;  %1669 = vmatprep.mubr.bf16.mxu0 %v5461_v34  ;;  %v4755_v6 = vld [vmem:[%s6280_s1 + $0x290] sm:$0xff]  }
  0xbb   : > { %1830 = vmatprep.mubr.bf16.mxu1 %v5481_v14  ;;  %4176 = vmatprep.subr.bf16.mxu0 %v4748_v9  ;;  %v1205_v9 = vor.u32 %v1204_v27, %v1200_v48  ;;  %v4763_v48 = vld [vmem:[%s6280_s1 + $0x2a0] sm:$0xff]   ;;  %v4764_v27 = vld [vmem:[%s6280_s1 + $0x268] sm:$0xff]  }
  0xbc   : > { %4288 = vmatprep.subr.bf16.mxu1 %v4750_v15  ;;  %v1209_v15 = vrot.slane %v1207_v49, 1  ;;  %v4766_v49 = vld [vmem:[%s6280_s1 + $0x2e8] sm:$0xff]  }
  0xbd   : > { %4177 = vmatpush3.bf16.msra.mxu0 %v4749_v16  ;;  %v1127_v16 = vshrl.u32 %v5179_v46, 16  ;;  %v4761_v46 = vld [vmem:[%s6280_s1 + $0x220] sm:$0xff]  }
  0xbe   : > { %4289 = vmatpush3.bf16.msra.mxu1 %v4751_v0  ;;  %4178 = vmatprep.subr.bf16.mxu0 %v4752_v28  ;;  %v1214_v0 = vshll.u32 %v5226_v13, 16  ;;  %v4759_v28 = vld [vmem:[%s6280_s1 + $0x298] sm:$0xff]   ;;  %v5541_v39 = vsel %vm285_vm0, %v1205_v9, %v1209_v15  ;;  %v1226_v9 = vshll.u32 %v5253_v33, 16  ;;  %v4767_v15 = vld [vmem:[%s6280_s1 + $0x2a8] sm:$0xff]  }
  0xbf   : > { %4290 = vmatprep.subr.bf16.mxu1 %v4754_v1 }
  0xc0   : > { %1670 = vmatmul.mubr.bf16.gmra.mrb[68].mxu0 %v5116_v4  ;;  %v1216_v1 = vrot.slane %v1214_v0, 1  ;;  %v4770_v0 = vld [vmem:[%s6280_s1 + $0x2f0] sm:$0xff]  }
  0xc1   : > { %1831 = vmatmul.mubr.bf16.gmra.mrb[68].mxu1 %v5151_v29  ;;  %1677 = vmatprep.mubr.bf16.mxu0 %v5481_v14 }
  0xc2   : > { %1838 = vmatprep.mubr.bf16.mxu1 %v5507_v44  ;;  %4179 = vmatpush3.bf16.msra.mxu0 %v4753_v19  ;;  %v1219_v19 = vshll.u32 %v1127_v16, 16  ;;  %v4768_v16 = vld [vmem:[%s6280_s1 + $0x270] sm:$0xff]  }
  0xc3   : > { %4291 = vmatpush3.bf16.msra.mxu1 %v4755_v6  ;;  %4180 = vmatprep.subr.bf16.mxu0 %v4756_v8  ;;  %v4765_v6 = vld [vmem:[%s6280_s1 + $0x228] sm:$0xff]   ;;  %v1217_v8 = vor.u32 %v1216_v1, %v1212_v43  ;;  %v4771_v43 = vld [vmem:[%s6280_s1 + $0x2b0] sm:$0xff]   ;;  %v4772_v1 = vld [vmem:[%s6280_s1 + $0x278] sm:$0xff]  }
  0xc4   : > { %4292 = vmatprep.subr.bf16.mxu1 %v4758_v36  ;;  %v1221_v36 = vrot.slane %v1219_v19, 1  ;;  %v4774_v19 = vld [vmem:[%s6280_s1 + $0x2f8] sm:$0xff]  }
  0xc6   : > { %4181 = vmatpush3.bf16.msra.mxu0 %v4757_v41  ;;  %v1129_v41 = vshrl.u32 %v5208_v63, 16  ;;  %v4769_v63 = vld [vmem:[%s6280_s1 + $0x230] sm:$0xff]  }
  0xc7   : > { %4293 = vmatpush3.bf16.msra.mxu1 %v4759_v28  ;;  %4182 = vmatprep.subr.bf16.mxu0 %v4760_v35  ;;  %v5575_v28 = vsel %vm285_vm0, %v1217_v8, %v1221_v36  ;;  %v1224_v35 = vshrl.u32 %v5253_v33, 16  ;;  %v1238_v8 = vshll.u32 %v5286_v55, 16  ;;  %v4775_v36 = vld [vmem:[%s6280_s1 + $0x2b8] sm:$0xff]  }
  0xc8   : > { %1678 = vmatmul.mubr.bf16.gmra.mrb[72].mxu0 %v5151_v29  ;;  %4294 = vmatprep.subr.bf16.mxu1 %v4762_v38  ;;  %v1228_v38 = vrot.slane %v1226_v9, 1  ;;  %v4778_v9 = vld [vmem:[%s6280_s1 + $0x3c0] sm:$0xff]  }
  0xc9   : > { %1839 = vmatmul.mubr.bf16.gmra.mrb[72].mxu1 %v5160_v32  ;;  %1685 = vmatprep.mubr.bf16.mxu0 %v5507_v44 }
  0xca   : > { %1846 = vmatprep.mubr.bf16.mxu1 %v5541_v39  ;;  %4183 = vmatpush3.bf16.msra.mxu0 %v4761_v46  ;;  %v1231_v46 = vshll.u32 %v1129_v41, 16  ;;  %v4776_v41 = vld [vmem:[%s6280_s1 + $0x340] sm:$0xff]  }
  0xcb   : > { %4295 = vmatpush3.bf16.msra.mxu1 %v4763_v48  ;;  %4184 = vmatprep.subr.bf16.mxu0 %v4764_v27  ;;  %v4773_v48 = vld [vmem:[%s6280_s1 + $0x238] sm:$0xff]   ;;  %v1229_v27 = vor.u32 %v1228_v38, %v1224_v35  ;;  %v1133_v38 = vshrl.u32 %v5270_v47, 16  ;;  %v1135_v47 = vshrl.u32 %v5298_v2, 16  ;;  %v1137_v2 = vshrl.u32 %v5330_v31, 16 }
  0xcc   : > { %4296 = vmatprep.subr.bf16.mxu1 %v4766_v49  ;;  %v1233_v49 = vrot.slane %v1231_v46, 1  ;;  %v1250_v46 = vshll.u32 %v5315_v18, 16  ;;  %v1139_v31 = vshrl.u32 %v5347_v51, 16  ;;  %v1141_v51 = vshrl.u32 %v5365_v12, 16 }
  0xcd   : > { %v1143_v12 = vshrl.u32 %v5373_v23, 16 }
  0xce   : > { %4185 = vmatpush3.bf16.msra.mxu0 %v4765_v6  ;;  %v1131_v6 = vshrl.u32 %v5239_v22, 16  ;;  %v5606_v22 = vsel %vm285_vm0, %v1229_v27, %v1233_v49 }
  0xcf   : > { %4297 = vmatpush3.bf16.msra.mxu1 %v4767_v15  ;;  %4186 = vmatprep.subr.bf16.mxu0 %v4768_v16  ;;  %v1236_v15 = vshrl.u32 %v5286_v55, 16  ;;  %v1240_v16 = vrot.slane %v1238_v8, 1 }
  0xd0   : > { %1686 = vmatmul.mubr.bf16.gmra.mrb[76].mxu0 %v5160_v32  ;;  %4298 = vmatprep.subr.bf16.mxu1 %v4770_v0  ;;  %v1243_v0 = vshll.u32 %v1131_v6, 16  ;;  %v1262_v6 = vshll.u32 %v5337_v42, 16 }
  0xd1   : > { %1847 = vmatmul.mubr.bf16.gmra.mrb[76].mxu1 %v5192_v53  ;;  %1693 = vmatprep.mubr.bf16.mxu0 %v5541_v39 }
  0xd2   : > { %1854 = vmatprep.mubr.bf16.mxu1 %v5575_v28  ;;  %4187 = vmatpush3.bf16.msra.mxu0 %v4769_v63  ;;  %v1241_v63 = vor.u32 %v1240_v16, %v1236_v15  ;;  %v1245_v35 = vrot.slane %v1243_v0, 1  ;;  %v1274_v0 = vshll.u32 %v5355_v62, 16 }
  0xd3   : > { %4299 = vmatpush3.bf16.msra.mxu1 %v4771_v43  ;;  %4188 = vmatprep.subr.bf16.mxu0 %v4772_v1  ;;  %v1248_v1 = vshrl.u32 %v5315_v18, 16 }
  0xd4   : > { %4300 = vmatprep.subr.bf16.mxu1 %v4774_v19  ;;  %v5616_v43 = vsel %vm285_vm0, %v1241_v63, %v1245_v35  ;;  %v1252_v19 = vrot.slane %v1250_v46, 1  ;;  %v1272_v35 = vshrl.u32 %v5355_v62, 16  ;;  %v1279_v46 = vshll.u32 %v1137_v2, 16 }
  0xd6   : > { %4189 = vmatpush3.bf16.msra.mxu0 %v4773_v48  ;;  %v1255_v48 = vshll.u32 %v1133_v38, 16  ;;  %v1253_v27 = vor.u32 %v1252_v19, %v1248_v1  ;;  %v1276_v38 = vrot.slane %v1274_v0, 1  ;;  %v1281_v19 = vrot.slane %v1279_v46, 1 }
  0xd7   : > { %4301 = vmatpush3.bf16.msra.mxu1 %v4775_v36  ;;  %4398 = vmatprep.subr.bf16.mxu0 %v4776_v41  ;;  %v1260_v36 = vshrl.u32 %v5337_v42, 16  ;;  %v1264_v41 = vrot.slane %v1262_v6, 1  ;;  %v1291_v6 = vshll.u32 %v1139_v31, 16  ;;  %v1303_v0 = vshll.u32 %v1141_v51, 16  ;;  %v5679_v51 = vld [vmem:[%s6281_s2] ss:$0 sm:$0xff] }
  0xd8   : > { %1694 = vmatmul.mubr.bf16.gmra.mrb[80].mxu0 %v5192_v53  ;;  %4510 = vmatprep.subr.bf16.mxu1 %v4778_v9  ;;  %v1257_v49 = vrot.slane %v1255_v48, 1  ;;  %v1267_v9 = vshll.u32 %v1135_v47, 16  ;;  %v1277_v1 = vor.u32 %v1276_v38, %v1272_v35  ;;  %v1286_v48 = vshll.u32 %v5377_v25, 16 }
  0xd9   : > { %1855 = vmatmul.mubr.bf16.gmra.mrb[80].mxu1 %v5226_v13  ;;  %1701 = vmatprep.mubr.bf16.mxu0 %v5575_v28  ;;  %v1265_v15 = vor.u32 %v1264_v41, %v1260_v36  ;;  %v1293_v41 = vrot.slane %v1291_v6, 1  ;;  %v1310_v35 = vshll.u32 %v5409_v17, 16  ;;  %v1305_v46 = vrot.slane %v1303_v0, 1 }
  0xda   : > { %1862 = vmatprep.mubr.bf16.mxu1 %v5606_v22  ;;  %v5626_v8 = vsel %vm285_vm0, %v1253_v27, %v1257_v49  ;;  %v1269_v16 = vrot.slane %v1267_v9, 1  ;;  %v5646_v27 = vsel %vm285_vm0, %v1277_v1, %v1281_v19  ;;  %v1284_v49 = vshrl.u32 %v5377_v25, 16 }
  0xdb   : > { %6298 = vst [vmem:[#allocation6_spill] sm:$0xff] %v5626_v8  ;;  %6300 = vst [vmem:[#allocation8_spill] sm:$0xff] %v5646_v27  ;;  %v1288_v47 = vrot.slane %v1286_v48, 1  ;;  %v1298_v9 = vshll.u32 %v5392_v58, 16  ;;  %v1308_v1 = vshrl.u32 %v5409_v17, 16  ;;  %v1312_v19 = vrot.slane %v1310_v35, 1 }
  0xdc   : > { %v5636_v63 = vsel %vm285_vm0, %v1265_v15, %v1269_v16  ;;  %v1296_v16 = vshrl.u32 %v5392_v58, 16  ;;  %v1315_v31 = vshll.u32 %v1143_v12, 16  ;;  %v1145_v6 = vshrl.u32 %v5399_v60, 16 }
  0xdd   : > { %6299 = vst [vmem:[#allocation7_spill] sm:$0xff] %v5636_v63  ;;  %v1289_v36 = vor.u32 %v1288_v47, %v1284_v49  ;;  %v1300_v2 = vrot.slane %v1298_v9, 1  ;;  %v1313_v23 = vor.u32 %v1312_v19, %v1308_v1  ;;  %v1320_v60 = vshrl.u32 %v5426_v54, 16 }
  0xde   : > { %v1317_v49 = vrot.slane %v1315_v31, 1 }
  0xdf   : > { %v5656_v15 = vsel %vm285_vm0, %v1289_v36, %v1293_v41  ;;  %v1301_v38 = vor.u32 %v1300_v2, %v1296_v16  ;;  %v1322_v36 = vshll.u32 %v5426_v54, 16 }
  0xe0   : > { %1702 = vmatmul.mubr.bf16.gmra.mrb[84].mxu0 %v5226_v13  ;;  %6301 = vst [vmem:[#allocation9_spill] sm:$0xff] %v5656_v15 }
  0xe1   : > { %1863 = vmatmul.mubr.bf16.gmra.mrb[84].mxu1 %v5253_v33  ;;  %1709 = vmatprep.mubr.bf16.mxu0 %v5606_v22  ;;  %v5667_v48 = vsel %vm285_vm0, %v1301_v38, %v1305_v46  ;;  %v5684_v46 = vsel %vm285_vm0, %v1313_v23, %v1317_v49  ;;  %v1147_v23 = vshrl.u32 %v5411_v24, 16  ;;  %v1334_v49 = vshll.u32 %v5438_v21, 16 }
  0xe2   : > { %1870 = vmatprep.mubr.bf16.mxu1 %v5616_v43  ;;  %6302 = vst [vmem:[#allocation10_spill] sm:$0xff] %v5667_v48 }
  0xe8   : > { %1710 = vmatmul.mubr.bf16.gmra.mrb[88].mxu0 %v5253_v33 }
  0xe9   : > { %1871 = vmatmul.mubr.bf16.gmra.mrb[88].mxu1 %v5286_v55  ;;  %1717 = vmatprep.mubr.bf16.mxu0 %v5616_v43 }
  0xea   : > { %1878 = vmatprep.mubr.bf16.mxu1 %v5626_v8 }
  0xf0   : > { %1718 = vmatmul.mubr.bf16.gmra.mrb[92].mxu0 %v5286_v55 }
  0xf1   : > { %1879 = vmatmul.mubr.bf16.gmra.mrb[92].mxu1 %v5315_v18  ;;  %1725 = vmatprep.mubr.bf16.mxu0 %v5626_v8  ;;  %v1339_v8 = vshll.u32 %v1147_v23, 16 }
  0xf2   : > { %1886 = vmatprep.mubr.bf16.mxu1 %v5636_v63 }
  0xf8   : > { %1726 = vmatmul.mubr.bf16.gmra.mrb[96].mxu0 %v5315_v18 }
  0xf9   : > { %1887 = vmatmul.mubr.bf16.gmra.mrb[96].mxu1 %v5337_v42  ;;  %1733 = vmatprep.mubr.bf16.mxu0 %v5636_v63 }
  0xfa   : > { %1894 = vmatprep.mubr.bf16.mxu1 %v5646_v27 }
 0x100   : > { %1734 = vmatmul.mubr.bf16.gmra.mrb[100].mxu0 %v5337_v42 }
 0x101   : > { %1895 = vmatmul.mubr.bf16.gmra.mrb[100].mxu1 %v5355_v62  ;;  %1741 = vmatprep.mubr.bf16.mxu0 %v5646_v27  ;;  %v1327_v27 = vshll.u32 %v1145_v6, 16 }
 0x102   : > { %1902 = vmatprep.mubr.bf16.mxu1 %v5656_v15 }
 0x108   : > { %1742 = vmatmul.mubr.bf16.gmra.mrb[104].mxu0 %v5355_v62 }
 0x109   : > { %1903 = vmatmul.mubr.bf16.gmra.mrb[104].mxu1 %v5377_v25  ;;  %1749 = vmatprep.mubr.bf16.mxu0 %v5656_v15  ;;  %v1324_v15 = vrot.slane %v1322_v36, 1 }
 0x10a   : > { %1910 = vmatprep.mubr.bf16.mxu1 %v5667_v48 }
 0x10b   : > { %v3742_v47 = vpop.f32.mrb[0].mxu0 }
 0x10c   : > { %v3854_v41 = vpop.f32.mrb[0].mxu1  ;;  %v3743_v9 = vpop.f32.mrb[1].mxu0 }
 0x10d   : > { %v3744_v16 = vadd.f32 %v3743_v9, %v3742_v47  ;;  %v3855_v2 = vpop.f32.mrb[1].mxu1  ;;  %v3745_v0 = vpop.f32.mrb[2].mxu0 }
 0x10e   : > { %v3856_v12 = vadd.f32 %v3855_v2, %v3854_v41  ;;  %v3857_v35 = vpop.f32.mrb[2].mxu1  ;;  %v3746_v38 = vpop.f32.mrb[3].mxu0  ;;  %v1325_v41 = vor.u32 %v1324_v15, %v1320_v60 }
 0x10f   : > { %v798_v1 = vadd.f32 %v3744_v16, %v5679_v51  ;;  %v3747_v19 = vadd.f32 %v3746_v38, %v3745_v0  ;;  %v3858_v31 = vpop.f32.mrb[3].mxu1  ;;  %v1329_v16 = vrot.slane %v1327_v27, 1 }
 0x110   : > { %v3859_v63 = vadd.f32 %v3858_v31, %v3857_v35  ;;  %1750 = vmatmul.mubr.bf16.gmra.mrb[108].mxu0 %v5377_v25  ;;  %v1332_v31 = vshrl.u32 %v5438_v21, 16 }
 0x111   : > { %v959_v47 = vadd.f32 %v3856_v12, %v798_v1  ;;  %v801_v9 = vadd.f32 %v3747_v19, %v5679_v51  ;;  %1911 = vmatmul.mubr.bf16.gmra.mrb[108].mxu1 %v5392_v58  ;;  %1757 = vmatprep.mubr.bf16.mxu0 %v5667_v48  ;;  %v1336_v48 = vrot.slane %v1334_v49, 1  ;;  %v5702_v27 = vsel %vm285_vm0, %v1325_v41, %v1329_v16 }
 0x112   : > { %1918 = vmatprep.mubr.bf16.mxu1 %v5684_v46  ;;  %v1341_v49 = vrot.slane %v1339_v8, 1  ;;  %v1149_v41 = vshrl.u32 %v5433_v5, 16  ;;  %v1346_v16 = vshll.u32 %v5450_v57, 16  ;;  %v1344_v8 = vshrl.u32 %v5450_v57, 16 }
 0x113   : > { %1085 = vst [vmem:[%s5695_s8] sm:$0xff] %v959_v47  ;;  %v962_v6 = vadd.f32 %v3859_v63, %v801_v9  ;;  %v3748_v36 = vpop.f32.mrb[4].mxu0  ;;  %v1337_v23 = vor.u32 %v1336_v48, %v1332_v31 }
 0x114   : > { %v3860_v2 = vpop.f32.mrb[4].mxu1  ;;  %v3749_v0 = vpop.f32.mrb[5].mxu0 }
 0x115   : > { %1086 = vst [vmem:[%s5695_s8 + $0x10] sm:$0xff] %v962_v6  ;;  %v3750_v12 = vadd.f32 %v3749_v0, %v3748_v36  ;;  %v3861_v35 = vpop.f32.mrb[5].mxu1  ;;  %v3751_v38 = vpop.f32.mrb[6].mxu0  ;;  %v5714_v48 = vsel %vm285_vm0, %v1337_v23, %v1341_v49 }
 0x116   : > { %v3862_v1 = vadd.f32 %v3861_v35, %v3860_v2  ;;  %v3863_v19 = vpop.f32.mrb[6].mxu1  ;;  %v3752_v24 = vpop.f32.mrb[7].mxu0 }
 0x117   : > { %v806_v47 = vadd.f32 %v3750_v12, %v5679_v51  ;;  %v3753_v63 = vadd.f32 %v3752_v24, %v3751_v38  ;;  %v3864_v9 = vpop.f32.mrb[7].mxu1 }
 0x118   : > { %v3865_v15 = vadd.f32 %v3864_v9, %v3863_v19  ;;  %1758 = vmatmul.mubr.bf16.gmra.mrb[112].mxu0 %v5392_v58  ;;  %v1348_v9 = vrot.slane %v1346_v16, 1 }
 0x119   : > { %v967_v60 = vadd.f32 %v3862_v1, %v806_v47  ;;  %v809_v6 = vadd.f32 %v3753_v63, %v5679_v51  ;;  %1919 = vmatmul.mubr.bf16.gmra.mrb[112].mxu1 %v5409_v17  ;;  %1765 = vmatprep.mubr.bf16.mxu0 %v5684_v46 }
 0x11a   : > { %1926 = vmatprep.mubr.bf16.mxu1 %v5702_v27 }
 0x11b   : > { %1087 = vst [vmem:[%s5695_s8 + $0x40] sm:$0xff] %v967_v60  ;;  %v970_v36 = vadd.f32 %v3865_v15, %v809_v6  ;;  %v3754_v2 = vpop.f32.mrb[8].mxu0  ;;  %v1351_v15 = vshll.u32 %v1149_v41, 16 }
 0x11c   : > { %v3866_v0 = vpop.f32.mrb[8].mxu1  ;;  %v3755_v12 = vpop.f32.mrb[9].mxu0 }
 0x11d   : > { %1088 = vst [vmem:[%s5695_s8 + $0x50] sm:$0xff] %v970_v36  ;;  %v3756_v35 = vadd.f32 %v3755_v12, %v3754_v2  ;;  %v3867_v38 = vpop.f32.mrb[9].mxu1  ;;  %v3757_v1 = vpop.f32.mrb[10].mxu0  ;;  %v1349_v2 = vor.u32 %v1348_v9, %v1344_v8 }
 0x11e   : > { %v3868_v19 = vadd.f32 %v3867_v38, %v3866_v0  ;;  %v3869_v24 = vpop.f32.mrb[10].mxu1  ;;  %v3758_v47 = vpop.f32.mrb[11].mxu0  ;;  %v1353_v0 = vrot.slane %v1351_v15, 1 }
 0x11f   : > { %v814_v31 = vadd.f32 %v3756_v35, %v5679_v51  ;;  %v3759_v5 = vadd.f32 %v3758_v47, %v3757_v1  ;;  %v3870_v63 = vpop.f32.mrb[11].mxu1 }
 0x120   : > { %v3871_v60 = vadd.f32 %v3870_v63, %v3869_v24  ;;  %1766 = vmatmul.mubr.bf16.gmra.mrb[116].mxu0 %v5409_v17  ;;  %v5727_v63 = vsel %vm285_vm0, %v1349_v2, %v1353_v0 }
 0x121   : > { %v975_v6 = vadd.f32 %v3868_v19, %v814_v31  ;;  %v817_v36 = vadd.f32 %v3759_v5, %v5679_v51  ;;  %1927 = vmatmul.mubr.bf16.gmra.mrb[116].mxu1 %v5426_v54  ;;  %1773 = vmatprep.mubr.bf16.mxu0 %v5702_v27 }
 0x122   : > { %1934 = vmatprep.mubr.bf16.mxu1 %v5714_v48 }
 0x123   : > { %1089 = vst [vmem:[%s5695_s8 + $0x80] sm:$0xff] %v975_v6  ;;  %v978_v23 = vadd.f32 %v3871_v60, %v817_v36  ;;  %v3760_v49 = vpop.f32.mrb[12].mxu0 }
 0x124   : > { %v3872_v16 = vpop.f32.mrb[12].mxu1  ;;  %v3761_v12 = vpop.f32.mrb[13].mxu0 }
 0x125   : > { %1090 = vst [vmem:[%s5695_s8 + $0x90] sm:$0xff] %v978_v23  ;;  %v3762_v41 = vadd.f32 %v3761_v12, %v3760_v49  ;;  %v3873_v35 = vpop.f32.mrb[13].mxu1  ;;  %v3763_v38 = vpop.f32.mrb[14].mxu0 }
 0x126   : > { %v3874_v1 = vadd.f32 %v3873_v35, %v3872_v16  ;;  %v3875_v19 = vpop.f32.mrb[14].mxu1  ;;  %v3764_v24 = vpop.f32.mrb[15].mxu0 }
 0x127   : > { %v822_v47 = vadd.f32 %v3762_v41, %v5679_v51  ;;  %v3765_v31 = vadd.f32 %v3764_v24, %v3763_v38  ;;  %v3876_v5 = vpop.f32.mrb[15].mxu1 }
 0x128   : > { %v3877_v8 = vadd.f32 %v3876_v5, %v3875_v19  ;;  %1774 = vmatmul.mubr.bf16.gmra.mrb[120].mxu0 %v5426_v54 }
 0x129   : > { %v983_v9 = vadd.f32 %v3874_v1, %v822_v47  ;;  %v825_v15 = vadd.f32 %v3765_v31, %v5679_v51  ;;  %1935 = vmatmul.mubr.bf16.gmra.mrb[120].mxu1 %v5438_v21  ;;  %1781 = vmatprep.mubr.bf16.mxu0 %v5714_v48 }
 0x12a   : > { %1942 = vmatprep.mubr.bf16.mxu1 %v5727_v63 }
 0x12b   : > { %1091 = vst [vmem:[%s5695_s8 + $0xc0] sm:$0xff] %v983_v9  ;;  %v986_v60 = vadd.f32 %v3877_v8, %v825_v15  ;;  %v3766_v6 = vpop.f32.mrb[16].mxu0 }
 0x12c   : > { %v3878_v36 = vpop.f32.mrb[16].mxu1  ;;  %v3767_v23 = vpop.f32.mrb[17].mxu0 }
 0x12d   : > { %1092 = vst [vmem:[%s5695_s8 + $0xd0] sm:$0xff] %v986_v60  ;;  %v3768_v49 = vadd.f32 %v3767_v23, %v3766_v6  ;;  %v3879_v2 = vpop.f32.mrb[17].mxu1  ;;  %v3769_v0 = vpop.f32.mrb[18].mxu0 }
 0x12e   : > { %v3880_v16 = vadd.f32 %v3879_v2, %v3878_v36  ;;  %v3881_v12 = vpop.f32.mrb[18].mxu1  ;;  %v3770_v41 = vpop.f32.mrb[19].mxu0  ;;  %v4777_v36 = vld [vmem:[%s6280_s1 + $0x300] sm:$0xff]  }
 0x12f   : > { %v830_v35 = vadd.f32 %v3768_v49, %v5679_v51  ;;  %v3771_v38 = vadd.f32 %v3770_v41, %v3769_v0  ;;  %v3882_v1 = vpop.f32.mrb[19].mxu1  ;;  %v4779_v0 = vld [vmem:[%s6280_s1 + $0x380] sm:$0xff]  }
 0x130   : > { %v3883_v19 = vadd.f32 %v3882_v1, %v3881_v12  ;;  %1782 = vmatmul.mubr.bf16.gmra.mrb[124].mxu0 %v5438_v21  ;;  %v4782_v1 = vld [vmem:[%s6280_s1 + $0x3c8] sm:$0xff]  }
 0x131   : > { %v991_v24 = vadd.f32 %v3880_v16, %v830_v35  ;;  %v833_v47 = vadd.f32 %v3771_v38, %v5679_v51  ;;  %1943 = vmatmul.mubr.bf16.gmra.mrb[124].mxu1 %v5450_v57  ;;  %2285 = vmatprep.mubr.bf16.mxu0 %v5116_v4  ;;  %v4780_v35 = vld [vmem:[%s6280_s1 + $0x348] sm:$0xff]  }
 0x132   : > { %2446 = vmatprep.mubr.bf16.mxu1 %v5151_v29 }
 0x133   : > { %1093 = vst [vmem:[%s5695_s8 + $0x100] sm:$0xff] %v991_v24  ;;  %v994_v31 = vadd.f32 %v3883_v19, %v833_v47  ;;  %v3772_v5 = vpop.f32.mrb[20].mxu0  ;;  %v4781_v47 = vld [vmem:[%s6280_s1 + $0x308] sm:$0xff]  }
 0x134   : > { %v3884_v8 = vpop.f32.mrb[20].mxu1  ;;  %v3773_v9 = vpop.f32.mrb[21].mxu0 }
 0x135   : > { %1094 = vst [vmem:[%s5695_s8 + $0x110] sm:$0xff] %v994_v31  ;;  %v3774_v15 = vadd.f32 %v3773_v9, %v3772_v5  ;;  %v3885_v60 = vpop.f32.mrb[21].mxu1  ;;  %v3775_v6 = vpop.f32.mrb[22].mxu0  ;;  %v4784_v31 = vld [vmem:[%s6280_s1 + $0x350] sm:$0xff]  }
 0x136   : > { %v3886_v23 = vadd.f32 %v3885_v60, %v3884_v8  ;;  %v3887_v49 = vpop.f32.mrb[22].mxu1  ;;  %v3776_v2 = vpop.f32.mrb[23].mxu0  ;;  %v4786_v9 = vld [vmem:[%s6280_s1 + $0x3d0] sm:$0xff]  }
 0x137   : > { %v838_v16 = vadd.f32 %v3774_v15, %v5679_v51  ;;  %v3777_v12 = vadd.f32 %v3776_v2, %v3775_v6  ;;  %v3888_v41 = vpop.f32.mrb[23].mxu1 }
 0x138   : > { %v3889_v38 = vadd.f32 %v3888_v41, %v3887_v49  ;;  %2286 = vmatmul.mubr.bf16.vlgmr.msra.gmra.mrb[128].mxu0 %v5079_v40  ;;  %v4783_v40 = vld [vmem:[%s6280_s1 + $0x388] sm:$0xff]  }
 0x139   : > { %v999_v19 = vadd.f32 %v3886_v23, %v838_v16  ;;  %v841_v24 = vadd.f32 %v3777_v12, %v5679_v51  ;;  %2447 = vmatmul.mubr.bf16.vlgmr.msra.gmra.mrb[128].mxu1 %v5102_v61  ;;  %4399 = vmatpush3.bf16.msra.mxu0 %v4777_v36  ;;  %v4785_v16 = vld [vmem:[%s6280_s1 + $0x310] sm:$0xff]  }
 0x13a   : > { %4511 = vmatpush3.bf16.msra.mxu1 %v4779_v0  ;;  %2293 = vmatprep.mubr.bf16.mxu0 %v5151_v29 }
 0x13b   : > { %1095 = vst [vmem:[%s5695_s8 + $0x140] sm:$0xff] %v999_v19  ;;  %v1002_v5 = vadd.f32 %v3889_v38, %v841_v24  ;;  %v3778_v8 = vpop.f32.mrb[24].mxu0  ;;  %2454 = vmatprep.mubr.bf16.mxu1 %v5160_v32  ;;  %4400 = vmatprep.subr.bf16.mxu0 %v4780_v35  ;;  %v4787_v38 = vld [vmem:[%s6280_s1 + $0x390] sm:$0xff]   ;;  %v4790_v24 = vld [vmem:[%s6280_s1 + $0x3d8] sm:$0xff]  }
 0x13c   : > { %v3890_v15 = vpop.f32.mrb[24].mxu1  ;;  %v3779_v60 = vpop.f32.mrb[25].mxu0  ;;  %4512 = vmatprep.subr.bf16.mxu1 %v4782_v1  ;;  %v4788_v1 = vld [vmem:[%s6280_s1 + $0x358] sm:$0xff]  }
 0x13d   : > { %1096 = vst [vmem:[%s5695_s8 + $0x150] sm:$0xff] %v1002_v5  ;;  %v3780_v6 = vadd.f32 %v3779_v60, %v3778_v8  ;;  %v3891_v36 = vpop.f32.mrb[25].mxu1  ;;  %v3781_v23 = vpop.f32.mrb[26].mxu0  ;;  %4401 = vmatpush3.bf16.msra.mxu0 %v4781_v47  ;;  %v4791_v8 = vld [vmem:[%s6280_s1 + $0x398] sm:$0xff]  }
 0x13e   : > { %v3892_v49 = vadd.f32 %v3891_v36, %v3890_v15  ;;  %v3893_v2 = vpop.f32.mrb[26].mxu1  ;;  %v3782_v0 = vpop.f32.mrb[27].mxu0  ;;  %4513 = vmatpush3.bf16.msra.mxu1 %v4783_v40  ;;  %4402 = vmatprep.subr.bf16.mxu0 %v4784_v31  ;;  %v4789_v31 = vld [vmem:[%s6280_s1 + $0x318] sm:$0xff]  }
 0x13f   : > { %v846_v12 = vadd.f32 %v3780_v6, %v5679_v51  ;;  %v3783_v41 = vadd.f32 %v3782_v0, %v3781_v23  ;;  %v3894_v35 = vpop.f32.mrb[27].mxu1  ;;  %4514 = vmatprep.subr.bf16.mxu1 %v4786_v9  ;;  %v4792_v9 = vld [vmem:[%s6280_s1 + $0x360] sm:$0xff]  }
 0x140   : > { %v3895_v19 = vadd.f32 %v3894_v35, %v3893_v2  ;;  %2294 = vmatmul.mubr.bf16.gmra.mrb[132].mxu0 %v5102_v61  ;;  %v4794_v6 = vld [vmem:[%s6280_s1 + $0x3e0] sm:$0xff]  }
 0x141   : > { %v1007_v47 = vadd.f32 %v3892_v49, %v846_v12  ;;  %v849_v40 = vadd.f32 %v3783_v41, %v5679_v51  ;;  %2455 = vmatmul.mubr.bf16.gmra.mrb[132].mxu1 %v5112_v3  ;;  %2301 = vmatprep.mubr.bf16.mxu0 %v5160_v32  ;;  %v4793_v12 = vld [vmem:[%s6280_s1 + $0x320] sm:$0xff]  }
 0x142   : > { %2462 = vmatprep.mubr.bf16.mxu1 %v5192_v53  ;;  %4403 = vmatpush3.bf16.msra.mxu0 %v4785_v16 }
 0x143   : > { %1097 = vst [vmem:[%s5695_s8 + $0x180] sm:$0xff] %v1007_v47  ;;  %v1010_v61 = vadd.f32 %v3895_v19, %v849_v40  ;;  %v3784_v5 = vpop.f32.mrb[28].mxu0  ;;  %4515 = vmatpush3.bf16.msra.mxu1 %v4787_v38  ;;  %4404 = vmatprep.subr.bf16.mxu0 %v4788_v1  ;;  %v4795_v1 = vld [vmem:[%s6280_s1 + $0x3a0] sm:$0xff]   ;;  %v4796_v19 = vld [vmem:[%s6280_s1 + $0x368] sm:$0xff]  }
 0x144   : > { %v3896_v15 = vpop.f32.mrb[28].mxu1  ;;  %v3785_v60 = vpop.f32.mrb[29].mxu0  ;;  %4516 = vmatprep.subr.bf16.mxu1 %v4790_v24  ;;  %v4798_v47 = vld [vmem:[%s6280_s1 + $0x3e8] sm:$0xff]  }
 0x145   : > { %1098 = vst [vmem:[%s5695_s8 + $0x190] sm:$0xff] %v1010_v61  ;;  %v3786_v36 = vadd.f32 %v3785_v60, %v3784_v5  ;;  %v3897_v23 = vpop.f32.mrb[29].mxu1  ;;  %v3787_v49 = vpop.f32.mrb[30].mxu0 }
 0x146   : > { %v3898_v2 = vadd.f32 %v3897_v23, %v3896_v15  ;;  %v3899_v0 = vpop.f32.mrb[30].mxu1  ;;  %v3788_v16 = vpop.f32.mrb[31].mxu0  ;;  %4405 = vmatpush3.bf16.msra.mxu0 %v4789_v31 }
 0x147   : > { %v854_v41 = vadd.f32 %v3786_v36, %v5679_v51  ;;  %v3789_v35 = vadd.f32 %v3788_v16, %v3787_v49  ;;  %v3900_v38 = vpop.f32.mrb[31].mxu1  ;;  %4517 = vmatpush3.bf16.msra.mxu1 %v4791_v8  ;;  %4406 = vmatprep.subr.bf16.mxu0 %v4792_v9  ;;  %v4799_v8 = vld [vmem:[%s6280_s1 + $0x3a8] sm:$0xff]   ;;  %v4800_v9 = vld [vmem:[%s6280_s1 + $0x370] sm:$0xff]  }
 0x148   : > { %v3901_v24 = vadd.f32 %v3900_v38, %v3899_v0  ;;  %2302 = vmatmul.mubr.bf16.gmra.mrb[136].mxu0 %v5112_v3  ;;  %4518 = vmatprep.subr.bf16.mxu1 %v4794_v6  ;;  %v4797_v3 = vld [vmem:[%s6280_s1 + $0x328] sm:$0xff]   ;;  %v4802_v6 = vld [vmem:[%s6280_s1 + $0x3f0] sm:$0xff]  }
 0x149   : > { %v1015_v40 = vadd.f32 %v3898_v2, %v854_v41  ;;  %v857_v31 = vadd.f32 %v3789_v35, %v5679_v51  ;;  %2463 = vmatmul.mubr.bf16.gmra.mrb[136].mxu1 %v5145_v26  ;;  %2309 = vmatprep.mubr.bf16.mxu0 %v5192_v53 }
 0x14a   : > { %2470 = vmatprep.mubr.bf16.mxu1 %v5226_v13  ;;  %4407 = vmatpush3.bf16.msra.mxu0 %v4793_v12  ;;  %v4801_v12 = vld [vmem:[%s6280_s1 + $0x330] sm:$0xff]  }
 0x14b   : > { %1099 = vst [vmem:[%s5695_s8 + $0x1c0] sm:$0xff] %v1015_v40  ;;  %v1018_v61 = vadd.f32 %v3901_v24, %v857_v31  ;;  %v3790_v5 = vpop.f32.mrb[32].mxu0  ;;  %4519 = vmatpush3.bf16.msra.mxu1 %v4795_v1  ;;  %4408 = vmatprep.subr.bf16.mxu0 %v4796_v19  ;;  %v4803_v1 = vld [vmem:[%s6280_s1 + $0x3b0] sm:$0xff]   ;;  %v4804_v19 = vld [vmem:[%s6280_s1 + $0x378] sm:$0xff]  }
 0x14c   : > { %v3902_v15 = vpop.f32.mrb[32].mxu1  ;;  %v3791_v60 = vpop.f32.mrb[33].mxu0  ;;  %4520 = vmatprep.subr.bf16.mxu1 %v4798_v47  ;;  %v4806_v47 = vld [vmem:[%s6280_s1 + $0x3f8] sm:$0xff]  }
 0x14d   : > { %1100 = vst [vmem:[%s5695_s8 + $0x1d0] sm:$0xff] %v1018_v61  ;;  %v3792_v36 = vadd.f32 %v3791_v60, %v3790_v5  ;;  %v3903_v23 = vpop.f32.mrb[33].mxu1  ;;  %v3793_v49 = vpop.f32.mrb[34].mxu0  ;;  %v4807_v5 = vld [vmem:[%s6280_s1 + $0x3b8] sm:$0xff]  }
 0x14e   : > { %v3904_v2 = vadd.f32 %v3903_v23, %v3902_v15  ;;  %v3905_v0 = vpop.f32.mrb[34].mxu1  ;;  %v3794_v16 = vpop.f32.mrb[35].mxu0  ;;  %4409 = vmatpush3.bf16.msra.mxu0 %v4797_v3 }
 0x14f   : > { %v862_v41 = vadd.f32 %v3792_v36, %v5679_v51  ;;  %v3795_v35 = vadd.f32 %v3794_v16, %v3793_v49  ;;  %v3906_v38 = vpop.f32.mrb[35].mxu1  ;;  %4521 = vmatpush3.bf16.msra.mxu1 %v4799_v8  ;;  %4410 = vmatprep.subr.bf16.mxu0 %v4800_v9 }
 0x150   : > { %v3907_v24 = vadd.f32 %v3906_v38, %v3905_v0  ;;  %2310 = vmatmul.mubr.bf16.gmra.mrb[140].mxu0 %v5145_v26  ;;  %4522 = vmatprep.subr.bf16.mxu1 %v4802_v6  ;;  %v4805_v26 = vld [vmem:[%s6280_s1 + $0x338] sm:$0xff]  }
 0x151   : > { %v1023_v40 = vadd.f32 %v3904_v2, %v862_v41  ;;  %v865_v31 = vadd.f32 %v3795_v35, %v5679_v51  ;;  %2471 = vmatmul.mubr.bf16.gmra.mrb[140].mxu1 %v5153_v30  ;;  %2317 = vmatprep.mubr.bf16.mxu0 %v5226_v13 }
 0x152   : > { %2478 = vmatprep.mubr.bf16.mxu1 %v5253_v33  ;;  %4411 = vmatpush3.bf16.msra.mxu0 %v4801_v12 }
 0x153   : > { %1101 = vst [vmem:[%s5695_s8 + $0x200] sm:$0xff] %v1023_v40  ;;  %v1026_v3 = vadd.f32 %v3907_v24, %v865_v31  ;;  %v3796_v61 = vpop.f32.mrb[36].mxu0  ;;  %4523 = vmatpush3.bf16.msra.mxu1 %v4803_v1  ;;  %4412 = vmatprep.subr.bf16.mxu0 %v4804_v19 }
 0x154   : > { %v3908_v8 = vpop.f32.mrb[36].mxu1  ;;  %v3797_v9 = vpop.f32.mrb[37].mxu0  ;;  %4524 = vmatprep.subr.bf16.mxu1 %v4806_v47 }
 0x155   : > { %1102 = vst [vmem:[%s5695_s8 + $0x210] sm:$0xff] %v1026_v3  ;;  %v3798_v15 = vadd.f32 %v3797_v9, %v3796_v61  ;;  %v3909_v60 = vpop.f32.mrb[37].mxu1  ;;  %v3799_v6 = vpop.f32.mrb[38].mxu0 }
 0x156   : > { %v3910_v36 = vadd.f32 %v3909_v60, %v3908_v8  ;;  %v3911_v23 = vpop.f32.mrb[38].mxu1  ;;  %v3800_v49 = vpop.f32.mrb[39].mxu0  ;;  %4413 = vmatpush3.bf16.msra.mxu0 %v4805_v26 }
 0x157   : > { %v870_v2 = vadd.f32 %v3798_v15, %v5679_v51  ;;  %v3801_v0 = vadd.f32 %v3800_v49, %v3799_v6  ;;  %v3912_v16 = vpop.f32.mrb[39].mxu1  ;;  %4525 = vmatpush3.bf16.msra.mxu1 %v4807_v5 }
 0x158   : > { %v3913_v12 = vadd.f32 %v3912_v16, %v3911_v23  ;;  %2318 = vmatmul.mubr.bf16.gmra.mrb[144].mxu0 %v5153_v30 }
 0x159   : > { %v1031_v41 = vadd.f32 %v3910_v36, %v870_v2  ;;  %v873_v35 = vadd.f32 %v3801_v0, %v5679_v51  ;;  %2479 = vmatmul.mubr.bf16.gmra.mrb[144].mxu1 %v5195_v56  ;;  %2325 = vmatprep.mubr.bf16.mxu0 %v5253_v33 }
 0x15a   : > { %2486 = vmatprep.mubr.bf16.mxu1 %v5286_v55 }
 0x15b   : > { %1103 = vst [vmem:[%s5695_s8 + $0x240] sm:$0xff] %v1031_v41  ;;  %v1034_v38 = vadd.f32 %v3913_v12, %v873_v35  ;;  %v3802_v1 = vpop.f32.mrb[40].mxu0 }
 0x15c   : > { %v3914_v19 = vpop.f32.mrb[40].mxu1  ;;  %v3803_v24 = vpop.f32.mrb[41].mxu0 }
 0x15d   : > { %1104 = vst [vmem:[%s5695_s8 + $0x250] sm:$0xff] %v1034_v38  ;;  %v3804_v47 = vadd.f32 %v3803_v24, %v3802_v1  ;;  %v3915_v40 = vpop.f32.mrb[41].mxu1  ;;  %v3805_v31 = vpop.f32.mrb[42].mxu0 }
 0x15e   : > { %v3916_v30 = vadd.f32 %v3915_v40, %v3914_v19  ;;  %v3917_v26 = vpop.f32.mrb[42].mxu1  ;;  %v3806_v3 = vpop.f32.mrb[43].mxu0 }
 0x15f   : > { %v878_v61 = vadd.f32 %v3804_v47, %v5679_v51  ;;  %v3807_v5 = vadd.f32 %v3806_v3, %v3805_v31  ;;  %v3918_v8 = vpop.f32.mrb[43].mxu1 }
 0x160   : > { %v3919_v9 = vadd.f32 %v3918_v8, %v3917_v26  ;;  %2326 = vmatmul.mubr.bf16.gmra.mrb[148].mxu0 %v5195_v56 }
 0x161   : > { %v1039_v15 = vadd.f32 %v3916_v30, %v878_v61  ;;  %v881_v60 = vadd.f32 %v3807_v5, %v5679_v51  ;;  %2487 = vmatmul.mubr.bf16.gmra.mrb[148].mxu1 %v5220_v11  ;;  %2333 = vmatprep.mubr.bf16.mxu0 %v5286_v55 }
 0x162   : > { %2494 = vmatprep.mubr.bf16.mxu1 %v5315_v18 }
 0x163   : > { %1105 = vst [vmem:[%s5695_s8 + $0x280] sm:$0xff] %v1039_v15  ;;  %v1042_v6 = vadd.f32 %v3919_v9, %v881_v60  ;;  %v3808_v36 = vpop.f32.mrb[44].mxu0 }
 0x164   : > { %v3920_v23 = vpop.f32.mrb[44].mxu1  ;;  %v3809_v49 = vpop.f32.mrb[45].mxu0 }
 0x165   : > { %1106 = vst [vmem:[%s5695_s8 + $0x290] sm:$0xff] %v1042_v6  ;;  %v3810_v2 = vadd.f32 %v3809_v49, %v3808_v36  ;;  %v3921_v0 = vpop.f32.mrb[45].mxu1  ;;  %v3811_v16 = vpop.f32.mrb[46].mxu0 }
 0x166   : > { %v3922_v56 = vadd.f32 %v3921_v0, %v3920_v23  ;;  %v3923_v12 = vpop.f32.mrb[46].mxu1  ;;  %v3812_v41 = vpop.f32.mrb[47].mxu0 }
 0x167   : > { %v886_v35 = vadd.f32 %v3810_v2, %v5679_v51  ;;  %v3813_v38 = vadd.f32 %v3812_v41, %v3811_v16  ;;  %v3924_v1 = vpop.f32.mrb[47].mxu1 }
 0x168   : > { %v3925_v19 = vadd.f32 %v3924_v1, %v3923_v12  ;;  %2334 = vmatmul.mubr.bf16.gmra.mrb[152].mxu0 %v5220_v11 }
 0x169   : > { %v1047_v24 = vadd.f32 %v3922_v56, %v886_v35  ;;  %v889_v47 = vadd.f32 %v3813_v38, %v5679_v51  ;;  %2495 = vmatmul.mubr.bf16.gmra.mrb[152].mxu1 %v5256_v37  ;;  %2341 = vmatprep.mubr.bf16.mxu0 %v5315_v18 }
 0x16a   : > { %2502 = vmatprep.mubr.bf16.mxu1 %v5337_v42 }
 0x16b   : > { %1107 = vst [vmem:[%s5695_s8 + $0x2c0] sm:$0xff] %v1047_v24  ;;  %v1050_v40 = vadd.f32 %v3925_v19, %v889_v47  ;;  %v3814_v31 = vpop.f32.mrb[48].mxu0 }
 0x16c   : > { %v3926_v30 = vpop.f32.mrb[48].mxu1  ;;  %v3815_v26 = vpop.f32.mrb[49].mxu0 }
 0x16d   : > { %1108 = vst [vmem:[%s5695_s8 + $0x2d0] sm:$0xff] %v1050_v40  ;;  %v3816_v3 = vadd.f32 %v3815_v26, %v3814_v31  ;;  %v3927_v61 = vpop.f32.mrb[49].mxu1  ;;  %v3817_v5 = vpop.f32.mrb[50].mxu0 }
 0x16e   : > { %v3928_v11 = vadd.f32 %v3927_v61, %v3926_v30  ;;  %v3929_v8 = vpop.f32.mrb[50].mxu1  ;;  %v3818_v9 = vpop.f32.mrb[51].mxu0 }
 0x16f   : > { %v894_v15 = vadd.f32 %v3816_v3, %v5679_v51  ;;  %v3819_v60 = vadd.f32 %v3818_v9, %v3817_v5  ;;  %v3930_v6 = vpop.f32.mrb[51].mxu1 }
 0x170   : > { %v3931_v36 = vadd.f32 %v3930_v6, %v3929_v8  ;;  %2342 = vmatmul.mubr.bf16.gmra.mrb[156].mxu0 %v5256_v37 }
 0x171   : > { %v1055_v23 = vadd.f32 %v3928_v11, %v894_v15  ;;  %v897_v49 = vadd.f32 %v3819_v60, %v5679_v51  ;;  %2503 = vmatmul.mubr.bf16.gmra.mrb[156].mxu1 %v5280_v52  ;;  %2349 = vmatprep.mubr.bf16.mxu0 %v5337_v42 }
 0x172   : > { %2510 = vmatprep.mubr.bf16.mxu1 %v5355_v62 }
 0x173   : > { %1109 = vst [vmem:[%s5695_s8 + $0x300] sm:$0xff] %v1055_v23  ;;  %v1058_v2 = vadd.f32 %v3931_v36, %v897_v49  ;;  %v3820_v0 = vpop.f32.mrb[52].mxu0 }
 0x174   : > { %v3932_v16 = vpop.f32.mrb[52].mxu1  ;;  %v3821_v56 = vpop.f32.mrb[53].mxu0 }
 0x175   : > { %1110 = vst [vmem:[%s5695_s8 + $0x310] sm:$0xff] %v1058_v2  ;;  %v3822_v12 = vadd.f32 %v3821_v56, %v3820_v0  ;;  %v3933_v41 = vpop.f32.mrb[53].mxu1  ;;  %v3823_v35 = vpop.f32.mrb[54].mxu0 }
 0x176   : > { %v3934_v37 = vadd.f32 %v3933_v41, %v3932_v16  ;;  %v3935_v38 = vpop.f32.mrb[54].mxu1  ;;  %v3824_v1 = vpop.f32.mrb[55].mxu0 }
 0x177   : > { %v902_v19 = vadd.f32 %v3822_v12, %v5679_v51  ;;  %v3825_v24 = vadd.f32 %v3824_v1, %v3823_v35  ;;  %v3936_v47 = vpop.f32.mrb[55].mxu1 }
 0x178   : > { %v3937_v40 = vadd.f32 %v3936_v47, %v3935_v38  ;;  %2350 = vmatmul.mubr.bf16.gmra.mrb[160].mxu0 %v5280_v52 }
 0x179   : > { %v1063_v31 = vadd.f32 %v3934_v37, %v902_v19  ;;  %v905_v30 = vadd.f32 %v3825_v24, %v5679_v51  ;;  %2511 = vmatmul.mubr.bf16.gmra.mrb[160].mxu1 %v5317_v20  ;;  %2357 = vmatprep.mubr.bf16.mxu0 %v5355_v62 }
 0x17a   : > { %2518 = vmatprep.mubr.bf16.mxu1 %v5377_v25 }
 0x17b   : > { %1111 = vst [vmem:[%s5695_s8 + $0x340] sm:$0xff] %v1063_v31  ;;  %v1066_v26 = vadd.f32 %v3937_v40, %v905_v30  ;;  %v3826_v3 = vpop.f32.mrb[56].mxu0 }
 0x17c   : > { %v3938_v61 = vpop.f32.mrb[56].mxu1  ;;  %v3827_v5 = vpop.f32.mrb[57].mxu0 }
 0x17d   : > { %1112 = vst [vmem:[%s5695_s8 + $0x350] sm:$0xff] %v1066_v26  ;;  %v3828_v11 = vadd.f32 %v3827_v5, %v3826_v3  ;;  %v3939_v8 = vpop.f32.mrb[57].mxu1  ;;  %v3829_v9 = vpop.f32.mrb[58].mxu0 }
 0x17e   : > { %v3940_v52 = vadd.f32 %v3939_v8, %v3938_v61  ;;  %v3941_v15 = vpop.f32.mrb[58].mxu1  ;;  %v3830_v60 = vpop.f32.mrb[59].mxu0 }
 0x17f   : > { %v910_v6 = vadd.f32 %v3828_v11, %v5679_v51  ;;  %v3831_v36 = vadd.f32 %v3830_v60, %v3829_v9  ;;  %v3942_v23 = vpop.f32.mrb[59].mxu1 }
 0x180   : > { %v3943_v49 = vadd.f32 %v3942_v23, %v3941_v15  ;;  %2358 = vmatmul.mubr.bf16.gmra.mrb[164].mxu0 %v5317_v20 }
 0x181   : > { %v1071_v2 = vadd.f32 %v3940_v52, %v910_v6  ;;  %v913_v0 = vadd.f32 %v3831_v36, %v5679_v51  ;;  %2519 = vmatmul.mubr.bf16.gmra.mrb[164].mxu1 %v5340_v45  ;;  %2365 = vmatprep.mubr.bf16.mxu0 %v5377_v25 }
 0x182   : > { %2526 = vmatprep.mubr.bf16.mxu1 %v5392_v58 }
 0x183   : > { %1113 = vst [vmem:[%s5695_s8 + $0x380] sm:$0xff] %v1071_v2  ;;  %v1074_v16 = vadd.f32 %v3943_v49, %v913_v0  ;;  %v3832_v56 = vpop.f32.mrb[60].mxu0 }
 0x184   : > { %v3944_v12 = vpop.f32.mrb[60].mxu1  ;;  %v3833_v41 = vpop.f32.mrb[61].mxu0 }
 0x185   : > { %1114 = vst [vmem:[%s5695_s8 + $0x390] sm:$0xff] %v1074_v16  ;;  %v3834_v35 = vadd.f32 %v3833_v41, %v3832_v56  ;;  %v3945_v37 = vpop.f32.mrb[61].mxu1  ;;  %v3835_v38 = vpop.f32.mrb[62].mxu0  ;;  %v6303_v16 = vld [vmem:[#allocation5_spill] sm:$0xff] }
 0x186   : > { %v3946_v20 = vadd.f32 %v3945_v37, %v3944_v12  ;;  %v3947_v1 = vpop.f32.mrb[62].mxu1  ;;  %v3836_v19 = vpop.f32.mrb[63].mxu0  ;;  %v239_v37 = vld [vmem:[%s5063_s18 + $0x198] sm:$0xff] }
 0x187   : > { %v918_v24 = vadd.f32 %v3834_v35, %v5679_v51  ;;  %v3837_v47 = vadd.f32 %v3836_v19, %v3835_v38  ;;  %v3948_v40 = vpop.f32.mrb[63].mxu1  ;;  %v240_v38 = vld [vmem:[%s5063_s18 + $0x1a0] sm:$0xff] }
 0x188   : > { %v3949_v31 = vadd.f32 %v3948_v40, %v3947_v1  ;;  %2366 = vmatmul.mubr.bf16.gmra.mrb[168].mxu0 %v5340_v45 }
 0x189   : > { %v1079_v30 = vadd.f32 %v3946_v20, %v918_v24  ;;  %v921_v26 = vadd.f32 %v3837_v47, %v5679_v51  ;;  %2527 = vmatmul.mubr.bf16.gmra.mrb[168].mxu1 %v5358_v7  ;;  %2373 = vmatprep.mubr.bf16.mxu0 %v5392_v58 }
 0x18a   : > { %2534 = vmatprep.mubr.bf16.mxu1 %v5409_v17 }
 0x18b   : > { %1115 = vst [vmem:[%s5695_s8 + $0x3c0] sm:$0xff] %v1079_v30  ;;  %v1082_v3 = vadd.f32 %v3949_v31, %v921_v26  ;;  %v3966_v61 = vpop.f32.mrb[64].mxu0  ;;  %v5933_v26 = vpack.c.bf16 %v240_v38, %v239_v37 }
 0x18c   : > { %v4078_v5 = vpop.f32.mrb[64].mxu1  ;;  %v3967_v11 = vpop.f32.mrb[65].mxu0 }
 0x18d   : > { %1116 = vst [vmem:[%s5695_s8 + $0x3d0] sm:$0xff] %v1082_v3  ;;  %v3968_v8 = vadd.f32 %v3967_v11, %v3966_v61  ;;  %v4079_v9 = vpop.f32.mrb[65].mxu1  ;;  %v3969_v52 = vpop.f32.mrb[66].mxu0  ;;  %v241_v61 = vld [vmem:[%s5063_s18 + $0x1a8] sm:$0x3] }
 0x18e   : > { %v4080_v45 = vadd.f32 %v4079_v9, %v4078_v5  ;;  %v4081_v15 = vpop.f32.mrb[66].mxu1  ;;  %v3970_v60 = vpop.f32.mrb[67].mxu0 }
 0x18f   : > { %v1664_v6 = vadd.f32 %v3968_v8, %v5679_v51  ;;  %v3971_v36 = vadd.f32 %v3970_v60, %v3969_v52  ;;  %v4082_v23 = vpop.f32.mrb[67].mxu1  ;;  %v5942_v52 = vpack.c.bf16 %v241_v61, %v241_v61 }
 0x190   : > { %v4083_v49 = vadd.f32 %v4082_v23, %v4081_v15  ;;  %2374 = vmatmul.mubr.bf16.gmra.mrb[172].mxu0 %v5358_v7 }
 0x191   : > { %v1825_v2 = vadd.f32 %v4080_v45, %v1664_v6  ;;  %v1667_v0 = vadd.f32 %v3971_v36, %v5679_v51  ;;  %2535 = vmatmul.mubr.bf16.gmra.mrb[172].mxu1 %v6303_v16  ;;  %2381 = vmatprep.mubr.bf16.mxu0 %v5409_v17  ;;  %v1986_v45 = vshll.u32 %v5933_v26, 16  ;;  %v1991_v37 = vshll.u32 %v5942_v52, 16 }
 0x192   : > { %2542 = vmatprep.mubr.bf16.mxu1 %v5426_v54 }
 0x193   : > { %1951 = vst [vmem:[%s5695_s8 + $0x8] sm:$0xff] %v1825_v2  ;;  %v1828_v56 = vadd.f32 %v4083_v49, %v1667_v0  ;;  %v3972_v12 = vpop.f32.mrb[68].mxu0 }
 0x194   : > { %v4084_v41 = vpop.f32.mrb[68].mxu1  ;;  %v3973_v35 = vpop.f32.mrb[69].mxu0 }
 0x195   : > { %1952 = vst [vmem:[%s5695_s8 + $0x18] sm:$0xff] %v1828_v56  ;;  %v3974_v20 = vadd.f32 %v3973_v35, %v3972_v12  ;;  %v4085_v7 = vpop.f32.mrb[69].mxu1  ;;  %v3975_v1 = vpop.f32.mrb[70].mxu0  ;;  %v1988_v35 = vrot.slane %v1986_v45, 1 }
 0x196   : > { %v4086_v19 = vadd.f32 %v4085_v7, %v4084_v41  ;;  %v4087_v24 = vpop.f32.mrb[70].mxu1  ;;  %v3976_v47 = vpop.f32.mrb[71].mxu0 }
 0x197   : > { %v1672_v40 = vadd.f32 %v3974_v20, %v5679_v51  ;;  %v3977_v31 = vadd.f32 %v3976_v47, %v3975_v1  ;;  %v4088_v30 = vpop.f32.mrb[71].mxu1  ;;  %v1993_v47 = vrot.slane %v1991_v37, 1 }
 0x198   : > { %v4089_v3 = vadd.f32 %v4088_v30, %v4087_v24  ;;  %2382 = vmatmul.mubr.bf16.gmra.mrb[176].mxu0 %v6303_v16  ;;  %v1984_v16 = vshrl.u32 %v5933_v26, 16 }
 0x199   : > { %v1833_v5 = vadd.f32 %v4086_v19, %v1672_v40  ;;  %v1675_v11 = vadd.f32 %v3977_v31, %v5679_v51  ;;  %2543 = vmatmul.mubr.bf16.gmra.mrb[176].mxu1 %v5394_v59  ;;  %2389 = vmatprep.mubr.bf16.mxu0 %v5426_v54 }
 0x19a   : > { %2550 = vmatprep.mubr.bf16.mxu1 %v5438_v21  ;;  %v1989_v24 = vor.u32 %v1988_v35, %v1984_v16 }
 0x19b   : > { %1953 = vst [vmem:[%s5695_s8 + $0x48] sm:$0xff] %v1833_v5  ;;  %v1836_v8 = vadd.f32 %v4089_v3, %v1675_v11  ;;  %v3978_v9 = vpop.f32.mrb[72].mxu0  ;;  %v5959_v11 = vld [vmem:[%s6281_s2] ss:$0 sm:$0xff] }
 0x19c   : > { %v4090_v15 = vpop.f32.mrb[72].mxu1  ;;  %v3979_v60 = vpop.f32.mrb[73].mxu0 }
 0x19d   : > { %1954 = vst [vmem:[%s5695_s8 + $0x58] sm:$0xff] %v1836_v8  ;;  %v3980_v6 = vadd.f32 %v3979_v60, %v3978_v9  ;;  %v4091_v36 = vpop.f32.mrb[73].mxu1  ;;  %v3981_v23 = vpop.f32.mrb[74].mxu0 }
 0x19e   : > { %v4092_v49 = vadd.f32 %v4091_v36, %v4090_v15  ;;  %v4093_v2 = vpop.f32.mrb[74].mxu1  ;;  %v3982_v0 = vpop.f32.mrb[75].mxu0  ;;  %v5963_v15 = vsel %vm285_vm0, %v1989_v24, %v1993_v47 }
 0x19f   : > { %v1680_v56 = vadd.f32 %v3980_v6, %v5679_v51  ;;  %v3983_v12 = vadd.f32 %v3982_v0, %v3981_v23  ;;  %v4094_v41 = vpop.f32.mrb[75].mxu1 }
 0x1a0   : > { %v4095_v38 = vadd.f32 %v4094_v41, %v4093_v2  ;;  %2390 = vmatmul.mubr.bf16.gmra.mrb[180].mxu0 %v5394_v59 }
 0x1a1   : > { %v1841_v20 = vadd.f32 %v4092_v49, %v1680_v56  ;;  %v1683_v7 = vadd.f32 %v3983_v12, %v5679_v51  ;;  %2551 = vmatmul.mubr.bf16.gmra.mrb[180].mxu1 %v5403_v10  ;;  %2397 = vmatprep.mubr.bf16.mxu0 %v5438_v21 }
 0x1a2   : > { %2558 = vmatprep.mubr.bf16.mxu1 %v5450_v57 }
 0x1a3   : > { %1955 = vst [vmem:[%s5695_s8 + $0x88] sm:$0xff] %v1841_v20  ;;  %v1844_v1 = vadd.f32 %v4095_v38, %v1683_v7  ;;  %v3984_v19 = vpop.f32.mrb[76].mxu0 }
 0x1a4   : > { %v4096_v40 = vpop.f32.mrb[76].mxu1  ;;  %v3985_v31 = vpop.f32.mrb[77].mxu0 }
 0x1a5   : > { %1956 = vst [vmem:[%s5695_s8 + $0x98] sm:$0xff] %v1844_v1  ;;  %v3986_v30 = vadd.f32 %v3985_v31, %v3984_v19  ;;  %v4097_v3 = vpop.f32.mrb[77].mxu1  ;;  %v3987_v59 = vpop.f32.mrb[78].mxu0 }
 0x1a6   : > { %v4098_v61 = vadd.f32 %v4097_v3, %v4096_v40  ;;  %v4099_v51 = vpop.f32.mrb[78].mxu1  ;;  %v3988_v5 = vpop.f32.mrb[79].mxu0 }
 0x1a7   : > { %v1688_v8 = vadd.f32 %v5959_v11, %v3986_v30  ;;  %v3989_v9 = vadd.f32 %v3988_v5, %v3987_v59  ;;  %v4100_v45 = vpop.f32.mrb[79].mxu1 }
 0x1a8   : > { %v4101_v60 = vadd.f32 %v4100_v45, %v4099_v51  ;;  %2398 = vmatmul.mubr.bf16.gmra.mrb[184].mxu0 %v5403_v10 }
 0x1a9   : > { %v1849_v6 = vadd.f32 %v4098_v61, %v1688_v8  ;;  %v1691_v36 = vadd.f32 %v5959_v11, %v3989_v9  ;;  %2559 = vmatmul.mubr.bf16.gmra.mrb[184].mxu1 %v5423_v50  ;;  %2405 = vmatprep.mubr.bf16.mxu0 %v5450_v57 }
 0x1aa   : > { %2566 = vmatprep.mubr.bf16.mxu1 %v5963_v15 }
 0x1ab   : > { %1957 = vst [vmem:[%s5695_s8 + $0xc8] sm:$0xff] %v1849_v6  ;;  %v1852_v23 = vadd.f32 %v4101_v60, %v1691_v36  ;;  %v3990_v49 = vpop.f32.mrb[80].mxu0 }
 0x1ac   : > { %v4102_v2 = vpop.f32.mrb[80].mxu1  ;;  %v3991_v0 = vpop.f32.mrb[81].mxu0 }
 0x1ad   : > { %1958 = vst [vmem:[%s5695_s8 + $0xd8] sm:$0xff] %v1852_v23  ;;  %v3992_v16 = vadd.f32 %v3991_v0, %v3990_v49  ;;  %v4103_v56 = vpop.f32.mrb[81].mxu1  ;;  %v3993_v12 = vpop.f32.mrb[82].mxu0 }
 0x1ae   : > { %v4104_v10 = vadd.f32 %v4103_v56, %v4102_v2  ;;  %v4105_v41 = vpop.f32.mrb[82].mxu1  ;;  %v3994_v35 = vpop.f32.mrb[83].mxu0 }
 0x1af   : > { %v1696_v37 = vadd.f32 %v5959_v11, %v3992_v16  ;;  %v3995_v38 = vadd.f32 %v3994_v35, %v3993_v12  ;;  %v4106_v20 = vpop.f32.mrb[83].mxu1 }
 0x1b0   : > { %v4107_v7 = vadd.f32 %v4106_v20, %v4105_v41  ;;  %2406 = vmatmul.mubr.bf16.gmra.mrb[188].mxu0 %v5423_v50 }
 0x1b1   : > { %v1857_v1 = vadd.f32 %v4104_v10, %v1696_v37  ;;  %v1699_v19 = vadd.f32 %v5959_v11, %v3995_v38  ;;  %2567 = vmatmul.mubr.bf16.gmra.mrb[188].mxu1 %v5933_v26  ;;  %2912 = vmatprep.mubr.bf16.mxu0 %v5461_v34 }
 0x1b2   : > { %3073 = vmatprep.mubr.bf16.mxu1 %v5481_v14 }
 0x1b3   : > { %1959 = vst [vmem:[%s5695_s8 + $0x108] sm:$0xff] %v1857_v1  ;;  %v1860_v24 = vadd.f32 %v4107_v7, %v1699_v19  ;;  %v3996_v47 = vpop.f32.mrb[84].mxu0 }
 0x1b4   : > { %v4108_v40 = vpop.f32.mrb[84].mxu1  ;;  %v3997_v31 = vpop.f32.mrb[85].mxu0 }
 0x1b5   : > { %1960 = vst [vmem:[%s5695_s8 + $0x118] sm:$0xff] %v1860_v24  ;;  %v3998_v30 = vadd.f32 %v3997_v31, %v3996_v47  ;;  %v4109_v3 = vpop.f32.mrb[85].mxu1  ;;  %v3999_v59 = vpop.f32.mrb[86].mxu0 }
 0x1b6   : > { %v4110_v50 = vadd.f32 %v4109_v3, %v4108_v40  ;;  %v4111_v61 = vpop.f32.mrb[86].mxu1  ;;  %v4000_v51 = vpop.f32.mrb[87].mxu0 }
 0x1b7   : > { %v1704_v26 = vadd.f32 %v5959_v11, %v3998_v30  ;;  %v4001_v5 = vadd.f32 %v4000_v51, %v3999_v59  ;;  %v4112_v34 = vpop.f32.mrb[87].mxu1 }
 0x1b8   : > { %v4113_v8 = vadd.f32 %v4112_v34, %v4111_v61  ;;  %2913 = vmatmul.mubr.bf16.vlgmr.msra.gmra.mrb[192].mxu0 %v5116_v4 }
 0x1b9   : > { %v1865_v9 = vadd.f32 %v4110_v50, %v1704_v26  ;;  %v1707_v45 = vadd.f32 %v5959_v11, %v4001_v5  ;;  %3074 = vmatmul.mubr.bf16.vlgmr.msra.gmra.mrb[192].mxu1 %v5151_v29  ;;  %2920 = vmatprep.mubr.bf16.mxu0 %v5481_v14 }
 0x1ba   : > { %3081 = vmatprep.mubr.bf16.mxu1 %v5507_v44 }
 0x1bb   : > { %1961 = vst [vmem:[%s5695_s8 + $0x148] sm:$0xff] %v1865_v9  ;;  %v1868_v60 = vadd.f32 %v4113_v8, %v1707_v45  ;;  %v4002_v6 = vpop.f32.mrb[88].mxu0 }
 0x1bc   : > { %v4114_v36 = vpop.f32.mrb[88].mxu1  ;;  %v4003_v23 = vpop.f32.mrb[89].mxu0 }
 0x1bd   : > { %1962 = vst [vmem:[%s5695_s8 + $0x158] sm:$0xff] %v1868_v60  ;;  %v4004_v49 = vadd.f32 %v4003_v23, %v4002_v6  ;;  %v4115_v2 = vpop.f32.mrb[89].mxu1  ;;  %v4005_v0 = vpop.f32.mrb[90].mxu0 }
 0x1be   : > { %v4116_v4 = vadd.f32 %v4115_v2, %v4114_v36  ;;  %v4117_v16 = vpop.f32.mrb[90].mxu1  ;;  %v4006_v56 = vpop.f32.mrb[91].mxu0 }
 0x1bf   : > { %v1712_v12 = vadd.f32 %v5959_v11, %v4004_v49  ;;  %v4007_v10 = vadd.f32 %v4006_v56, %v4005_v0  ;;  %v4118_v14 = vpop.f32.mrb[91].mxu1 }
 0x1c0   : > { %v4119_v41 = vadd.f32 %v4118_v14, %v4117_v16  ;;  %2921 = vmatmul.mubr.bf16.gmra.mrb[196].mxu0 %v5151_v29 }
 0x1c1   : > { %v1873_v35 = vadd.f32 %v4116_v4, %v1712_v12  ;;  %v1715_v37 = vadd.f32 %v5959_v11, %v4007_v10  ;;  %3082 = vmatmul.mubr.bf16.gmra.mrb[196].mxu1 %v5160_v32  ;;  %2928 = vmatprep.mubr.bf16.mxu0 %v5507_v44 }
 0x1c2   : > { %3089 = vmatprep.mubr.bf16.mxu1 %v5541_v39 }
 0x1c3   : > { %1963 = vst [vmem:[%s5695_s8 + $0x188] sm:$0xff] %v1873_v35  ;;  %v1876_v38 = vadd.f32 %v4119_v41, %v1715_v37  ;;  %v4008_v20 = vpop.f32.mrb[92].mxu0 }
 0x1c4   : > { %v4120_v7 = vpop.f32.mrb[92].mxu1  ;;  %v4009_v1 = vpop.f32.mrb[93].mxu0 }
 0x1c5   : > { %1964 = vst [vmem:[%s5695_s8 + $0x198] sm:$0xff] %v1876_v38  ;;  %v4010_v19 = vadd.f32 %v4009_v1, %v4008_v20  ;;  %v4121_v24 = vpop.f32.mrb[93].mxu1  ;;  %v4011_v47 = vpop.f32.mrb[94].mxu0 }
 0x1c6   : > { %v4122_v29 = vadd.f32 %v4121_v24, %v4120_v7  ;;  %v4123_v40 = vpop.f32.mrb[94].mxu1  ;;  %v4012_v31 = vpop.f32.mrb[95].mxu0 }
 0x1c7   : > { %v1720_v30 = vadd.f32 %v5959_v11, %v4010_v19  ;;  %v4013_v3 = vadd.f32 %v4012_v31, %v4011_v47  ;;  %v4124_v44 = vpop.f32.mrb[95].mxu1 }
 0x1c8   : > { %v4125_v59 = vadd.f32 %v4124_v44, %v4123_v40  ;;  %2929 = vmatmul.mubr.bf16.gmra.mrb[200].mxu0 %v5160_v32 }
 0x1c9   : > { %v1881_v50 = vadd.f32 %v4122_v29, %v1720_v30  ;;  %v1723_v61 = vadd.f32 %v5959_v11, %v4013_v3  ;;  %3090 = vmatmul.mubr.bf16.gmra.mrb[200].mxu1 %v5192_v53  ;;  %2936 = vmatprep.mubr.bf16.mxu0 %v5541_v39 }
 0x1ca   : > { %3097 = vmatprep.mubr.bf16.mxu1 %v5575_v28 }
 0x1cb   : > { %1965 = vst [vmem:[%s5695_s8 + $0x1c8] sm:$0xff] %v1881_v50  ;;  %v1884_v51 = vadd.f32 %v4125_v59, %v1723_v61  ;;  %v4014_v26 = vpop.f32.mrb[96].mxu0 }
 0x1cc   : > { %v4126_v5 = vpop.f32.mrb[96].mxu1  ;;  %v4015_v34 = vpop.f32.mrb[97].mxu0 }
 0x1cd   : > { %1966 = vst [vmem:[%s5695_s8 + $0x1d8] sm:$0xff] %v1884_v51  ;;  %v4016_v8 = vadd.f32 %v4015_v34, %v4014_v26  ;;  %v4127_v9 = vpop.f32.mrb[97].mxu1  ;;  %v4017_v45 = vpop.f32.mrb[98].mxu0  ;;  %v6304_v34 = vld [vmem:[#allocation6_spill] sm:$0xff] }
 0x1ce   : > { %v4128_v32 = vadd.f32 %v4127_v9, %v4126_v5  ;;  %v4129_v60 = vpop.f32.mrb[98].mxu1  ;;  %v4018_v6 = vpop.f32.mrb[99].mxu0 }
 0x1cf   : > { %v1728_v36 = vadd.f32 %v5959_v11, %v4016_v8  ;;  %v4019_v23 = vadd.f32 %v4018_v6, %v4017_v45  ;;  %v4130_v39 = vpop.f32.mrb[99].mxu1 }
 0x1d0   : > { %v4131_v49 = vadd.f32 %v4130_v39, %v4129_v60  ;;  %2937 = vmatmul.mubr.bf16.gmra.mrb[204].mxu0 %v5192_v53 }
 0x1d1   : > { %v1889_v2 = vadd.f32 %v4128_v32, %v1728_v36  ;;  %v1731_v0 = vadd.f32 %v5959_v11, %v4019_v23  ;;  %3098 = vmatmul.mubr.bf16.gmra.mrb[204].mxu1 %v5226_v13  ;;  %2944 = vmatprep.mubr.bf16.mxu0 %v5575_v28 }
 0x1d2   : > { %3105 = vmatprep.mubr.bf16.mxu1 %v5606_v22 }
 0x1d3   : > { %1967 = vst [vmem:[%s5695_s8 + $0x208] sm:$0xff] %v1889_v2  ;;  %v1892_v4 = vadd.f32 %v4131_v49, %v1731_v0  ;;  %v4020_v16 = vpop.f32.mrb[100].mxu0 }
 0x1d4   : > { %v4132_v56 = vpop.f32.mrb[100].mxu1  ;;  %v4021_v12 = vpop.f32.mrb[101].mxu0 }
 0x1d5   : > { %1968 = vst [vmem:[%s5695_s8 + $0x218] sm:$0xff] %v1892_v4  ;;  %v4022_v10 = vadd.f32 %v4021_v12, %v4020_v16  ;;  %v4133_v14 = vpop.f32.mrb[101].mxu1  ;;  %v4023_v41 = vpop.f32.mrb[102].mxu0 }
 0x1d6   : > { %v4134_v53 = vadd.f32 %v4133_v14, %v4132_v56  ;;  %v4135_v35 = vpop.f32.mrb[102].mxu1  ;;  %v4024_v37 = vpop.f32.mrb[103].mxu0  ;;  %v6305_v56 = vld [vmem:[#allocation7_spill] sm:$0xff] }
 0x1d7   : > { %v1736_v38 = vadd.f32 %v5959_v11, %v4022_v10  ;;  %v4025_v20 = vadd.f32 %v4024_v37, %v4023_v41  ;;  %v4136_v28 = vpop.f32.mrb[103].mxu1 }
 0x1d8   : > { %v4137_v7 = vadd.f32 %v4136_v28, %v4135_v35  ;;  %2945 = vmatmul.mubr.bf16.gmra.mrb[208].mxu0 %v5226_v13 }
 0x1d9   : > { %v1897_v1 = vadd.f32 %v4134_v53, %v1736_v38  ;;  %v1739_v19 = vadd.f32 %v5959_v11, %v4025_v20  ;;  %3106 = vmatmul.mubr.bf16.gmra.mrb[208].mxu1 %v5253_v33  ;;  %2952 = vmatprep.mubr.bf16.mxu0 %v5606_v22 }
 0x1da   : > { %3113 = vmatprep.mubr.bf16.mxu1 %v5616_v43 }
 0x1db   : > { %1969 = vst [vmem:[%s5695_s8 + $0x248] sm:$0xff] %v1897_v1  ;;  %v1900_v24 = vadd.f32 %v4137_v7, %v1739_v19  ;;  %v4026_v47 = vpop.f32.mrb[104].mxu0 }
 0x1dc   : > { %v4138_v29 = vpop.f32.mrb[104].mxu1  ;;  %v4027_v40 = vpop.f32.mrb[105].mxu0 }
 0x1dd   : > { %1970 = vst [vmem:[%s5695_s8 + $0x258] sm:$0xff] %v1900_v24  ;;  %v4028_v31 = vadd.f32 %v4027_v40, %v4026_v47  ;;  %v4139_v30 = vpop.f32.mrb[105].mxu1  ;;  %v4029_v3 = vpop.f32.mrb[106].mxu0 }
 0x1de   : > { %v4140_v13 = vadd.f32 %v4139_v30, %v4138_v29  ;;  %v4141_v44 = vpop.f32.mrb[106].mxu1  ;;  %v4030_v59 = vpop.f32.mrb[107].mxu0  ;;  %v6306_v29 = vld [vmem:[#allocation8_spill] sm:$0xff] }
 0x1df   : > { %v1744_v50 = vadd.f32 %v5959_v11, %v4028_v31  ;;  %v4031_v61 = vadd.f32 %v4030_v59, %v4029_v3  ;;  %v4142_v22 = vpop.f32.mrb[107].mxu1 }
 0x1e0   : > { %v4143_v51 = vadd.f32 %v4142_v22, %v4141_v44  ;;  %2953 = vmatmul.mubr.bf16.gmra.mrb[212].mxu0 %v5253_v33 }
 0x1e1   : > { %v1905_v26 = vadd.f32 %v4140_v13, %v1744_v50  ;;  %v1747_v5 = vadd.f32 %v5959_v11, %v4031_v61  ;;  %3114 = vmatmul.mubr.bf16.gmra.mrb[212].mxu1 %v5286_v55  ;;  %2960 = vmatprep.mubr.bf16.mxu0 %v5616_v43 }
 0x1e2   : > { %3121 = vmatprep.mubr.bf16.mxu1 %v6304_v34 }
 0x1e3   : > { %1971 = vst [vmem:[%s5695_s8 + $0x288] sm:$0xff] %v1905_v26  ;;  %v1908_v8 = vadd.f32 %v4143_v51, %v1747_v5  ;;  %v4032_v9 = vpop.f32.mrb[108].mxu0 }
 0x1e4   : > { %v4144_v45 = vpop.f32.mrb[108].mxu1  ;;  %v4033_v32 = vpop.f32.mrb[109].mxu0 }
 0x1e5   : > { %1972 = vst [vmem:[%s5695_s8 + $0x298] sm:$0xff] %v1908_v8  ;;  %v4034_v60 = vadd.f32 %v4033_v32, %v4032_v9  ;;  %v4145_v6 = vpop.f32.mrb[109].mxu1  ;;  %v4035_v36 = vpop.f32.mrb[110].mxu0  ;;  %v6307_v9 = vld [vmem:[#allocation9_spill] sm:$0xff] }
 0x1e6   : > { %v4146_v33 = vadd.f32 %v4145_v6, %v4144_v45  ;;  %v4147_v23 = vpop.f32.mrb[110].mxu1  ;;  %v4036_v39 = vpop.f32.mrb[111].mxu0 }
 0x1e7   : > { %v1752_v49 = vadd.f32 %v5959_v11, %v4034_v60  ;;  %v4037_v2 = vadd.f32 %v4036_v39, %v4035_v36  ;;  %v4148_v43 = vpop.f32.mrb[111].mxu1 }
 0x1e8   : > { %v4149_v0 = vadd.f32 %v4148_v43, %v4147_v23  ;;  %2961 = vmatmul.mubr.bf16.gmra.mrb[216].mxu0 %v5286_v55 }
 0x1e9   : > { %v1913_v4 = vadd.f32 %v4146_v33, %v1752_v49  ;;  %v1755_v16 = vadd.f32 %v5959_v11, %v4037_v2  ;;  %3122 = vmatmul.mubr.bf16.gmra.mrb[216].mxu1 %v5315_v18  ;;  %2968 = vmatprep.mubr.bf16.mxu0 %v6304_v34 }
 0x1ea   : > { %3129 = vmatprep.mubr.bf16.mxu1 %v6305_v56 }
 0x1eb   : > { %1973 = vst [vmem:[%s5695_s8 + $0x2c8] sm:$0xff] %v1913_v4  ;;  %v1916_v12 = vadd.f32 %v4149_v0, %v1755_v16  ;;  %v4038_v10 = vpop.f32.mrb[112].mxu0 }
 0x1ec   : > { %v4150_v14 = vpop.f32.mrb[112].mxu1  ;;  %v4039_v41 = vpop.f32.mrb[113].mxu0 }
 0x1ed   : > { %1974 = vst [vmem:[%s5695_s8 + $0x2d8] sm:$0xff] %v1916_v12  ;;  %v4040_v53 = vadd.f32 %v4039_v41, %v4038_v10  ;;  %v4151_v35 = vpop.f32.mrb[113].mxu1  ;;  %v4041_v37 = vpop.f32.mrb[114].mxu0  ;;  %v6308_v12 = vld [vmem:[#allocation10_spill] sm:$0xff] }
 0x1ee   : > { %v4152_v55 = vadd.f32 %v4151_v35, %v4150_v14  ;;  %v4153_v38 = vpop.f32.mrb[114].mxu1  ;;  %v4042_v20 = vpop.f32.mrb[115].mxu0 }
 0x1ef   : > { %v1760_v28 = vadd.f32 %v5959_v11, %v4040_v53  ;;  %v4043_v7 = vadd.f32 %v4042_v20, %v4041_v37  ;;  %v4154_v1 = vpop.f32.mrb[115].mxu1 }
 0x1f0   : > { %v4155_v19 = vadd.f32 %v4154_v1, %v4153_v38  ;;  %2969 = vmatmul.mubr.bf16.gmra.mrb[220].mxu0 %v5315_v18 }
 0x1f1   : > { %v1921_v24 = vadd.f32 %v4152_v55, %v1760_v28  ;;  %v1763_v47 = vadd.f32 %v5959_v11, %v4043_v7  ;;  %3130 = vmatmul.mubr.bf16.gmra.mrb[220].mxu1 %v5337_v42  ;;  %2976 = vmatprep.mubr.bf16.mxu0 %v6305_v56 }
 0x1f2   : > { %3137 = vmatprep.mubr.bf16.mxu1 %v6306_v29 }
 0x1f3   : > { %1975 = vst [vmem:[%s5695_s8 + $0x308] sm:$0xff] %v1921_v24  ;;  %v1924_v40 = vadd.f32 %v4155_v19, %v1763_v47  ;;  %v4044_v31 = vpop.f32.mrb[116].mxu0 }
 0x1f4   : > { %v4156_v30 = vpop.f32.mrb[116].mxu1  ;;  %v4045_v3 = vpop.f32.mrb[117].mxu0 }
 0x1f5   : > { %1976 = vst [vmem:[%s5695_s8 + $0x318] sm:$0xff] %v1924_v40  ;;  %v4046_v13 = vadd.f32 %v4045_v3, %v4044_v31  ;;  %v4157_v44 = vpop.f32.mrb[117].mxu1  ;;  %v4047_v59 = vpop.f32.mrb[118].mxu0 }
 0x1f6   : > { %v4158_v18 = vadd.f32 %v4157_v44, %v4156_v30  ;;  %v4159_v50 = vpop.f32.mrb[118].mxu1  ;;  %v4048_v61 = vpop.f32.mrb[119].mxu0 }
 0x1f7   : > { %v1768_v22 = vadd.f32 %v5959_v11, %v4046_v13  ;;  %v4049_v51 = vadd.f32 %v4048_v61, %v4047_v59  ;;  %v4160_v26 = vpop.f32.mrb[119].mxu1 }
 0x1f8   : > { %v4161_v5 = vadd.f32 %v4160_v26, %v4159_v50  ;;  %2977 = vmatmul.mubr.bf16.gmra.mrb[224].mxu0 %v5337_v42 }
 0x1f9   : > { %v1929_v34 = vadd.f32 %v4158_v18, %v1768_v22  ;;  %v1771_v8 = vadd.f32 %v5959_v11, %v4049_v51  ;;  %3138 = vmatmul.mubr.bf16.gmra.mrb[224].mxu1 %v5355_v62  ;;  %2984 = vmatprep.mubr.bf16.mxu0 %v6306_v29 }
 0x1fa   : > { %3145 = vmatprep.mubr.bf16.mxu1 %v6307_v9 }
 0x1fb   : > { %1977 = vst [vmem:[%s5695_s8 + $0x348] sm:$0xff] %v1929_v34  ;;  %v1932_v45 = vadd.f32 %v4161_v5, %v1771_v8  ;;  %v4050_v32 = vpop.f32.mrb[120].mxu0 }
 0x1fc   : > { %v4162_v60 = vpop.f32.mrb[120].mxu1  ;;  %v4051_v6 = vpop.f32.mrb[121].mxu0 }
 0x1fd   : > { %1978 = vst [vmem:[%s5695_s8 + $0x358] sm:$0xff] %v1932_v45  ;;  %v4052_v36 = vadd.f32 %v4051_v6, %v4050_v32  ;;  %v4163_v33 = vpop.f32.mrb[121].mxu1  ;;  %v4053_v23 = vpop.f32.mrb[122].mxu0 }
 0x1fe   : > { %v4164_v42 = vadd.f32 %v4163_v33, %v4162_v60  ;;  %v4165_v39 = vpop.f32.mrb[122].mxu1  ;;  %v4054_v49 = vpop.f32.mrb[123].mxu0 }
 0x1ff   : > { %v1776_v2 = vadd.f32 %v5959_v11, %v4052_v36  ;;  %v4055_v43 = vadd.f32 %v4054_v49, %v4053_v23  ;;  %v4166_v0 = vpop.f32.mrb[123].mxu1 }
 0x200   : > { %v4167_v4 = vadd.f32 %v4166_v0, %v4165_v39  ;;  %2985 = vmatmul.mubr.bf16.gmra.mrb[228].mxu0 %v5355_v62 }
 0x201   : > { %v1937_v16 = vadd.f32 %v4164_v42, %v1776_v2  ;;  %v1779_v56 = vadd.f32 %v5959_v11, %v4055_v43  ;;  %3146 = vmatmul.mubr.bf16.gmra.mrb[228].mxu1 %v5377_v25  ;;  %2992 = vmatprep.mubr.bf16.mxu0 %v6307_v9  ;;  %v2613_v43 = vshll.u32 %v5963_v15, 16 }
 0x202   : > { %3153 = vmatprep.mubr.bf16.mxu1 %v6308_v12 }
 0x203   : > { %1979 = vst [vmem:[%s5695_s8 + $0x388] sm:$0xff] %v1937_v16  ;;  %v1940_v10 = vadd.f32 %v4167_v4, %v1779_v56  ;;  %v4056_v14 = vpop.f32.mrb[124].mxu0  ;;  %v2608_v16 = vshrl.u32 %v5942_v52, 16 }
 0x204   : > { %v4168_v41 = vpop.f32.mrb[124].mxu1  ;;  %v4057_v53 = vpop.f32.mrb[125].mxu0 }
 0x205   : > { %1980 = vst [vmem:[%s5695_s8 + $0x398] sm:$0xff] %v1940_v10  ;;  %v4058_v35 = vadd.f32 %v4057_v53, %v4056_v14  ;;  %v4169_v37 = vpop.f32.mrb[125].mxu1  ;;  %v4059_v55 = vpop.f32.mrb[126].mxu0 }
 0x206   : > { %v4170_v62 = vadd.f32 %v4169_v37, %v4168_v41  ;;  %v4171_v38 = vpop.f32.mrb[126].mxu1  ;;  %v4060_v20 = vpop.f32.mrb[127].mxu0  ;;  %v2611_v41 = vshrl.u32 %v5963_v15, 16  ;;  %v2615_v37 = vrot.slane %v2613_v43, 1 }
 0x207   : > { %v1784_v28 = vadd.f32 %v5959_v11, %v4058_v35  ;;  %v4061_v7 = vadd.f32 %v4060_v20, %v4059_v55  ;;  %v4172_v1 = vpop.f32.mrb[127].mxu1  ;;  %v2618_v20 = vshll.u32 %v2608_v16, 16 }
 0x208   : > { %v4173_v19 = vadd.f32 %v4172_v1, %v4171_v38  ;;  %2993 = vmatmul.mubr.bf16.gmra.mrb[232].mxu0 %v5377_v25 }
 0x209   : > { %v1945_v24 = vadd.f32 %v4170_v62, %v1784_v28  ;;  %v1787_v47 = vadd.f32 %v5959_v11, %v4061_v7  ;;  %3154 = vmatmul.mubr.bf16.gmra.mrb[232].mxu1 %v5392_v58  ;;  %3000 = vmatprep.mubr.bf16.mxu0 %v6308_v12 }
 0x20a   : > { %3161 = vmatprep.mubr.bf16.mxu1 %v5684_v46 }
 0x20b   : > { %1981 = vst [vmem:[%s5695_s8 + $0x3c8] sm:$0xff] %v1945_v24  ;;  %v1948_v29 = vadd.f32 %v4173_v19, %v1787_v47  ;;  %v4190_v40 = vpop.f32.mrb[128].mxu0  ;;  %v2616_v24 = vor.u32 %v2615_v37, %v2611_v41  ;;  %v2620_v47 = vrot.slane %v2618_v20, 1 }
 0x20c   : > { %v4302_v31 = vpop.f32.mrb[128].mxu1  ;;  %v4191_v30 = vpop.f32.mrb[129].mxu0 }
 0x20d   : > { %1982 = vst [vmem:[%s5695_s8 + $0x3d8] sm:$0xff] %v1948_v29  ;;  %v4192_v3 = vadd.f32 %v4191_v30, %v4190_v40  ;;  %v4303_v13 = vpop.f32.mrb[129].mxu1  ;;  %v4193_v44 = vpop.f32.mrb[130].mxu0 }
 0x20e   : > { %v4304_v25 = vadd.f32 %v4303_v13, %v4302_v31  ;;  %v4305_v59 = vpop.f32.mrb[130].mxu1  ;;  %v4194_v18 = vpop.f32.mrb[131].mxu0 }
 0x20f   : > { %v2288_v50 = vadd.f32 %v5959_v11, %v4192_v3  ;;  %v4195_v61 = vadd.f32 %v4194_v18, %v4193_v44  ;;  %v4306_v22 = vpop.f32.mrb[131].mxu1  ;;  %v2621_v18 = vsel %vm285_vm0, %v2616_v24, %v2620_v47 }
 0x210   : > { %v4307_v51 = vadd.f32 %v4306_v22, %v4305_v59  ;;  %3001 = vmatmul.mubr.bf16.gmra.mrb[236].mxu0 %v5392_v58 }
 0x211   : > { %v2449_v26 = vadd.f32 %v4304_v25, %v2288_v50  ;;  %v2291_v5 = vadd.f32 %v5959_v11, %v4195_v61  ;;  %3162 = vmatmul.mubr.bf16.gmra.mrb[236].mxu1 %v5409_v17  ;;  %3008 = vmatprep.mubr.bf16.mxu0 %v5684_v46 }
 0x212   : > { %3169 = vmatprep.mubr.bf16.mxu1 %v5702_v27 }
 0x213   : > { %3560 = vst [vmem:[%s5695_s8 + $0x20] sm:$0xff] %v2449_v26  ;;  %v2452_v34 = vadd.f32 %v4307_v51, %v2291_v5  ;;  %v4196_v8 = vpop.f32.mrb[132].mxu0 }
 0x214   : > { %v4308_v9 = vpop.f32.mrb[132].mxu1  ;;  %v4197_v45 = vpop.f32.mrb[133].mxu0 }
 0x215   : > { %3561 = vst [vmem:[%s5695_s8 + $0x30] sm:$0xff] %v2452_v34  ;;  %v4198_v32 = vadd.f32 %v4197_v45, %v4196_v8  ;;  %v4309_v60 = vpop.f32.mrb[133].mxu1  ;;  %v4199_v6 = vpop.f32.mrb[134].mxu0 }
 0x216   : > { %v4310_v58 = vadd.f32 %v4309_v60, %v4308_v9  ;;  %v4311_v36 = vpop.f32.mrb[134].mxu1  ;;  %v4200_v33 = vpop.f32.mrb[135].mxu0 }
 0x217   : > { %v2296_v23 = vadd.f32 %v5959_v11, %v4198_v32  ;;  %v4201_v42 = vadd.f32 %v4200_v33, %v4199_v6  ;;  %v4312_v46 = vpop.f32.mrb[135].mxu1 }
 0x218   : > { %v4313_v39 = vadd.f32 %v4312_v46, %v4311_v36  ;;  %3009 = vmatmul.mubr.bf16.gmra.mrb[240].mxu0 %v5409_v17 }
 0x219   : > { %v2457_v49 = vadd.f32 %v4310_v58, %v2296_v23  ;;  %v2299_v2 = vadd.f32 %v5959_v11, %v4201_v42  ;;  %3170 = vmatmul.mubr.bf16.gmra.mrb[240].mxu1 %v5426_v54  ;;  %3016 = vmatprep.mubr.bf16.mxu0 %v5702_v27 }
 0x21a   : > { %3177 = vmatprep.mubr.bf16.mxu1 %v5714_v48 }
 0x21b   : > { %3562 = vst [vmem:[%s5695_s8 + $0x60] sm:$0xff] %v2457_v49  ;;  %v2460_v0 = vadd.f32 %v4313_v39, %v2299_v2  ;;  %v4202_v4 = vpop.f32.mrb[136].mxu0 }
 0x21c   : > { %v4314_v56 = vpop.f32.mrb[136].mxu1  ;;  %v4203_v12 = vpop.f32.mrb[137].mxu0 }
 0x21d   : > { %3563 = vst [vmem:[%s5695_s8 + $0x70] sm:$0xff] %v2460_v0  ;;  %v4204_v17 = vadd.f32 %v4203_v12, %v4202_v4  ;;  %v4315_v10 = vpop.f32.mrb[137].mxu1  ;;  %v4205_v14 = vpop.f32.mrb[138].mxu0 }
 0x21e   : > { %v4316_v53 = vadd.f32 %v4315_v10, %v4314_v56  ;;  %v4317_v27 = vpop.f32.mrb[138].mxu1  ;;  %v4206_v35 = vpop.f32.mrb[139].mxu0 }
 0x21f   : > { %v2304_v55 = vadd.f32 %v5959_v11, %v4204_v17  ;;  %v4207_v62 = vadd.f32 %v4206_v35, %v4205_v14  ;;  %v4318_v38 = vpop.f32.mrb[139].mxu1 }
 0x220   : > { %v4319_v52 = vadd.f32 %v4318_v38, %v4317_v27  ;;  %3017 = vmatmul.mubr.bf16.gmra.mrb[244].mxu0 %v5426_v54 }
 0x221   : > { %v2465_v28 = vadd.f32 %v4316_v53, %v2304_v55  ;;  %v2307_v7 = vadd.f32 %v5959_v11, %v4207_v62  ;;  %3178 = vmatmul.mubr.bf16.gmra.mrb[244].mxu1 %v5438_v21  ;;  %3024 = vmatprep.mubr.bf16.mxu0 %v5714_v48 }
 0x222   : > { %3185 = vmatprep.mubr.bf16.mxu1 %v5727_v63 }
 0x223   : > { %3564 = vst [vmem:[%s5695_s8 + $0xa0] sm:$0xff] %v2465_v28  ;;  %v2468_v1 = vadd.f32 %v4319_v52, %v2307_v7  ;;  %v4208_v19 = vpop.f32.mrb[140].mxu0 }
 0x224   : > { %v4320_v29 = vpop.f32.mrb[140].mxu1  ;;  %v4209_v40 = vpop.f32.mrb[141].mxu0 }
 0x225   : > { %3565 = vst [vmem:[%s5695_s8 + $0xb0] sm:$0xff] %v2468_v1  ;;  %v4210_v31 = vadd.f32 %v4209_v40, %v4208_v19  ;;  %v4321_v30 = vpop.f32.mrb[141].mxu1  ;;  %v4211_v54 = vpop.f32.mrb[142].mxu0 }
 0x226   : > { %v4322_v3 = vadd.f32 %v4321_v30, %v4320_v29  ;;  %v4323_v13 = vpop.f32.mrb[142].mxu1  ;;  %v4212_v44 = vpop.f32.mrb[143].mxu0 }
 0x227   : > { %v2312_v25 = vadd.f32 %v5959_v11, %v4210_v31  ;;  %v4213_v48 = vadd.f32 %v4212_v44, %v4211_v54  ;;  %v4324_v59 = vpop.f32.mrb[143].mxu1 }
 0x228   : > { %v4325_v50 = vadd.f32 %v4324_v59, %v4323_v13  ;;  %3025 = vmatmul.mubr.bf16.gmra.mrb[248].mxu0 %v5438_v21 }
 0x229   : > { %v2473_v61 = vadd.f32 %v4322_v3, %v2312_v25  ;;  %v2315_v22 = vadd.f32 %v5959_v11, %v4213_v48  ;;  %3186 = vmatmul.mubr.bf16.gmra.mrb[248].mxu1 %v5450_v57  ;;  %3032 = vmatprep.mubr.bf16.mxu0 %v5727_v63 }
 0x22a   : > { %3193 = vmatprep.mubr.bf16.mxu1 %v2621_v18 }
 0x22b   : > { %3566 = vst [vmem:[%s5695_s8 + $0xe0] sm:$0xff] %v2473_v61  ;;  %v2476_v51 = vadd.f32 %v4325_v50, %v2315_v22  ;;  %v4214_v26 = vpop.f32.mrb[144].mxu0 }
 0x22c   : > { %v4326_v5 = vpop.f32.mrb[144].mxu1  ;;  %v4215_v34 = vpop.f32.mrb[145].mxu0 }
 0x22d   : > { %3567 = vst [vmem:[%s5695_s8 + $0xf0] sm:$0xff] %v2476_v51  ;;  %v4216_v8 = vadd.f32 %v4215_v34, %v4214_v26  ;;  %v4327_v9 = vpop.f32.mrb[145].mxu1  ;;  %v4217_v45 = vpop.f32.mrb[146].mxu0 }
 0x22e   : > { %v4328_v32 = vadd.f32 %v4327_v9, %v4326_v5  ;;  %v4329_v21 = vpop.f32.mrb[146].mxu1  ;;  %v4218_v60 = vpop.f32.mrb[147].mxu0 }
 0x22f   : > { %v2320_v6 = vadd.f32 %v5959_v11, %v4216_v8  ;;  %v4219_v58 = vadd.f32 %v4218_v60, %v4217_v45  ;;  %v4330_v36 = vpop.f32.mrb[147].mxu1 }
 0x230   : > { %v4331_v63 = vadd.f32 %v4330_v36, %v4329_v21  ;;  %3033 = vmatmul.mubr.bf16.gmra.mrb[252].mxu0 %v5450_v57 }
 0x231   : > { %v2481_v33 = vadd.f32 %v4328_v32, %v2320_v6  ;;  %v2323_v23 = vadd.f32 %v5959_v11, %v4219_v58  ;;  %3194 = vmatmul.mubr.bf16.gmra.mrb[252].mxu1 %v5963_v15 }
 0x233   : > { %3568 = vst [vmem:[%s5695_s8 + $0x120] sm:$0xff] %v2481_v33  ;;  %v2484_v42 = vadd.f32 %v4331_v63, %v2323_v23  ;;  %v4220_v46 = vpop.f32.mrb[148].mxu0 }
 0x234   : > { %v4332_v39 = vpop.f32.mrb[148].mxu1  ;;  %v4221_v49 = vpop.f32.mrb[149].mxu0 }
 0x235   : > { %3569 = vst [vmem:[%s5695_s8 + $0x130] sm:$0xff] %v2484_v42  ;;  %v4222_v2 = vadd.f32 %v4221_v49, %v4220_v46  ;;  %v4333_v43 = vpop.f32.mrb[149].mxu1  ;;  %v4223_v0 = vpop.f32.mrb[150].mxu0 }
 0x236   : > { %v4334_v4 = vadd.f32 %v4333_v43, %v4332_v39  ;;  %v4335_v16 = vpop.f32.mrb[150].mxu1  ;;  %v4224_v56 = vpop.f32.mrb[151].mxu0 }
 0x237   : > { %v2328_v57 = vadd.f32 %v5959_v11, %v4222_v2  ;;  %v4225_v12 = vadd.f32 %v4224_v56, %v4223_v0  ;;  %v4336_v17 = vpop.f32.mrb[151].mxu1 }
 0x238   : > { %v4337_v10 = vadd.f32 %v4336_v17, %v4335_v16 }
 0x239   : > { %v2489_v15 = vadd.f32 %v4334_v4, %v2328_v57  ;;  %v2331_v14 = vadd.f32 %v5959_v11, %v4225_v12 }
 0x23b   : > { %3570 = vst [vmem:[%s5695_s8 + $0x160] sm:$0xff] %v2489_v15  ;;  %v2492_v41 = vadd.f32 %v4337_v10, %v2331_v14  ;;  %v4226_v53 = vpop.f32.mrb[152].mxu0 }
 0x23c   : > { %v4338_v27 = vpop.f32.mrb[152].mxu1  ;;  %v4227_v35 = vpop.f32.mrb[153].mxu0 }
 0x23d   : > { %3571 = vst [vmem:[%s5695_s8 + $0x170] sm:$0xff] %v2492_v41  ;;  %v4228_v37 = vadd.f32 %v4227_v35, %v4226_v53  ;;  %v4339_v55 = vpop.f32.mrb[153].mxu1  ;;  %v4229_v62 = vpop.f32.mrb[154].mxu0 }
 0x23e   : > { %v4340_v38 = vadd.f32 %v4339_v55, %v4338_v27  ;;  %v4341_v20 = vpop.f32.mrb[154].mxu1  ;;  %v4230_v52 = vpop.f32.mrb[155].mxu0 }
 0x23f   : > { %v2336_v28 = vadd.f32 %v5959_v11, %v4228_v37  ;;  %v4231_v7 = vadd.f32 %v4230_v52, %v4229_v62  ;;  %v4342_v1 = vpop.f32.mrb[155].mxu1 }
 0x240   : > { %v4343_v19 = vadd.f32 %v4342_v1, %v4341_v20 }
 0x241   : > { %v2497_v24 = vadd.f32 %v4340_v38, %v2336_v28  ;;  %v2339_v47 = vadd.f32 %v5959_v11, %v4231_v7 }
 0x243   : > { %3572 = vst [vmem:[%s5695_s8 + $0x1a0] sm:$0xff] %v2497_v24  ;;  %v2500_v29 = vadd.f32 %v4343_v19, %v2339_v47  ;;  %v4232_v40 = vpop.f32.mrb[156].mxu0 }
 0x244   : > { %v4344_v31 = vpop.f32.mrb[156].mxu1  ;;  %v4233_v30 = vpop.f32.mrb[157].mxu0 }
 0x245   : > { %3573 = vst [vmem:[%s5695_s8 + $0x1b0] sm:$0xff] %v2500_v29  ;;  %v4234_v54 = vadd.f32 %v4233_v30, %v4232_v40  ;;  %v4345_v3 = vpop.f32.mrb[157].mxu1  ;;  %v4235_v13 = vpop.f32.mrb[158].mxu0 }
 0x246   : > { %v4346_v44 = vadd.f32 %v4345_v3, %v4344_v31  ;;  %v4347_v25 = vpop.f32.mrb[158].mxu1  ;;  %v4236_v48 = vpop.f32.mrb[159].mxu0 }
 0x247   : > { %v2344_v59 = vadd.f32 %v5959_v11, %v4234_v54  ;;  %v4237_v18 = vadd.f32 %v4236_v48, %v4235_v13  ;;  %v4348_v50 = vpop.f32.mrb[159].mxu1 }
 0x248   : > { %v4349_v61 = vadd.f32 %v4348_v50, %v4347_v25 }
 0x249   : > { %v2505_v22 = vadd.f32 %v4346_v44, %v2344_v59  ;;  %v2347_v51 = vadd.f32 %v5959_v11, %v4237_v18 }
 0x24b   : > { %3574 = vst [vmem:[%s5695_s8 + $0x1e0] sm:$0xff] %v2505_v22  ;;  %v2508_v26 = vadd.f32 %v4349_v61, %v2347_v51  ;;  %v4238_v5 = vpop.f32.mrb[160].mxu0 }
 0x24c   : > { %v4350_v34 = vpop.f32.mrb[160].mxu1  ;;  %v4239_v8 = vpop.f32.mrb[161].mxu0 }
 0x24d   : > { %3575 = vst [vmem:[%s5695_s8 + $0x1f0] sm:$0xff] %v2508_v26  ;;  %v4240_v9 = vadd.f32 %v4239_v8, %v4238_v5  ;;  %v4351_v45 = vpop.f32.mrb[161].mxu1  ;;  %v4241_v32 = vpop.f32.mrb[162].mxu0  ;;  %v6137_v26 = vld [vmem:[%s6281_s2] ss:$0 sm:$0xff] }
 0x24e   : > { %v4352_v21 = vadd.f32 %v4351_v45, %v4350_v34  ;;  %v4353_v60 = vpop.f32.mrb[162].mxu1  ;;  %v4242_v6 = vpop.f32.mrb[163].mxu0 }
 0x24f   : > { %v2352_v58 = vadd.f32 %v5959_v11, %v4240_v9  ;;  %v4243_v36 = vadd.f32 %v4242_v6, %v4241_v32  ;;  %v4354_v63 = vpop.f32.mrb[163].mxu1 }
 0x250   : > { %v4355_v33 = vadd.f32 %v4354_v63, %v4353_v60 }
 0x251   : > { %v2513_v23 = vadd.f32 %v4352_v21, %v2352_v58  ;;  %v2355_v42 = vadd.f32 %v5959_v11, %v4243_v36 }
 0x253   : > { %3576 = vst [vmem:[%s5695_s8 + $0x220] sm:$0xff] %v2513_v23  ;;  %v2516_v46 = vadd.f32 %v4355_v33, %v2355_v42  ;;  %v4244_v39 = vpop.f32.mrb[164].mxu0 }
 0x254   : > { %v4356_v49 = vpop.f32.mrb[164].mxu1  ;;  %v4245_v2 = vpop.f32.mrb[165].mxu0 }
 0x255   : > { %3577 = vst [vmem:[%s5695_s8 + $0x230] sm:$0xff] %v2516_v46  ;;  %v4246_v43 = vadd.f32 %v4245_v2, %v4244_v39  ;;  %v4357_v0 = vpop.f32.mrb[165].mxu1  ;;  %v4247_v4 = vpop.f32.mrb[166].mxu0 }
 0x256   : > { %v4358_v16 = vadd.f32 %v4357_v0, %v4356_v49  ;;  %v4359_v56 = vpop.f32.mrb[166].mxu1  ;;  %v4248_v57 = vpop.f32.mrb[167].mxu0 }
 0x257   : > { %v2360_v12 = vadd.f32 %v5959_v11, %v4246_v43  ;;  %v4249_v17 = vadd.f32 %v4248_v57, %v4247_v4  ;;  %v4360_v10 = vpop.f32.mrb[167].mxu1 }
 0x258   : > { %v4361_v15 = vadd.f32 %v4360_v10, %v4359_v56 }
 0x259   : > { %v2521_v14 = vadd.f32 %v4358_v16, %v2360_v12  ;;  %v2363_v41 = vadd.f32 %v5959_v11, %v4249_v17 }
 0x25b   : > { %3578 = vst [vmem:[%s5695_s8 + $0x260] sm:$0xff] %v2521_v14  ;;  %v2524_v53 = vadd.f32 %v4361_v15, %v2363_v41  ;;  %v4250_v27 = vpop.f32.mrb[168].mxu0 }
 0x25c   : > { %v4362_v35 = vpop.f32.mrb[168].mxu1  ;;  %v4251_v37 = vpop.f32.mrb[169].mxu0 }
 0x25d   : > { %3579 = vst [vmem:[%s5695_s8 + $0x270] sm:$0xff] %v2524_v53  ;;  %v4252_v55 = vadd.f32 %v4251_v37, %v4250_v27  ;;  %v4363_v62 = vpop.f32.mrb[169].mxu1  ;;  %v4253_v38 = vpop.f32.mrb[170].mxu0 }
 0x25e   : > { %v4364_v20 = vadd.f32 %v4363_v62, %v4362_v35  ;;  %v4365_v52 = vpop.f32.mrb[170].mxu1  ;;  %v4254_v28 = vpop.f32.mrb[171].mxu0 }
 0x25f   : > { %v2368_v7 = vadd.f32 %v5959_v11, %v4252_v55  ;;  %v4255_v1 = vadd.f32 %v4254_v28, %v4253_v38  ;;  %v4366_v19 = vpop.f32.mrb[171].mxu1 }
 0x260   : > { %v4367_v24 = vadd.f32 %v4366_v19, %v4365_v52 }
 0x261   : > { %v2529_v47 = vadd.f32 %v4364_v20, %v2368_v7  ;;  %v2371_v29 = vadd.f32 %v5959_v11, %v4255_v1 }
 0x263   : > { %3580 = vst [vmem:[%s5695_s8 + $0x2a0] sm:$0xff] %v2529_v47  ;;  %v2532_v40 = vadd.f32 %v4367_v24, %v2371_v29  ;;  %v4256_v31 = vpop.f32.mrb[172].mxu0 }
 0x264   : > { %v4368_v30 = vpop.f32.mrb[172].mxu1  ;;  %v4257_v54 = vpop.f32.mrb[173].mxu0 }
 0x265   : > { %3581 = vst [vmem:[%s5695_s8 + $0x2b0] sm:$0xff] %v2532_v40  ;;  %v4258_v3 = vadd.f32 %v4257_v54, %v4256_v31  ;;  %v4369_v13 = vpop.f32.mrb[173].mxu1  ;;  %v4259_v44 = vpop.f32.mrb[174].mxu0 }
 0x266   : > { %v4370_v25 = vadd.f32 %v4369_v13, %v4368_v30  ;;  %v4371_v48 = vpop.f32.mrb[174].mxu1  ;;  %v4260_v59 = vpop.f32.mrb[175].mxu0 }
 0x267   : > { %v2376_v18 = vadd.f32 %v5959_v11, %v4258_v3  ;;  %v4261_v50 = vadd.f32 %v4260_v59, %v4259_v44  ;;  %v4372_v61 = vpop.f32.mrb[175].mxu1 }
 0x268   : > { %v4373_v22 = vadd.f32 %v4372_v61, %v4371_v48 }
 0x269   : > { %v2537_v51 = vadd.f32 %v4370_v25, %v2376_v18  ;;  %v2379_v5 = vadd.f32 %v6137_v26, %v4261_v50 }
 0x26b   : > { %3582 = vst [vmem:[%s5695_s8 + $0x2e0] sm:$0xff] %v2537_v51  ;;  %v2540_v34 = vadd.f32 %v4373_v22, %v2379_v5  ;;  %v4262_v8 = vpop.f32.mrb[176].mxu0 }
 0x26c   : > { %v4374_v9 = vpop.f32.mrb[176].mxu1  ;;  %v4263_v45 = vpop.f32.mrb[177].mxu0 }
 0x26d   : > { %3583 = vst [vmem:[%s5695_s8 + $0x2f0] sm:$0xff] %v2540_v34  ;;  %v4264_v32 = vadd.f32 %v4263_v45, %v4262_v8  ;;  %v4375_v11 = vpop.f32.mrb[177].mxu1  ;;  %v4265_v21 = vpop.f32.mrb[178].mxu0 }
 0x26e   : > { %v4376_v60 = vadd.f32 %v4375_v11, %v4374_v9  ;;  %v4377_v6 = vpop.f32.mrb[178].mxu1  ;;  %v4266_v58 = vpop.f32.mrb[179].mxu0 }
 0x26f   : > { %v2384_v36 = vadd.f32 %v6137_v26, %v4264_v32  ;;  %v4267_v63 = vadd.f32 %v4266_v58, %v4265_v21  ;;  %v4378_v33 = vpop.f32.mrb[179].mxu1 }
 0x270   : > { %v4379_v23 = vadd.f32 %v4378_v33, %v4377_v6 }
 0x271   : > { %v2545_v42 = vadd.f32 %v4376_v60, %v2384_v36  ;;  %v2387_v46 = vadd.f32 %v6137_v26, %v4267_v63 }
 0x273   : > { %3584 = vst [vmem:[%s5695_s8 + $0x320] sm:$0xff] %v2545_v42  ;;  %v2548_v39 = vadd.f32 %v4379_v23, %v2387_v46  ;;  %v4268_v49 = vpop.f32.mrb[180].mxu0 }
 0x274   : > { %v4380_v2 = vpop.f32.mrb[180].mxu1  ;;  %v4269_v43 = vpop.f32.mrb[181].mxu0 }
 0x275   : > { %3585 = vst [vmem:[%s5695_s8 + $0x330] sm:$0xff] %v2548_v39  ;;  %v4270_v0 = vadd.f32 %v4269_v43, %v4268_v49  ;;  %v4381_v4 = vpop.f32.mrb[181].mxu1  ;;  %v4271_v16 = vpop.f32.mrb[182].mxu0 }
 0x276   : > { %v4382_v56 = vadd.f32 %v4381_v4, %v4380_v2  ;;  %v4383_v57 = vpop.f32.mrb[182].mxu1  ;;  %v4272_v12 = vpop.f32.mrb[183].mxu0 }
 0x277   : > { %v2392_v17 = vadd.f32 %v6137_v26, %v4270_v0  ;;  %v4273_v10 = vadd.f32 %v4272_v12, %v4271_v16  ;;  %v4384_v15 = vpop.f32.mrb[183].mxu1 }
 0x278   : > { %v4385_v14 = vadd.f32 %v4384_v15, %v4383_v57 }
 0x279   : > { %v2553_v41 = vadd.f32 %v4382_v56, %v2392_v17  ;;  %v2395_v53 = vadd.f32 %v6137_v26, %v4273_v10 }
 0x27b   : > { %3586 = vst [vmem:[%s5695_s8 + $0x360] sm:$0xff] %v2553_v41  ;;  %v2556_v27 = vadd.f32 %v4385_v14, %v2395_v53  ;;  %v4274_v35 = vpop.f32.mrb[184].mxu0 }
 0x27c   : > { %v4386_v37 = vpop.f32.mrb[184].mxu1  ;;  %v4275_v55 = vpop.f32.mrb[185].mxu0 }
 0x27d   : > { %3587 = vst [vmem:[%s5695_s8 + $0x370] sm:$0xff] %v2556_v27  ;;  %v4276_v62 = vadd.f32 %v4275_v55, %v4274_v35  ;;  %v4387_v38 = vpop.f32.mrb[185].mxu1  ;;  %v4277_v20 = vpop.f32.mrb[186].mxu0 }
 0x27e   : > { %v4388_v52 = vadd.f32 %v4387_v38, %v4386_v37  ;;  %v4389_v28 = vpop.f32.mrb[186].mxu1  ;;  %v4278_v7 = vpop.f32.mrb[187].mxu0 }
 0x27f   : > { %v2400_v1 = vadd.f32 %v6137_v26, %v4276_v62  ;;  %v4279_v19 = vadd.f32 %v4278_v7, %v4277_v20  ;;  %v4390_v24 = vpop.f32.mrb[187].mxu1 }
 0x280   : > { %v4391_v47 = vadd.f32 %v4390_v24, %v4389_v28 }
 0x281   : > { %v2561_v29 = vadd.f32 %v4388_v52, %v2400_v1  ;;  %v2403_v40 = vadd.f32 %v6137_v26, %v4279_v19 }
 0x283   : > { %3588 = vst [vmem:[%s5695_s8 + $0x3a0] sm:$0xff] %v2561_v29  ;;  %v2564_v31 = vadd.f32 %v4391_v47, %v2403_v40  ;;  %v4280_v30 = vpop.f32.mrb[188].mxu0 }
 0x284   : > { %v4392_v54 = vpop.f32.mrb[188].mxu1  ;;  %v4281_v3 = vpop.f32.mrb[189].mxu0 }
 0x285   : > { %3589 = vst [vmem:[%s5695_s8 + $0x3b0] sm:$0xff] %v2564_v31  ;;  %v4282_v13 = vadd.f32 %v4281_v3, %v4280_v30  ;;  %v4393_v44 = vpop.f32.mrb[189].mxu1  ;;  %v4283_v25 = vpop.f32.mrb[190].mxu0 }
 0x286   : > { %v4394_v48 = vadd.f32 %v4393_v44, %v4392_v54  ;;  %v4395_v59 = vpop.f32.mrb[190].mxu1  ;;  %v4284_v18 = vpop.f32.mrb[191].mxu0 }
 0x287   : > { %v2408_v50 = vadd.f32 %v6137_v26, %v4282_v13  ;;  %v4285_v61 = vadd.f32 %v4284_v18, %v4283_v25  ;;  %v4396_v22 = vpop.f32.mrb[191].mxu1 }
 0x288   : > { %v4397_v51 = vadd.f32 %v4396_v22, %v4395_v59 }
 0x289   : > { %v2569_v5 = vadd.f32 %v4394_v48, %v2408_v50  ;;  %v2411_v34 = vadd.f32 %v6137_v26, %v4285_v61 }
 0x28b   : > { %3590 = vst [vmem:[%s5695_s8 + $0x3e0] sm:$0xff] %v2569_v5  ;;  %v2572_v8 = vadd.f32 %v4397_v51, %v2411_v34  ;;  %v4414_v9 = vpop.f32.mrb[192].mxu0 }
 0x28c   : > { %v4526_v45 = vpop.f32.mrb[192].mxu1  ;;  %v4415_v32 = vpop.f32.mrb[193].mxu0 }
 0x28d   : > { %3591 = vst [vmem:[%s5695_s8 + $0x3f0] sm:$0xff] %v2572_v8  ;;  %v4416_v11 = vadd.f32 %v4415_v32, %v4414_v9  ;;  %v4527_v21 = vpop.f32.mrb[193].mxu1  ;;  %v4417_v60 = vpop.f32.mrb[194].mxu0 }
 0x28e   : > { %v4528_v6 = vadd.f32 %v4527_v21, %v4526_v45  ;;  %v4529_v58 = vpop.f32.mrb[194].mxu1  ;;  %v4418_v36 = vpop.f32.mrb[195].mxu0 }
 0x28f   : > { %v2915_v63 = vadd.f32 %v6137_v26, %v4416_v11  ;;  %v4419_v33 = vadd.f32 %v4418_v36, %v4417_v60  ;;  %v4530_v23 = vpop.f32.mrb[195].mxu1 }
 0x290   : > { %v4531_v42 = vadd.f32 %v4530_v23, %v4529_v58 }
 0x291   : > { %v3076_v46 = vadd.f32 %v4528_v6, %v2915_v63  ;;  %v2918_v39 = vadd.f32 %v6137_v26, %v4419_v33 }
 0x293   : > { %3688 = vst [vmem:[%s5695_s8 + $0x28] sm:$0xff] %v3076_v46  ;;  %v3079_v49 = vadd.f32 %v4531_v42, %v2918_v39  ;;  %v4420_v2 = vpop.f32.mrb[196].mxu0 }
 0x294   : > { %v4532_v43 = vpop.f32.mrb[196].mxu1  ;;  %v4421_v0 = vpop.f32.mrb[197].mxu0 }
 0x295   : > { %3689 = vst [vmem:[%s5695_s8 + $0x38] sm:$0xff] %v3079_v49  ;;  %v4422_v4 = vadd.f32 %v4421_v0, %v4420_v2  ;;  %v4533_v16 = vpop.f32.mrb[197].mxu1  ;;  %v4423_v56 = vpop.f32.mrb[198].mxu0 }
 0x296   : > { %v4534_v57 = vadd.f32 %v4533_v16, %v4532_v43  ;;  %v4535_v12 = vpop.f32.mrb[198].mxu1  ;;  %v4424_v17 = vpop.f32.mrb[199].mxu0 }
 0x297   : > { %v2923_v10 = vadd.f32 %v6137_v26, %v4422_v4  ;;  %v4425_v15 = vadd.f32 %v4424_v17, %v4423_v56  ;;  %v4536_v14 = vpop.f32.mrb[199].mxu1 }
 0x298   : > { %v4537_v41 = vadd.f32 %v4536_v14, %v4535_v12 }
 0x299   : > { %v3084_v53 = vadd.f32 %v4534_v57, %v2923_v10  ;;  %v2926_v27 = vadd.f32 %v6137_v26, %v4425_v15 }
 0x29b   : > { %3690 = vst [vmem:[%s5695_s8 + $0x68] sm:$0xff] %v3084_v53  ;;  %v3087_v35 = vadd.f32 %v4537_v41, %v2926_v27  ;;  %v4426_v37 = vpop.f32.mrb[200].mxu0 }
 0x29c   : > { %v4538_v55 = vpop.f32.mrb[200].mxu1  ;;  %v4427_v62 = vpop.f32.mrb[201].mxu0 }
 0x29d   : > { %3691 = vst [vmem:[%s5695_s8 + $0x78] sm:$0xff] %v3087_v35  ;;  %v4428_v38 = vadd.f32 %v4427_v62, %v4426_v37  ;;  %v4539_v20 = vpop.f32.mrb[201].mxu1  ;;  %v4429_v52 = vpop.f32.mrb[202].mxu0 }
 0x29e   : > { %v4540_v28 = vadd.f32 %v4539_v20, %v4538_v55  ;;  %v4541_v7 = vpop.f32.mrb[202].mxu1  ;;  %v4430_v1 = vpop.f32.mrb[203].mxu0 }
 0x29f   : > { %v2931_v19 = vadd.f32 %v6137_v26, %v4428_v38  ;;  %v4431_v24 = vadd.f32 %v4430_v1, %v4429_v52  ;;  %v4542_v47 = vpop.f32.mrb[203].mxu1 }
 0x2a0   : > { %v4543_v29 = vadd.f32 %v4542_v47, %v4541_v7 }
 0x2a1   : > { %v3092_v40 = vadd.f32 %v4540_v28, %v2931_v19  ;;  %v2934_v31 = vadd.f32 %v6137_v26, %v4431_v24 }
 0x2a3   : > { %3692 = vst [vmem:[%s5695_s8 + $0xa8] sm:$0xff] %v3092_v40  ;;  %v3095_v30 = vadd.f32 %v4543_v29, %v2934_v31  ;;  %v4432_v54 = vpop.f32.mrb[204].mxu0 }
 0x2a4   : > { %v4544_v3 = vpop.f32.mrb[204].mxu1  ;;  %v4433_v13 = vpop.f32.mrb[205].mxu0 }
 0x2a5   : > { %3693 = vst [vmem:[%s5695_s8 + $0xb8] sm:$0xff] %v3095_v30  ;;  %v4434_v44 = vadd.f32 %v4433_v13, %v4432_v54  ;;  %v4545_v25 = vpop.f32.mrb[205].mxu1  ;;  %v4435_v48 = vpop.f32.mrb[206].mxu0 }
 0x2a6   : > { %v4546_v59 = vadd.f32 %v4545_v25, %v4544_v3  ;;  %v4547_v18 = vpop.f32.mrb[206].mxu1  ;;  %v4436_v50 = vpop.f32.mrb[207].mxu0 }
 0x2a7   : > { %v2939_v61 = vadd.f32 %v6137_v26, %v4434_v44  ;;  %v4437_v22 = vadd.f32 %v4436_v50, %v4435_v48  ;;  %v4548_v51 = vpop.f32.mrb[207].mxu1 }
 0x2a8   : > { %v4549_v5 = vadd.f32 %v4548_v51, %v4547_v18 }
 0x2a9   : > { %v3100_v34 = vadd.f32 %v4546_v59, %v2939_v61  ;;  %v2942_v8 = vadd.f32 %v6137_v26, %v4437_v22 }
 0x2ab   : > { %3694 = vst [vmem:[%s5695_s8 + $0xe8] sm:$0xff] %v3100_v34  ;;  %v3103_v9 = vadd.f32 %v4549_v5, %v2942_v8  ;;  %v4438_v45 = vpop.f32.mrb[208].mxu0 }
 0x2ac   : > { %v4550_v32 = vpop.f32.mrb[208].mxu1  ;;  %v4439_v11 = vpop.f32.mrb[209].mxu0 }
 0x2ad   : > { %3695 = vst [vmem:[%s5695_s8 + $0xf8] sm:$0xff] %v3103_v9  ;;  %v4440_v21 = vadd.f32 %v4439_v11, %v4438_v45  ;;  %v4551_v60 = vpop.f32.mrb[209].mxu1  ;;  %v4441_v6 = vpop.f32.mrb[210].mxu0 }
 0x2ae   : > { %v4552_v58 = vadd.f32 %v4551_v60, %v4550_v32  ;;  %v4553_v36 = vpop.f32.mrb[210].mxu1  ;;  %v4442_v63 = vpop.f32.mrb[211].mxu0 }
 0x2af   : > { %v2947_v33 = vadd.f32 %v6137_v26, %v4440_v21  ;;  %v4443_v23 = vadd.f32 %v4442_v63, %v4441_v6  ;;  %v4554_v42 = vpop.f32.mrb[211].mxu1 }
 0x2b0   : > { %v4555_v46 = vadd.f32 %v4554_v42, %v4553_v36 }
 0x2b1   : > { %v3108_v39 = vadd.f32 %v4552_v58, %v2947_v33  ;;  %v2950_v49 = vadd.f32 %v6137_v26, %v4443_v23 }
 0x2b3   : > { %3696 = vst [vmem:[%s5695_s8 + $0x128] sm:$0xff] %v3108_v39  ;;  %v3111_v2 = vadd.f32 %v4555_v46, %v2950_v49  ;;  %v4444_v43 = vpop.f32.mrb[212].mxu0 }
 0x2b4   : > { %v4556_v0 = vpop.f32.mrb[212].mxu1  ;;  %v4445_v4 = vpop.f32.mrb[213].mxu0 }
 0x2b5   : > { %3697 = vst [vmem:[%s5695_s8 + $0x138] sm:$0xff] %v3111_v2  ;;  %v4446_v16 = vadd.f32 %v4445_v4, %v4444_v43  ;;  %v4557_v56 = vpop.f32.mrb[213].mxu1  ;;  %v4447_v57 = vpop.f32.mrb[214].mxu0 }
 0x2b6   : > { %v4558_v12 = vadd.f32 %v4557_v56, %v4556_v0  ;;  %v4559_v17 = vpop.f32.mrb[214].mxu1  ;;  %v4448_v10 = vpop.f32.mrb[215].mxu0 }
 0x2b7   : > { %v2955_v15 = vadd.f32 %v6137_v26, %v4446_v16  ;;  %v4449_v14 = vadd.f32 %v4448_v10, %v4447_v57  ;;  %v4560_v41 = vpop.f32.mrb[215].mxu1 }
 0x2b8   : > { %v4561_v53 = vadd.f32 %v4560_v41, %v4559_v17 }
 0x2b9   : > { %v3116_v27 = vadd.f32 %v4558_v12, %v2955_v15  ;;  %v2958_v35 = vadd.f32 %v6137_v26, %v4449_v14 }
 0x2bb   : > { %3698 = vst [vmem:[%s5695_s8 + $0x168] sm:$0xff] %v3116_v27  ;;  %v3119_v37 = vadd.f32 %v4561_v53, %v2958_v35  ;;  %v4450_v55 = vpop.f32.mrb[216].mxu0 }
 0x2bc   : > { %v4562_v62 = vpop.f32.mrb[216].mxu1  ;;  %v4451_v38 = vpop.f32.mrb[217].mxu0 }
 0x2bd   : > { %3699 = vst [vmem:[%s5695_s8 + $0x178] sm:$0xff] %v3119_v37  ;;  %v4452_v20 = vadd.f32 %v4451_v38, %v4450_v55  ;;  %v4563_v52 = vpop.f32.mrb[217].mxu1  ;;  %v4453_v28 = vpop.f32.mrb[218].mxu0 }
 0x2be   : > { %v4564_v7 = vadd.f32 %v4563_v52, %v4562_v62  ;;  %v4565_v1 = vpop.f32.mrb[218].mxu1  ;;  %v4454_v19 = vpop.f32.mrb[219].mxu0 }
 0x2bf   : > { %v2963_v24 = vadd.f32 %v6137_v26, %v4452_v20  ;;  %v4455_v47 = vadd.f32 %v4454_v19, %v4453_v28  ;;  %v4566_v29 = vpop.f32.mrb[219].mxu1 }
 0x2c0   : > { %v4567_v40 = vadd.f32 %v4566_v29, %v4565_v1 }
 0x2c1   : > { %v3124_v31 = vadd.f32 %v4564_v7, %v2963_v24  ;;  %v2966_v30 = vadd.f32 %v6137_v26, %v4455_v47 }
 0x2c3   : > { %3700 = vst [vmem:[%s5695_s8 + $0x1a8] sm:$0xff] %v3124_v31  ;;  %v3127_v54 = vadd.f32 %v4567_v40, %v2966_v30  ;;  %v4456_v3 = vpop.f32.mrb[220].mxu0 }
 0x2c4   : > { %v4568_v13 = vpop.f32.mrb[220].mxu1  ;;  %v4457_v44 = vpop.f32.mrb[221].mxu0 }
 0x2c5   : > { %3701 = vst [vmem:[%s5695_s8 + $0x1b8] sm:$0xff] %v3127_v54  ;;  %v4458_v25 = vadd.f32 %v4457_v44, %v4456_v3  ;;  %v4569_v48 = vpop.f32.mrb[221].mxu1  ;;  %v4459_v59 = vpop.f32.mrb[222].mxu0 }
 0x2c6   : > { %v4570_v18 = vadd.f32 %v4569_v48, %v4568_v13  ;;  %v4571_v50 = vpop.f32.mrb[222].mxu1  ;;  %v4460_v61 = vpop.f32.mrb[223].mxu0 }
 0x2c7   : > { %v2971_v22 = vadd.f32 %v6137_v26, %v4458_v25  ;;  %v4461_v51 = vadd.f32 %v4460_v61, %v4459_v59  ;;  %v4572_v5 = vpop.f32.mrb[223].mxu1 }
 0x2c8   : > { %v4573_v34 = vadd.f32 %v4572_v5, %v4571_v50 }
 0x2c9   : > { %v3132_v8 = vadd.f32 %v4570_v18, %v2971_v22  ;;  %v2974_v9 = vadd.f32 %v6137_v26, %v4461_v51 }
 0x2cb   : > { %3702 = vst [vmem:[%s5695_s8 + $0x1e8] sm:$0xff] %v3132_v8  ;;  %v3135_v45 = vadd.f32 %v4573_v34, %v2974_v9  ;;  %v4462_v32 = vpop.f32.mrb[224].mxu0 }
 0x2cc   : > { %v4574_v11 = vpop.f32.mrb[224].mxu1  ;;  %v4463_v21 = vpop.f32.mrb[225].mxu0 }
 0x2cd   : > { %3703 = vst [vmem:[%s5695_s8 + $0x1f8] sm:$0xff] %v3135_v45  ;;  %v4464_v60 = vadd.f32 %v4463_v21, %v4462_v32  ;;  %v4575_v6 = vpop.f32.mrb[225].mxu1  ;;  %v4465_v58 = vpop.f32.mrb[226].mxu0 }
 0x2ce   : > { %v4576_v36 = vadd.f32 %v4575_v6, %v4574_v11  ;;  %v4577_v63 = vpop.f32.mrb[226].mxu1  ;;  %v4466_v33 = vpop.f32.mrb[227].mxu0 }
 0x2cf   : > { %v2979_v23 = vadd.f32 %v6137_v26, %v4464_v60  ;;  %v4467_v42 = vadd.f32 %v4466_v33, %v4465_v58  ;;  %v4578_v46 = vpop.f32.mrb[227].mxu1 }
 0x2d0   : > { %v4579_v39 = vadd.f32 %v4578_v46, %v4577_v63 }
 0x2d1   : > { %v3140_v49 = vadd.f32 %v4576_v36, %v2979_v23  ;;  %v2982_v2 = vadd.f32 %v6137_v26, %v4467_v42 }
 0x2d3   : > { %3704 = vst [vmem:[%s5695_s8 + $0x228] sm:$0xff] %v3140_v49  ;;  %v3143_v43 = vadd.f32 %v4579_v39, %v2982_v2  ;;  %v4468_v0 = vpop.f32.mrb[228].mxu0 }
 0x2d4   : > { %v4580_v4 = vpop.f32.mrb[228].mxu1  ;;  %v4469_v16 = vpop.f32.mrb[229].mxu0 }
 0x2d5   : > { %3705 = vst [vmem:[%s5695_s8 + $0x238] sm:$0xff] %v3143_v43  ;;  %v4470_v56 = vadd.f32 %v4469_v16, %v4468_v0  ;;  %v4581_v57 = vpop.f32.mrb[229].mxu1  ;;  %v4471_v12 = vpop.f32.mrb[230].mxu0 }
 0x2d6   : > { %v4582_v17 = vadd.f32 %v4581_v57, %v4580_v4  ;;  %v4583_v10 = vpop.f32.mrb[230].mxu1  ;;  %v4472_v15 = vpop.f32.mrb[231].mxu0 }
 0x2d7   : > { %v2987_v14 = vadd.f32 %v6137_v26, %v4470_v56  ;;  %v4473_v41 = vadd.f32 %v4472_v15, %v4471_v12  ;;  %v4584_v53 = vpop.f32.mrb[231].mxu1 }
 0x2d8   : > { %v4585_v27 = vadd.f32 %v4584_v53, %v4583_v10 }
 0x2d9   : > { %v3148_v35 = vadd.f32 %v4582_v17, %v2987_v14  ;;  %v2990_v37 = vadd.f32 %v6137_v26, %v4473_v41 }
 0x2db   : > { %3706 = vst [vmem:[%s5695_s8 + $0x268] sm:$0xff] %v3148_v35  ;;  %v3151_v55 = vadd.f32 %v4585_v27, %v2990_v37  ;;  %v4474_v62 = vpop.f32.mrb[232].mxu0 }
 0x2dc   : > { %v4586_v38 = vpop.f32.mrb[232].mxu1  ;;  %v4475_v20 = vpop.f32.mrb[233].mxu0 }
 0x2dd   : > { %3707 = vst [vmem:[%s5695_s8 + $0x278] sm:$0xff] %v3151_v55  ;;  %v4476_v52 = vadd.f32 %v4475_v20, %v4474_v62  ;;  %v4587_v28 = vpop.f32.mrb[233].mxu1  ;;  %v4477_v7 = vpop.f32.mrb[234].mxu0 }
 0x2de   : > { %v4588_v1 = vadd.f32 %v4587_v28, %v4586_v38  ;;  %v4589_v19 = vpop.f32.mrb[234].mxu1  ;;  %v4478_v24 = vpop.f32.mrb[235].mxu0 }
 0x2df   : > { %v2995_v47 = vadd.f32 %v6137_v26, %v4476_v52  ;;  %v4479_v29 = vadd.f32 %v4478_v24, %v4477_v7  ;;  %v4590_v40 = vpop.f32.mrb[235].mxu1 }
 0x2e0   : > { %v4591_v31 = vadd.f32 %v4590_v40, %v4589_v19 }
 0x2e1   : > { %v3156_v30 = vadd.f32 %v4588_v1, %v2995_v47  ;;  %v2998_v54 = vadd.f32 %v6137_v26, %v4479_v29 }
 0x2e3   : > { %3708 = vst [vmem:[%s5695_s8 + $0x2a8] sm:$0xff] %v3156_v30  ;;  %v3159_v3 = vadd.f32 %v4591_v31, %v2998_v54  ;;  %v4480_v13 = vpop.f32.mrb[236].mxu0 }
 0x2e4   : > { %v4592_v44 = vpop.f32.mrb[236].mxu1  ;;  %v4481_v25 = vpop.f32.mrb[237].mxu0 }
 0x2e5   : > { %3709 = vst [vmem:[%s5695_s8 + $0x2b8] sm:$0xff] %v3159_v3  ;;  %v4482_v48 = vadd.f32 %v4481_v25, %v4480_v13  ;;  %v4593_v59 = vpop.f32.mrb[237].mxu1  ;;  %v4483_v18 = vpop.f32.mrb[238].mxu0 }
 0x2e6   : > { %v4594_v50 = vadd.f32 %v4593_v59, %v4592_v44  ;;  %v4595_v61 = vpop.f32.mrb[238].mxu1  ;;  %v4484_v22 = vpop.f32.mrb[239].mxu0 }
 0x2e7   : > { %v3003_v51 = vadd.f32 %v6137_v26, %v4482_v48  ;;  %v4485_v5 = vadd.f32 %v4484_v22, %v4483_v18  ;;  %v4596_v34 = vpop.f32.mrb[239].mxu1 }
 0x2e8   : > { %v4597_v8 = vadd.f32 %v4596_v34, %v4595_v61 }
 0x2e9   : > { %v3164_v9 = vadd.f32 %v4594_v50, %v3003_v51  ;;  %v3006_v45 = vadd.f32 %v6137_v26, %v4485_v5 }
 0x2eb   : > { %3710 = vst [vmem:[%s5695_s8 + $0x2e8] sm:$0xff] %v3164_v9  ;;  %v3167_v32 = vadd.f32 %v4597_v8, %v3006_v45  ;;  %v4486_v11 = vpop.f32.mrb[240].mxu0 }
 0x2ec   : > { %v4598_v21 = vpop.f32.mrb[240].mxu1  ;;  %v4487_v60 = vpop.f32.mrb[241].mxu0 }
 0x2ed   : > { %3711 = vst [vmem:[%s5695_s8 + $0x2f8] sm:$0xff] %v3167_v32  ;;  %v4488_v6 = vadd.f32 %v4487_v60, %v4486_v11  ;;  %v4599_v58 = vpop.f32.mrb[241].mxu1  ;;  %v4489_v36 = vpop.f32.mrb[242].mxu0 }
 0x2ee   : > { %v4600_v63 = vadd.f32 %v4599_v58, %v4598_v21  ;;  %v4601_v33 = vpop.f32.mrb[242].mxu1  ;;  %v4490_v23 = vpop.f32.mrb[243].mxu0 }
 0x2ef   : > { %v3011_v42 = vadd.f32 %v6137_v26, %v4488_v6  ;;  %v4491_v46 = vadd.f32 %v4490_v23, %v4489_v36  ;;  %v4602_v39 = vpop.f32.mrb[243].mxu1 }
 0x2f0   : > { %v4603_v49 = vadd.f32 %v4602_v39, %v4601_v33 }
 0x2f1   : > { %v3172_v2 = vadd.f32 %v4600_v63, %v3011_v42  ;;  %v3014_v43 = vadd.f32 %v6137_v26, %v4491_v46 }
 0x2f3   : > { %3712 = vst [vmem:[%s5695_s8 + $0x328] sm:$0xff] %v3172_v2  ;;  %v3175_v0 = vadd.f32 %v4603_v49, %v3014_v43  ;;  %v4492_v4 = vpop.f32.mrb[244].mxu0 }
 0x2f4   : > { %v4604_v16 = vpop.f32.mrb[244].mxu1  ;;  %v4493_v56 = vpop.f32.mrb[245].mxu0 }
 0x2f5   : > { %3713 = vst [vmem:[%s5695_s8 + $0x338] sm:$0xff] %v3175_v0  ;;  %v4494_v57 = vadd.f32 %v4493_v56, %v4492_v4  ;;  %v4605_v12 = vpop.f32.mrb[245].mxu1  ;;  %v4495_v17 = vpop.f32.mrb[246].mxu0 }
 0x2f6   : > { %v4606_v10 = vadd.f32 %v4605_v12, %v4604_v16  ;;  %v4607_v15 = vpop.f32.mrb[246].mxu1  ;;  %v4496_v14 = vpop.f32.mrb[247].mxu0 }
 0x2f7   : > { %v3019_v41 = vadd.f32 %v6137_v26, %v4494_v57  ;;  %v4497_v53 = vadd.f32 %v4496_v14, %v4495_v17  ;;  %v4608_v27 = vpop.f32.mrb[247].mxu1 }
 0x2f8   : > { %v4609_v35 = vadd.f32 %v4608_v27, %v4607_v15 }
 0x2f9   : > { %v3180_v37 = vadd.f32 %v4606_v10, %v3019_v41  ;;  %v3022_v55 = vadd.f32 %v6137_v26, %v4497_v53 }
 0x2fb   : > { %3714 = vst [vmem:[%s5695_s8 + $0x368] sm:$0xff] %v3180_v37  ;;  %v3183_v62 = vadd.f32 %v4609_v35, %v3022_v55  ;;  %v4498_v38 = vpop.f32.mrb[248].mxu0 }
 0x2fc   : > { %v4610_v20 = vpop.f32.mrb[248].mxu1  ;;  %v4499_v52 = vpop.f32.mrb[249].mxu0 }
 0x2fd   : > { %3715 = vst [vmem:[%s5695_s8 + $0x378] sm:$0xff] %v3183_v62  ;;  %v4500_v28 = vadd.f32 %v4499_v52, %v4498_v38  ;;  %v4611_v7 = vpop.f32.mrb[249].mxu1  ;;  %v4501_v1 = vpop.f32.mrb[250].mxu0 }
 0x2fe   : > { %v4612_v19 = vadd.f32 %v4611_v7, %v4610_v20  ;;  %v4613_v24 = vpop.f32.mrb[250].mxu1  ;;  %v4502_v47 = vpop.f32.mrb[251].mxu0 }
 0x2ff   : > { %v3027_v29 = vadd.f32 %v6137_v26, %v4500_v28  ;;  %v4503_v40 = vadd.f32 %v4502_v47, %v4501_v1  ;;  %v4614_v31 = vpop.f32.mrb[251].mxu1 }
 0x300   : > { %v4615_v30 = vadd.f32 %v4614_v31, %v4613_v24 }
 0x301   : > { %v3188_v54 = vadd.f32 %v4612_v19, %v3027_v29  ;;  %v3030_v3 = vadd.f32 %v6137_v26, %v4503_v40 }
 0x303   : > { %3716 = vst [vmem:[%s5695_s8 + $0x3a8] sm:$0xff] %v3188_v54  ;;  %v3191_v13 = vadd.f32 %v4615_v30, %v3030_v3  ;;  %v4504_v44 = vpop.f32.mrb[252].mxu0 }
 0x304   : > { %v4616_v25 = vpop.f32.mrb[252].mxu1  ;;  %v4505_v48 = vpop.f32.mrb[253].mxu0 }
 0x305   : > { %3717 = vst [vmem:[%s5695_s8 + $0x3b8] sm:$0xff] %v3191_v13  ;;  %v4506_v59 = vadd.f32 %v4505_v48, %v4504_v44  ;;  %v4617_v18 = vpop.f32.mrb[253].mxu1  ;;  %v4507_v50 = vpop.f32.mrb[254].mxu0 }
 0x306   : > { %v4618_v61 = vadd.f32 %v4617_v18, %v4616_v25  ;;  %v4619_v22 = vpop.f32.mrb[254].mxu1  ;;  %v4508_v51 = vpop.f32.mrb[255].mxu0 }
 0x307   : > { %v3035_v5 = vadd.f32 %v6137_v26, %v4506_v59  ;;  %v4509_v34 = vadd.f32 %v4508_v51, %v4507_v50  ;;  %v4620_v8 = vpop.f32.mrb[255].mxu1 }
 0x308   : > { %v4621_v9 = vadd.f32 %v4620_v8, %v4619_v22 }
 0x309   : > { %v3196_v45 = vadd.f32 %v4618_v61, %v3035_v5  ;;  %v3038_v32 = vadd.f32 %v6137_v26, %v4509_v34 }
 0x30b   : > { %3718 = vst [vmem:[%s5695_s8 + $0x3e8] sm:$0xff] %v3196_v45  ;;  %v3199_v11 = vadd.f32 %v4621_v9, %v3038_v32 }
 0x30d   : > { %3719 = vst [vmem:[%s5695_s8 + $0x3f8] sm:$0xff] %v3199_v11 }
 0x30e   : > { %4823 = shalt.err (!%p4820_p5)
}
 0x30f   : > { %s4824_s4 = scalar_lea.hbm %s6225_s5, 16384  ;;  %s4828_s19 = scalar_lea.hbm %s6282_s3, 32768 }
 0x310   : > { %p4825_p6 = scmp.ne.s32.totalorder %s6225_s5, %s4824_s4  ;;  %p4829_p10 = scmp.lt.u32.totalorder %s6225_s5, %s6282_s3 }
 0x311   : > { %p4830_p11 = scmp.lt.u32.totalorder %s4828_s19, %s4824_s4  ;;  %p4832_p13 = scmp.lt.u32.totalorder %s4824_s4, %s6225_s5 }
 0x312   : > { %p4826_p7 = pnand %p4825_p6, %p4953_p4 }
 0x313   : > { %p4831_p12 = por %p4830_p11, %p4829_p10 }
 0x314   : > { %p4827_p9 = pneg %p4826_p7 }
 0x315   : > { %p4833_p0 = por %p4832_p13, %p4831_p12 }
 0x317   : > { %p4834_p1 = pnand %p4833_p0, %p4827_p9 }
 0x319   : > { %4837 = shalt.err (!%p4834_p1)
}
 0x31a   : > { %s4891_s23 = smov 256   ;;  %s4892_s26 = smov 16  }
 0x31b   : > { %4623 = dma.vmem_to_hbm [thread:$0]  (%p4953_p4), %s6227_s28, 16384, %s6225_s5, %s6233_s15, %s4891_s23, %s4891_s23, %s4892_s26  }
 0x31c PF: > { %p4629_p2 = scmp.ge.s32.totalorder %s4888_s17, 2  ;;  %s3266_s27 = sand.u32 1, %s4868_s12  }
 0x31d   : > { %s3267_s29 = scalar_lea.sflag [#allocation3], %s3266_s27 }
 0x31e   : > { %p4626_p3 = pnand %p4629_p2, %p4960_p8 }
 0x320   : > { %4863 = dma.done.wait (!%p4626_p3), %s3267_s29, 16384  }
 0x321   : > { %4865 = vsyncadd (!%p4626_p3), %s3267_s29, 4294950912  ;;  %s16_s17 = sadd.s32 1, %s4888_s17   ;;  %s6309_s12 = smov %s4872_s13 }
 0x322   : > { %p13_p5 = scmp.ge.s32.totalorder %s16_s17, 4   ;;  %s6310_s13 = smov %s4876_s14 }
 0x323   : > { %s6311_s14 = smov %s4966_s25  ;;  %s6312_s15 = smov %s4884_s16 }
 0x324   : > { %s6313_s16 = smov %s6315_s20  ;;  %15 = sbr.rel (!%p13_p5) target bundleno = 4 (0x4), region = 72 }
 0x32b   :  { %3272 = vsyncpa [#allocation3], 1 }
 0x32c   :  { %3274 = vsyncpa [#allocation3 + $0x1], 1 }

</bundles_post_ra>
